<compile_context>
chip_gen: v6e
topology: v6e:2x2x1
jax: 0.10.0
libtpu: 0.0.40
codegen_flags: <defaults>
</compile_context>

<pallas_src>
import functools

import numpy as np

import jax
import jax.numpy as jnp
from jax import lax
from jax.experimental import pallas as pl
from jax.experimental.pallas import tpu as pltpu


# ------------------------------ fused kernel -------------------------------

def _lenet_fused_kernel(x_ref, c1w_ref, c1b_ref, c2w_ref, c2b_ref,
                        f1w_ref, f1b_ref, f2w_ref, f2b_ref, f3w_ref, f3b_ref,
                        out_ref, t1_ref, s1_ref, t2_ref, p2_ref):
    """Whole forward pass for one block of `nb` images, fully in VMEM.

    Layouts (per image n):
      conv1 matmul out : (24, 256)  lane = par*128 + co*12 + jp   (j = 2*jp+par)
      pooled1 (s1)     : (12, 128)  lane = co*12 + jp   (lanes >= 72 are zero)
      conv2 matmul out : (8, 256)   lane = par*128 + oc*4 + jq    (j2 = 2*jq+par)
      pooled2 (p2 row) : (4, 128)   lane = oc*4 + jq    (lanes >= 64 are zero)
    """
    nb = x_ref.shape[0]

    for n in range(nb):                       # static unroll, nb is small
        # ---- conv1 (1 -> 6, 5x5) as 5 width-Toeplitz MXU matmuls ----
        acc1 = jnp.zeros((24, 256), jnp.float32)
        for di in range(5):
            rows = x_ref[n, di:di + 24, :]                       # (24, 28)
            acc1 = acc1 + jnp.dot(rows, c1w_ref[di],
                                  preferred_element_type=jnp.float32)
        acc1 = jnp.maximum(acc1 + c1b_ref[...], 0.0)             # bias + ReLU

        # ---- fused MaxPool(2,2): width via parity blocks, height via strides
        t1_ref[...] = jnp.maximum(acc1[:, 0:128], acc1[:, 128:256])   # (24,128)
        s1_ref[...] = jnp.maximum(t1_ref[pl.ds(0, 12, stride=2), :],
                                  t1_ref[pl.ds(1, 12, stride=2), :])  # (12,128)

        # ---- conv2 (6 -> 16, 5x5), same Toeplitz trick ----
        acc2 = jnp.zeros((8, 256), jnp.float32)
        for di in range(5):
            rows = s1_ref[di:di + 8, :]                          # (8, 128)
            acc2 = acc2 + jnp.dot(rows, c2w_ref[di],
                                  preferred_element_type=jnp.float32)
        acc2 = jnp.maximum(acc2 + c2b_ref[...], 0.0)             # bias + ReLU

        t2_ref[...] = jnp.maximum(acc2[:, 0:128], acc2[:, 128:256])   # (8,128)
        p2_ref[n * 4:(n + 1) * 4, :] = jnp.maximum(
            t2_ref[pl.ds(0, 4, stride=2), :],
            t2_ref[pl.ds(1, 4, stride=2), :])                    # (4,128)

    # ---- FC stage, batched over the nb images of this grid step ----
    # fc1: flatten + pooled layout are folded into f1w (zero rows for dead lanes)
    y = jnp.zeros((nb, 120), jnp.float32)
    for iq in range(4):                                          # pooled row idx
        y = y + jnp.dot(p2_ref[pl.ds(iq, nb, stride=4), :], f1w_ref[iq],
                        preferred_element_type=jnp.float32)
    y = jnp.maximum(y + f1b_ref[...], 0.0)                       # (nb, 120)
    y = jnp.maximum(
        jnp.dot(y, f2w_ref[...], preferred_element_type=jnp.float32)
        + f2b_ref[...], 0.0)                                     # (nb, 84)
    y = (jnp.dot(y, f3w_ref[...], preferred_element_type=jnp.float32)
         + f3b_ref[...])                                         # (nb, C)
    out_ref[...] = y.astype(out_ref.dtype)


# ---------------------------- weight repacking ------------------------------

_PACKED_ORDER = ("c1w", "c1b", "c2w", "c2b", "f1w", "f1b", "f2w", "f2b",
                 "f3w", "f3b")


def pack_params(p, num_classes):
    """Repack PyTorch-layout parameters into the kernel's VMEM layouts."""
    f32 = jnp.float32
    w1 = p["conv1_w"].astype(f32)          # (6, 1, 5, 5)
    w2 = p["conv2_w"].astype(f32)          # (16, 6, 5, 5)
    wf1 = p["fc1_w"].astype(f32)           # (120, 256)
    wf2 = p["fc2_w"].astype(f32)           # (84, 120)
    wf3 = p["fc3_w"].astype(f32)           # (C, 84)

    # conv1 width-Toeplitz: C1W[di, j+dj, (j%2)*128 + co*12 + j//2] = w1[co,0,di,dj]
    di, dj, co, j = np.meshgrid(np.arange(5), np.arange(5), np.arange(6),
                                np.arange(24), indexing="ij")
    di, dj, co, j = (a.reshape(-1) for a in (di, dj, co, j))
    c1w = jnp.zeros((5, 28, 256), f32).at[
        di, j + dj, (j % 2) * 128 + co * 12 + j // 2].set(w1[co, 0, di, dj])
    cb, jb = np.meshgrid(np.arange(6), np.arange(24), indexing="ij")
    cb, jb = cb.reshape(-1), jb.reshape(-1)
    c1b = jnp.zeros((1, 256), f32).at[
        0, (jb % 2) * 128 + cb * 12 + jb // 2].set(p["conv1_b"].astype(f32)[cb])

    # conv2: C2W[di, ci*12 + j2 + dj, (j2%2)*128 + oc*4 + j2//2] = w2[oc,ci,di,dj]
    di, dj, oc, ci, j2 = np.meshgrid(np.arange(5), np.arange(5), np.arange(16),
                                     np.arange(6), np.arange(8), indexing="ij")
    di, dj, oc, ci, j2 = (a.reshape(-1) for a in (di, dj, oc, ci, j2))
    c2w = jnp.zeros((5, 128, 256), f32).at[
        di, ci * 12 + j2 + dj,
        (j2 % 2) * 128 + oc * 4 + j2 // 2].set(w2[oc, ci, di, dj])
    ob, j2b = np.meshgrid(np.arange(16), np.arange(8), indexing="ij")
    ob, j2b = ob.reshape(-1), j2b.reshape(-1)
    c2b = jnp.zeros((1, 256), f32).at[
        0, (j2b % 2) * 128 + ob * 4 + j2b // 2].set(p["conv2_b"].astype(f32)[ob])

    # fc1, folded with the NCHW flatten (index = oc*16 + iq*4 + jq) and the
    # pooled lane layout (lane = oc*4 + jq); rows 64..127 are zero (dead lanes).
    f1 = wf1.reshape(120, 16, 4, 4)                       # (f, oc, iq, jq)
    f1 = jnp.transpose(f1, (2, 1, 3, 0)).reshape(4, 64, 120)
    f1w = jnp.pad(f1, ((0, 0), (0, 64), (0, 0)))          # (4, 128, 120)
    f1b = p["fc1_b"].astype(f32).reshape(1, 120)
    f2w = wf2.T                                           # (120, 84)
    f2b = p["fc2_b"].astype(f32).reshape(1, 84)
    f3w = wf3.T                                           # (84, C)
    f3b = p["fc3_b"].astype(f32).reshape(1, num_classes)

    return dict(c1w=c1w, c1b=c1b, c2w=c2w, c2b=c2b, f1w=f1w, f1b=f1b,
                f2w=f2w, f2b=f2b, f3w=f3w, f3b=f3b)


# ------------------------------ pallas wrapper ------------------------------

def _bcast_spec(shape):
    nd = len(shape)

    def idx(*_):
        return (0,) * nd

    return pl.BlockSpec(shape, idx)


def lenet_forward(packed, x_nchw, *, num_classes):
    """Forward pass equivalent to Net.forward. x_nchw: (N, 1, 28, 28) f32."""
    n = x_nchw.shape[0]
    assert x_nchw.shape[1:] == (1, 28, 28), x_nchw.shape
    nb = n if n <= 8 else 8          # images per grid step (multiple of 8 if n>8)
    assert n % nb == 0
    x3 = x_nchw.reshape(n, 28, 28).astype(jnp.float32)
    weights = [packed[k] for k in _PACKED_ORDER]

    return pl.pallas_call(
        _lenet_fused_kernel,
        out_shape=jax.ShapeDtypeStruct((n, num_classes), jnp.float32),
        grid_spec=pltpu.PrefetchScalarGridSpec(
            num_scalar_prefetch=0,
            grid=(n // nb,),
            in_specs=[pl.BlockSpec((nb, 28, 28), lambda i: (i, 0, 0))]
                     + [_bcast_spec(w.shape) for w in weights],
            out_specs=pl.BlockSpec((nb, num_classes), lambda i: (i, 0)),
            scratch_shapes=[
                pltpu.VMEM((24, 128), jnp.float32),   # conv1 width-pooled
                pltpu.VMEM((12, 128), jnp.float32),   # pooled1 activation
                pltpu.VMEM((8, 128), jnp.float32),    # conv2 width-pooled
                pltpu.VMEM((nb * 4, 128), jnp.float32),  # pooled2, all images
            ]),
        compiler_params=pltpu.CompilerParams(
            dimension_semantics=("parallel",),        # v7x: shard batch on 2 TCs
            vmem_limit_bytes=32 * 1024 * 1024),
    )(x3, *weights)


# ------------------------- params + pure-JAX reference ----------------------

def init_params(key, num_classes):
    ks = jax.random.split(key, 10)

    def u(k, shape, fan_in):
        b = 1.0 / np.sqrt(float(fan_in))
        return jax.random.uniform(k, shape, jnp.float32, -b, b)

    return {
        "conv1_w": u(ks[0], (6, 1, 5, 5), 25),
        "conv1_b": u(ks[1], (6,), 25),
        "conv2_w": u(ks[2], (16, 6, 5, 5), 150),
        "conv2_b": u(ks[3], (16,), 150),
        "fc1_w": u(ks[4], (120, 16 * 4 * 4), 256),
        "fc1_b": u(ks[5], (120,), 256),
        "fc2_w": u(ks[6], (84, 120), 120),
        "fc2_b": u(ks[7], (84,), 120),
        "fc3_w": u(ks[8], (num_classes, 84), 84),
        "fc3_b": u(ks[9], (num_classes,), 84),
    }


def reference_forward(p, x):
    """Plain-JAX reference matching the PyTorch Net (for a sanity check)."""
    dn = ("NCHW", "OIHW", "NCHW")

    def pool(y):
        nB, c, h, w = y.shape
        return y.reshape(nB, c, h // 2, 2, w // 2, 2).max(axis=(3, 5))

    y = lax.conv_general_dilated(x, p["conv1_w"], (1, 1), "VALID",
                                 dimension_numbers=dn,
                                 precision=lax.Precision.HIGHEST)
    y = pool(jnp.maximum(y + p["conv1_b"].reshape(1, -1, 1, 1), 0.0))
    y = lax.conv_general_dilated(y, p["conv2_w"], (1, 1), "VALID",
                                 dimension_numbers=dn,
                                 precision=lax.Precision.HIGHEST)
    y = pool(jnp.maximum(y + p["conv2_b"].reshape(1, -1, 1, 1), 0.0))
    y = y.reshape(y.shape[0], -1)
    y = jnp.maximum(y @ p["fc1_w"].T + p["fc1_b"], 0.0)
    y = jnp.maximum(y @ p["fc2_w"].T + p["fc2_b"], 0.0)
    return y @ p["fc3_w"].T + p["fc3_b"]


# ----------------------------------- main -----------------------------------

if __name__ == "__main__":
    num_classes = 10
    batch = 2
    key = jax.random.PRNGKey(0)
    k_params, k_x = jax.random.split(key)

    params = init_params(k_params, num_classes)
    x = jax.random.normal(k_x, (batch, 1, 28, 28), jnp.float32)   # NCHW input

    packed = pack_params(params, num_classes)
    fwd = jax.jit(functools.partial(lenet_forward, num_classes=num_classes))
    out = jax.block_until_ready(fwd(packed, x))

    assert out.shape == (batch, num_classes), out.shape
    assert out.dtype == jnp.float32

    ref = jax.block_until_ready(reference_forward(params, x))
    max_err = float(jnp.max(jnp.abs(out - ref)))
    assert max_err < 5e-2, f"max abs error vs reference: {max_err}"

    print("KERNEL_OK")
</pallas_src>

<mosaic_0001>
module attributes {stable_mosaic.version = 11 : i64} {
  func.func @_lenet_fused_kernel(%arg0: i32, %arg1: memref<2x28x28xf32, #tpu.memory_space<vmem>>, %arg2: memref<5x28x256xf32, #tpu.memory_space<vmem>>, %arg3: memref<1x256xf32, #tpu.memory_space<vmem>>, %arg4: memref<5x128x256xf32, #tpu.memory_space<vmem>>, %arg5: memref<1x256xf32, #tpu.memory_space<vmem>>, %arg6: memref<4x128x120xf32, #tpu.memory_space<vmem>>, %arg7: memref<1x120xf32, #tpu.memory_space<vmem>>, %arg8: memref<120x84xf32, #tpu.memory_space<vmem>>, %arg9: memref<1x84xf32, #tpu.memory_space<vmem>>, %arg10: memref<84x10xf32, #tpu.memory_space<vmem>>, %arg11: memref<1x10xf32, #tpu.memory_space<vmem>>, %arg12: memref<2x10xf32, #tpu.memory_space<vmem>>, %arg13: memref<24x128xf32, #tpu.memory_space<vmem>>, %arg14: memref<12x128xf32, #tpu.memory_space<vmem>>, %arg15: memref<8x128xf32, #tpu.memory_space<vmem>>, %arg16: memref<8x128xf32, #tpu.memory_space<vmem>>) attributes {dimension_semantics = [#tpu.dimension_semantics<parallel>], iteration_bounds = array<i64: 1>, scalar_prefetch = 0 : i64, scratch_operands = 4 : i64, tpu.core_type = #tpu.core_type<tc>, window_params = [{transform_indices = @transform_0, window_bounds = array<i64: 2, 28, 28>}, {pipeline_mode = #tpu.pipeline_mode<synchronous>, transform_indices = @transform_1, window_bounds = array<i64: 5, 28, 256>}, {pipeline_mode = #tpu.pipeline_mode<synchronous>, transform_indices = @transform_2, window_bounds = array<i64: 1, 256>}, {pipeline_mode = #tpu.pipeline_mode<synchronous>, transform_indices = @transform_3, window_bounds = array<i64: 5, 128, 256>}, {pipeline_mode = #tpu.pipeline_mode<synchronous>, transform_indices = @transform_4, window_bounds = array<i64: 1, 256>}, {pipeline_mode = #tpu.pipeline_mode<synchronous>, transform_indices = @transform_5, window_bounds = array<i64: 4, 128, 120>}, {pipeline_mode = #tpu.pipeline_mode<synchronous>, transform_indices = @transform_6, window_bounds = array<i64: 1, 120>}, {pipeline_mode = #tpu.pipeline_mode<synchronous>, transform_indices = @transform_7, window_bounds = array<i64: 120, 84>}, {pipeline_mode = #tpu.pipeline_mode<synchronous>, transform_indices = @transform_8, window_bounds = array<i64: 1, 84>}, {pipeline_mode = #tpu.pipeline_mode<synchronous>, transform_indices = @transform_9, window_bounds = array<i64: 84, 10>}, {pipeline_mode = #tpu.pipeline_mode<synchronous>, transform_indices = @transform_10, window_bounds = array<i64: 1, 10>}, {transform_indices = @transform_11, window_bounds = array<i64: 2, 10>}]} {
    %cst = arith.constant 0.000000e+00 : f32
    %0 = vector.broadcast %cst : f32 to vector<24x256xf32>
    %c0 = arith.constant 0 : index
    %c0_0 = arith.constant 0 : index
    %c0_1 = arith.constant 0 : index
    %1 = vector.load %arg1[%c0, %c0_0, %c0_1] : memref<2x28x28xf32, #tpu.memory_space<vmem>>, vector<1x24x28xf32>
    %2 = vector.shape_cast %1 : vector<1x24x28xf32> to vector<24x28xf32>
    %c0_2 = arith.constant 0 : index
    %c0_3 = arith.constant 0 : index
    %c0_4 = arith.constant 0 : index
    %3 = vector.load %arg2[%c0_2, %c0_3, %c0_4] : memref<5x28x256xf32, #tpu.memory_space<vmem>>, vector<1x28x256xf32>
    %4 = vector.shape_cast %3 : vector<1x28x256xf32> to vector<28x256xf32>
    %cst_5 = arith.constant dense<0.000000e+00> : vector<24x256xf32>
    %5 = tpu.matmul %2, %4, %cst_5 {dimension_numbers = #tpu.dot_dimension_numbers<[1], [0], [0], [1], [0, 0, 1, 1], [], []>} : vector<24x28xf32>, vector<28x256xf32>, vector<24x256xf32> -> vector<24x256xf32>
    %6 = arith.addf %0, %5 : vector<24x256xf32>
    %c0_6 = arith.constant 0 : index
    %c1 = arith.constant 1 : index
    %c0_7 = arith.constant 0 : index
    %7 = vector.load %arg1[%c0_6, %c1, %c0_7] : memref<2x28x28xf32, #tpu.memory_space<vmem>>, vector<1x24x28xf32>
    %8 = vector.shape_cast %7 : vector<1x24x28xf32> to vector<24x28xf32>
    %c1_8 = arith.constant 1 : index
    %c0_9 = arith.constant 0 : index
    %c0_10 = arith.constant 0 : index
    %9 = vector.load %arg2[%c1_8, %c0_9, %c0_10] : memref<5x28x256xf32, #tpu.memory_space<vmem>>, vector<1x28x256xf32>
    %10 = vector.shape_cast %9 : vector<1x28x256xf32> to vector<28x256xf32>
    %cst_11 = arith.constant dense<0.000000e+00> : vector<24x256xf32>
    %11 = tpu.matmul %8, %10, %cst_11 {dimension_numbers = #tpu.dot_dimension_numbers<[1], [0], [0], [1], [0, 0, 1, 1], [], []>} : vector<24x28xf32>, vector<28x256xf32>, vector<24x256xf32> -> vector<24x256xf32>
    %12 = arith.addf %6, %11 : vector<24x256xf32>
    %c0_12 = arith.constant 0 : index
    %c2 = arith.constant 2 : index
    %c0_13 = arith.constant 0 : index
    %13 = vector.load %arg1[%c0_12, %c2, %c0_13] : memref<2x28x28xf32, #tpu.memory_space<vmem>>, vector<1x24x28xf32>
    %14 = vector.shape_cast %13 : vector<1x24x28xf32> to vector<24x28xf32>
    %c2_14 = arith.constant 2 : index
    %c0_15 = arith.constant 0 : index
    %c0_16 = arith.constant 0 : index
    %15 = vector.load %arg2[%c2_14, %c0_15, %c0_16] : memref<5x28x256xf32, #tpu.memory_space<vmem>>, vector<1x28x256xf32>
    %16 = vector.shape_cast %15 : vector<1x28x256xf32> to vector<28x256xf32>
    %cst_17 = arith.constant dense<0.000000e+00> : vector<24x256xf32>
    %17 = tpu.matmul %14, %16, %cst_17 {dimension_numbers = #tpu.dot_dimension_numbers<[1], [0], [0], [1], [0, 0, 1, 1], [], []>} : vector<24x28xf32>, vector<28x256xf32>, vector<24x256xf32> -> vector<24x256xf32>
    %18 = arith.addf %12, %17 : vector<24x256xf32>
    %c0_18 = arith.constant 0 : index
    %c3 = arith.constant 3 : index
    %c0_19 = arith.constant 0 : index
    %19 = vector.load %arg1[%c0_18, %c3, %c0_19] : memref<2x28x28xf32, #tpu.memory_space<vmem>>, vector<1x24x28xf32>
    %20 = vector.shape_cast %19 : vector<1x24x28xf32> to vector<24x28xf32>
    %c3_20 = arith.constant 3 : index
    %c0_21 = arith.constant 0 : index
    %c0_22 = arith.constant 0 : index
    %21 = vector.load %arg2[%c3_20, %c0_21, %c0_22] : memref<5x28x256xf32, #tpu.memory_space<vmem>>, vector<1x28x256xf32>
    %22 = vector.shape_cast %21 : vector<1x28x256xf32> to vector<28x256xf32>
    %cst_23 = arith.constant dense<0.000000e+00> : vector<24x256xf32>
    %23 = tpu.matmul %20, %22, %cst_23 {dimension_numbers = #tpu.dot_dimension_numbers<[1], [0], [0], [1], [0, 0, 1, 1], [], []>} : vector<24x28xf32>, vector<28x256xf32>, vector<24x256xf32> -> vector<24x256xf32>
    %24 = arith.addf %18, %23 : vector<24x256xf32>
    %c0_24 = arith.constant 0 : index
    %c4 = arith.constant 4 : index
    %c0_25 = arith.constant 0 : index
    %25 = vector.load %arg1[%c0_24, %c4, %c0_25] : memref<2x28x28xf32, #tpu.memory_space<vmem>>, vector<1x24x28xf32>
    %26 = vector.shape_cast %25 : vector<1x24x28xf32> to vector<24x28xf32>
    %c4_26 = arith.constant 4 : index
    %c0_27 = arith.constant 0 : index
    %c0_28 = arith.constant 0 : index
    %27 = vector.load %arg2[%c4_26, %c0_27, %c0_28] : memref<5x28x256xf32, #tpu.memory_space<vmem>>, vector<1x28x256xf32>
    %28 = vector.shape_cast %27 : vector<1x28x256xf32> to vector<28x256xf32>
    %cst_29 = arith.constant dense<0.000000e+00> : vector<24x256xf32>
    %29 = tpu.matmul %26, %28, %cst_29 {dimension_numbers = #tpu.dot_dimension_numbers<[1], [0], [0], [1], [0, 0, 1, 1], [], []>} : vector<24x28xf32>, vector<28x256xf32>, vector<24x256xf32> -> vector<24x256xf32>
    %30 = arith.addf %24, %29 : vector<24x256xf32>
    %c0_30 = arith.constant 0 : index
    %c0_31 = arith.constant 0 : index
    %31 = vector.load %arg3[%c0_30, %c0_31] : memref<1x256xf32, #tpu.memory_space<vmem>>, vector<1x256xf32>
    %32 = vector.broadcast %31 : vector<1x256xf32> to vector<24x256xf32>
    %33 = arith.addf %30, %32 : vector<24x256xf32>
    %cst_32 = arith.constant 0.000000e+00 : f32
    %34 = vector.broadcast %cst_32 : f32 to vector<24x256xf32>
    %35 = arith.maximumf %33, %34 : vector<24x256xf32>
    %36 = vector.extract_strided_slice %35 {offsets = [0, 0], sizes = [24, 128], strides = [1, 1]} : vector<24x256xf32> to vector<24x128xf32>
    %37 = vector.extract_strided_slice %35 {offsets = [0, 128], sizes = [24, 128], strides = [1, 1]} : vector<24x256xf32> to vector<24x128xf32>
    %38 = arith.maximumf %36, %37 : vector<24x128xf32>
    %c0_33 = arith.constant 0 : index
    %c0_34 = arith.constant 0 : index
    %39 = vector.load %arg13[%c0_33, %c0_34] : memref<24x128xf32, #tpu.memory_space<vmem>>, vector<24x128xf32>
    tpu.vector_store %arg13[%c0_33, %c0_34], %38 {strides = array<i32>} : memref<24x128xf32, #tpu.memory_space<vmem>>, vector<24x128xf32>,
    %c0_35 = arith.constant 0 : index
    %c0_36 = arith.constant 0 : index
    %40 = tpu.strided_load %arg13[%c0_35, %c0_36] {strides = array<i32: 2, 1>} : memref<24x128xf32, #tpu.memory_space<vmem>>, vector<12x128xf32>
    %c1_37 = arith.constant 1 : index
    %c0_38 = arith.constant 0 : index
    %41 = tpu.strided_load %arg13[%c1_37, %c0_38] {strides = array<i32: 2, 1>} : memref<24x128xf32, #tpu.memory_space<vmem>>, vector<12x128xf32>
    %42 = arith.maximumf %40, %41 : vector<12x128xf32>
    %c0_39 = arith.constant 0 : index
    %c0_40 = arith.constant 0 : index
    %43 = vector.load %arg14[%c0_39, %c0_40] : memref<12x128xf32, #tpu.memory_space<vmem>>, vector<12x128xf32>
    tpu.vector_store %arg14[%c0_39, %c0_40], %42 {strides = array<i32>} : memref<12x128xf32, #tpu.memory_space<vmem>>, vector<12x128xf32>,
    %cst_41 = arith.constant 0.000000e+00 : f32
    %44 = vector.broadcast %cst_41 : f32 to vector<8x256xf32>
    %c0_42 = arith.constant 0 : index
    %c0_43 = arith.constant 0 : index
    %45 = vector.load %arg14[%c0_42, %c0_43] : memref<12x128xf32, #tpu.memory_space<vmem>>, vector<8x128xf32>
    %c0_44 = arith.constant 0 : index
    %c0_45 = arith.constant 0 : index
    %c0_46 = arith.constant 0 : index
    %46 = vector.load %arg4[%c0_44, %c0_45, %c0_46] : memref<5x128x256xf32, #tpu.memory_space<vmem>>, vector<1x128x256xf32>
    %47 = vector.shape_cast %46 : vector<1x128x256xf32> to vector<128x256xf32>
    %cst_47 = arith.constant dense<0.000000e+00> : vector<8x256xf32>
    %48 = tpu.matmul %45, %47, %cst_47 {dimension_numbers = #tpu.dot_dimension_numbers<[1], [0], [0], [1], [0, 0, 1, 1], [], []>} : vector<8x128xf32>, vector<128x256xf32>, vector<8x256xf32> -> vector<8x256xf32>
    %49 = arith.addf %44, %48 : vector<8x256xf32>
    %c1_48 = arith.constant 1 : index
    %c0_49 = arith.constant 0 : index
    %50 = vector.load %arg14[%c1_48, %c0_49] : memref<12x128xf32, #tpu.memory_space<vmem>>, vector<8x128xf32>
    %c1_50 = arith.constant 1 : index
    %c0_51 = arith.constant 0 : index
    %c0_52 = arith.constant 0 : index
    %51 = vector.load %arg4[%c1_50, %c0_51, %c0_52] : memref<5x128x256xf32, #tpu.memory_space<vmem>>, vector<1x128x256xf32>
    %52 = vector.shape_cast %51 : vector<1x128x256xf32> to vector<128x256xf32>
    %cst_53 = arith.constant dense<0.000000e+00> : vector<8x256xf32>
    %53 = tpu.matmul %50, %52, %cst_53 {dimension_numbers = #tpu.dot_dimension_numbers<[1], [0], [0], [1], [0, 0, 1, 1], [], []>} : vector<8x128xf32>, vector<128x256xf32>, vector<8x256xf32> -> vector<8x256xf32>
    %54 = arith.addf %49, %53 : vector<8x256xf32>
    %c2_54 = arith.constant 2 : index
    %c0_55 = arith.constant 0 : index
    %55 = vector.load %arg14[%c2_54, %c0_55] : memref<12x128xf32, #tpu.memory_space<vmem>>, vector<8x128xf32>
    %c2_56 = arith.constant 2 : index
    %c0_57 = arith.constant 0 : index
    %c0_58 = arith.constant 0 : index
    %56 = vector.load %arg4[%c2_56, %c0_57, %c0_58] : memref<5x128x256xf32, #tpu.memory_space<vmem>>, vector<1x128x256xf32>
    %57 = vector.shape_cast %56 : vector<1x128x256xf32> to vector<128x256xf32>
    %cst_59 = arith.constant dense<0.000000e+00> : vector<8x256xf32>
    %58 = tpu.matmul %55, %57, %cst_59 {dimension_numbers = #tpu.dot_dimension_numbers<[1], [0], [0], [1], [0, 0, 1, 1], [], []>} : vector<8x128xf32>, vector<128x256xf32>, vector<8x256xf32> -> vector<8x256xf32>
    %59 = arith.addf %54, %58 : vector<8x256xf32>
    %c3_60 = arith.constant 3 : index
    %c0_61 = arith.constant 0 : index
    %60 = vector.load %arg14[%c3_60, %c0_61] : memref<12x128xf32, #tpu.memory_space<vmem>>, vector<8x128xf32>
    %c3_62 = arith.constant 3 : index
    %c0_63 = arith.constant 0 : index
    %c0_64 = arith.constant 0 : index
    %61 = vector.load %arg4[%c3_62, %c0_63, %c0_64] : memref<5x128x256xf32, #tpu.memory_space<vmem>>, vector<1x128x256xf32>
    %62 = vector.shape_cast %61 : vector<1x128x256xf32> to vector<128x256xf32>
    %cst_65 = arith.constant dense<0.000000e+00> : vector<8x256xf32>
    %63 = tpu.matmul %60, %62, %cst_65 {dimension_numbers = #tpu.dot_dimension_numbers<[1], [0], [0], [1], [0, 0, 1, 1], [], []>} : vector<8x128xf32>, vector<128x256xf32>, vector<8x256xf32> -> vector<8x256xf32>
    %64 = arith.addf %59, %63 : vector<8x256xf32>
    %c4_66 = arith.constant 4 : index
    %c0_67 = arith.constant 0 : index
    %65 = vector.load %arg14[%c4_66, %c0_67] : memref<12x128xf32, #tpu.memory_space<vmem>>, vector<8x128xf32>
    %c4_68 = arith.constant 4 : index
    %c0_69 = arith.constant 0 : index
    %c0_70 = arith.constant 0 : index
    %66 = vector.load %arg4[%c4_68, %c0_69, %c0_70] : memref<5x128x256xf32, #tpu.memory_space<vmem>>, vector<1x128x256xf32>
    %67 = vector.shape_cast %66 : vector<1x128x256xf32> to vector<128x256xf32>
    %cst_71 = arith.constant dense<0.000000e+00> : vector<8x256xf32>
    %68 = tpu.matmul %65, %67, %cst_71 {dimension_numbers = #tpu.dot_dimension_numbers<[1], [0], [0], [1], [0, 0, 1, 1], [], []>} : vector<8x128xf32>, vector<128x256xf32>, vector<8x256xf32> -> vector<8x256xf32>
    %69 = arith.addf %64, %68 : vector<8x256xf32>
    %c0_72 = arith.constant 0 : index
    %c0_73 = arith.constant 0 : index
    %70 = vector.load %arg5[%c0_72, %c0_73] : memref<1x256xf32, #tpu.memory_space<vmem>>, vector<1x256xf32>
    %71 = vector.broadcast %70 : vector<1x256xf32> to vector<8x256xf32>
    %72 = arith.addf %69, %71 : vector<8x256xf32>
    %cst_74 = arith.constant 0.000000e+00 : f32
    %73 = vector.broadcast %cst_74 : f32 to vector<8x256xf32>
    %74 = arith.maximumf %72, %73 : vector<8x256xf32>
    %75 = vector.extract_strided_slice %74 {offsets = [0, 0], sizes = [8, 128], strides = [1, 1]} : vector<8x256xf32> to vector<8x128xf32>
    %76 = vector.extract_strided_slice %74 {offsets = [0, 128], sizes = [8, 128], strides = [1, 1]} : vector<8x256xf32> to vector<8x128xf32>
    %77 = arith.maximumf %75, %76 : vector<8x128xf32>
    %c0_75 = arith.constant 0 : index
    %c0_76 = arith.constant 0 : index
    %78 = vector.load %arg15[%c0_75, %c0_76] : memref<8x128xf32, #tpu.memory_space<vmem>>, vector<8x128xf32>
    tpu.vector_store %arg15[%c0_75, %c0_76], %77 {strides = array<i32>} : memref<8x128xf32, #tpu.memory_space<vmem>>, vector<8x128xf32>,
    %c0_77 = arith.constant 0 : index
    %c0_78 = arith.constant 0 : index
    %79 = tpu.strided_load %arg15[%c0_77, %c0_78] {strides = array<i32: 2, 1>} : memref<8x128xf32, #tpu.memory_space<vmem>>, vector<4x128xf32>
    %c1_79 = arith.constant 1 : index
    %c0_80 = arith.constant 0 : index
    %80 = tpu.strided_load %arg15[%c1_79, %c0_80] {strides = array<i32: 2, 1>} : memref<8x128xf32, #tpu.memory_space<vmem>>, vector<4x128xf32>
    %81 = arith.maximumf %79, %80 : vector<4x128xf32>
    %c0_81 = arith.constant 0 : index
    %c0_82 = arith.constant 0 : index
    %82 = vector.load %arg16[%c0_81, %c0_82] : memref<8x128xf32, #tpu.memory_space<vmem>>, vector<4x128xf32>
    tpu.vector_store %arg16[%c0_81, %c0_82], %81 {strides = array<i32>} : memref<8x128xf32, #tpu.memory_space<vmem>>, vector<4x128xf32>,
    %cst_83 = arith.constant 0.000000e+00 : f32
    %83 = vector.broadcast %cst_83 : f32 to vector<24x256xf32>
    %c1_84 = arith.constant 1 : index
    %c0_85 = arith.constant 0 : index
    %c0_86 = arith.constant 0 : index
    %84 = vector.load %arg1[%c1_84, %c0_85, %c0_86] : memref<2x28x28xf32, #tpu.memory_space<vmem>>, vector<1x24x28xf32>
    %85 = vector.shape_cast %84 : vector<1x24x28xf32> to vector<24x28xf32>
    %c0_87 = arith.constant 0 : index
    %c0_88 = arith.constant 0 : index
    %c0_89 = arith.constant 0 : index
    %86 = vector.load %arg2[%c0_87, %c0_88, %c0_89] : memref<5x28x256xf32, #tpu.memory_space<vmem>>, vector<1x28x256xf32>
    %87 = vector.shape_cast %86 : vector<1x28x256xf32> to vector<28x256xf32>
    %cst_90 = arith.constant dense<0.000000e+00> : vector<24x256xf32>
    %88 = tpu.matmul %85, %87, %cst_90 {dimension_numbers = #tpu.dot_dimension_numbers<[1], [0], [0], [1], [0, 0, 1, 1], [], []>} : vector<24x28xf32>, vector<28x256xf32>, vector<24x256xf32> -> vector<24x256xf32>
    %89 = arith.addf %83, %88 : vector<24x256xf32>
    %c1_91 = arith.constant 1 : index
    %c1_92 = arith.constant 1 : index
    %c0_93 = arith.constant 0 : index
    %90 = vector.load %arg1[%c1_91, %c1_92, %c0_93] : memref<2x28x28xf32, #tpu.memory_space<vmem>>, vector<1x24x28xf32>
    %91 = vector.shape_cast %90 : vector<1x24x28xf32> to vector<24x28xf32>
    %c1_94 = arith.constant 1 : index
    %c0_95 = arith.constant 0 : index
    %c0_96 = arith.constant 0 : index
    %92 = vector.load %arg2[%c1_94, %c0_95, %c0_96] : memref<5x28x256xf32, #tpu.memory_space<vmem>>, vector<1x28x256xf32>
    %93 = vector.shape_cast %92 : vector<1x28x256xf32> to vector<28x256xf32>
    %cst_97 = arith.constant dense<0.000000e+00> : vector<24x256xf32>
    %94 = tpu.matmul %91, %93, %cst_97 {dimension_numbers = #tpu.dot_dimension_numbers<[1], [0], [0], [1], [0, 0, 1, 1], [], []>} : vector<24x28xf32>, vector<28x256xf32>, vector<24x256xf32> -> vector<24x256xf32>
    %95 = arith.addf %89, %94 : vector<24x256xf32>
    %c1_98 = arith.constant 1 : index
    %c2_99 = arith.constant 2 : index
    %c0_100 = arith.constant 0 : index
    %96 = vector.load %arg1[%c1_98, %c2_99, %c0_100] : memref<2x28x28xf32, #tpu.memory_space<vmem>>, vector<1x24x28xf32>
    %97 = vector.shape_cast %96 : vector<1x24x28xf32> to vector<24x28xf32>
    %c2_101 = arith.constant 2 : index
    %c0_102 = arith.constant 0 : index
    %c0_103 = arith.constant 0 : index
    %98 = vector.load %arg2[%c2_101, %c0_102, %c0_103] : memref<5x28x256xf32, #tpu.memory_space<vmem>>, vector<1x28x256xf32>
    %99 = vector.shape_cast %98 : vector<1x28x256xf32> to vector<28x256xf32>
    %cst_104 = arith.constant dense<0.000000e+00> : vector<24x256xf32>
    %100 = tpu.matmul %97, %99, %cst_104 {dimension_numbers = #tpu.dot_dimension_numbers<[1], [0], [0], [1], [0, 0, 1, 1], [], []>} : vector<24x28xf32>, vector<28x256xf32>, vector<24x256xf32> -> vector<24x256xf32>
    %101 = arith.addf %95, %100 : vector<24x256xf32>
    %c1_105 = arith.constant 1 : index
    %c3_106 = arith.constant 3 : index
    %c0_107 = arith.constant 0 : index
    %102 = vector.load %arg1[%c1_105, %c3_106, %c0_107] : memref<2x28x28xf32, #tpu.memory_space<vmem>>, vector<1x24x28xf32>
    %103 = vector.shape_cast %102 : vector<1x24x28xf32> to vector<24x28xf32>
    %c3_108 = arith.constant 3 : index
    %c0_109 = arith.constant 0 : index
    %c0_110 = arith.constant 0 : index
    %104 = vector.load %arg2[%c3_108, %c0_109, %c0_110] : memref<5x28x256xf32, #tpu.memory_space<vmem>>, vector<1x28x256xf32>
    %105 = vector.shape_cast %104 : vector<1x28x256xf32> to vector<28x256xf32>
    %cst_111 = arith.constant dense<0.000000e+00> : vector<24x256xf32>
    %106 = tpu.matmul %103, %105, %cst_111 {dimension_numbers = #tpu.dot_dimension_numbers<[1], [0], [0], [1], [0, 0, 1, 1], [], []>} : vector<24x28xf32>, vector<28x256xf32>, vector<24x256xf32> -> vector<24x256xf32>
    %107 = arith.addf %101, %106 : vector<24x256xf32>
    %c1_112 = arith.constant 1 : index
    %c4_113 = arith.constant 4 : index
    %c0_114 = arith.constant 0 : index
    %108 = vector.load %arg1[%c1_112, %c4_113, %c0_114] : memref<2x28x28xf32, #tpu.memory_space<vmem>>, vector<1x24x28xf32>
    %109 = vector.shape_cast %108 : vector<1x24x28xf32> to vector<24x28xf32>
    %c4_115 = arith.constant 4 : index
    %c0_116 = arith.constant 0 : index
    %c0_117 = arith.constant 0 : index
    %110 = vector.load %arg2[%c4_115, %c0_116, %c0_117] : memref<5x28x256xf32, #tpu.memory_space<vmem>>, vector<1x28x256xf32>
    %111 = vector.shape_cast %110 : vector<1x28x256xf32> to vector<28x256xf32>
    %cst_118 = arith.constant dense<0.000000e+00> : vector<24x256xf32>
    %112 = tpu.matmul %109, %111, %cst_118 {dimension_numbers = #tpu.dot_dimension_numbers<[1], [0], [0], [1], [0, 0, 1, 1], [], []>} : vector<24x28xf32>, vector<28x256xf32>, vector<24x256xf32> -> vector<24x256xf32>
    %113 = arith.addf %107, %112 : vector<24x256xf32>
    %c0_119 = arith.constant 0 : index
    %c0_120 = arith.constant 0 : index
    %114 = vector.load %arg3[%c0_119, %c0_120] : memref<1x256xf32, #tpu.memory_space<vmem>>, vector<1x256xf32>
    %115 = vector.broadcast %114 : vector<1x256xf32> to vector<24x256xf32>
    %116 = arith.addf %113, %115 : vector<24x256xf32>
    %cst_121 = arith.constant 0.000000e+00 : f32
    %117 = vector.broadcast %cst_121 : f32 to vector<24x256xf32>
    %118 = arith.maximumf %116, %117 : vector<24x256xf32>
    %119 = vector.extract_strided_slice %118 {offsets = [0, 0], sizes = [24, 128], strides = [1, 1]} : vector<24x256xf32> to vector<24x128xf32>
    %120 = vector.extract_strided_slice %118 {offsets = [0, 128], sizes = [24, 128], strides = [1, 1]} : vector<24x256xf32> to vector<24x128xf32>
    %121 = arith.maximumf %119, %120 : vector<24x128xf32>
    %c0_122 = arith.constant 0 : index
    %c0_123 = arith.constant 0 : index
    %122 = vector.load %arg13[%c0_122, %c0_123] : memref<24x128xf32, #tpu.memory_space<vmem>>, vector<24x128xf32>
    tpu.vector_store %arg13[%c0_122, %c0_123], %121 {strides = array<i32>} : memref<24x128xf32, #tpu.memory_space<vmem>>, vector<24x128xf32>,
    %c0_124 = arith.constant 0 : index
    %c0_125 = arith.constant 0 : index
    %123 = tpu.strided_load %arg13[%c0_124, %c0_125] {strides = array<i32: 2, 1>} : memref<24x128xf32, #tpu.memory_space<vmem>>, vector<12x128xf32>
    %c1_126 = arith.constant 1 : index
    %c0_127 = arith.constant 0 : index
    %124 = tpu.strided_load %arg13[%c1_126, %c0_127] {strides = array<i32: 2, 1>} : memref<24x128xf32, #tpu.memory_space<vmem>>, vector<12x128xf32>
    %125 = arith.maximumf %123, %124 : vector<12x128xf32>
    %c0_128 = arith.constant 0 : index
    %c0_129 = arith.constant 0 : index
    %126 = vector.load %arg14[%c0_128, %c0_129] : memref<12x128xf32, #tpu.memory_space<vmem>>, vector<12x128xf32>
    tpu.vector_store %arg14[%c0_128, %c0_129], %125 {strides = array<i32>} : memref<12x128xf32, #tpu.memory_space<vmem>>, vector<12x128xf32>,
    %cst_130 = arith.constant 0.000000e+00 : f32
    %127 = vector.broadcast %cst_130 : f32 to vector<8x256xf32>
    %c0_131 = arith.constant 0 : index
    %c0_132 = arith.constant 0 : index
    %128 = vector.load %arg14[%c0_131, %c0_132] : memref<12x128xf32, #tpu.memory_space<vmem>>, vector<8x128xf32>
    %c0_133 = arith.constant 0 : index
    %c0_134 = arith.constant 0 : index
    %c0_135 = arith.constant 0 : index
    %129 = vector.load %arg4[%c0_133, %c0_134, %c0_135] : memref<5x128x256xf32, #tpu.memory_space<vmem>>, vector<1x128x256xf32>
    %130 = vector.shape_cast %129 : vector<1x128x256xf32> to vector<128x256xf32>
    %cst_136 = arith.constant dense<0.000000e+00> : vector<8x256xf32>
    %131 = tpu.matmul %128, %130, %cst_136 {dimension_numbers = #tpu.dot_dimension_numbers<[1], [0], [0], [1], [0, 0, 1, 1], [], []>} : vector<8x128xf32>, vector<128x256xf32>, vector<8x256xf32> -> vector<8x256xf32>
    %132 = arith.addf %127, %131 : vector<8x256xf32>
    %c1_137 = arith.constant 1 : index
    %c0_138 = arith.constant 0 : index
    %133 = vector.load %arg14[%c1_137, %c0_138] : memref<12x128xf32, #tpu.memory_space<vmem>>, vector<8x128xf32>
    %c1_139 = arith.constant 1 : index
    %c0_140 = arith.constant 0 : index
    %c0_141 = arith.constant 0 : index
    %134 = vector.load %arg4[%c1_139, %c0_140, %c0_141] : memref<5x128x256xf32, #tpu.memory_space<vmem>>, vector<1x128x256xf32>
    %135 = vector.shape_cast %134 : vector<1x128x256xf32> to vector<128x256xf32>
    %cst_142 = arith.constant dense<0.000000e+00> : vector<8x256xf32>
    %136 = tpu.matmul %133, %135, %cst_142 {dimension_numbers = #tpu.dot_dimension_numbers<[1], [0], [0], [1], [0, 0, 1, 1], [], []>} : vector<8x128xf32>, vector<128x256xf32>, vector<8x256xf32> -> vector<8x256xf32>
    %137 = arith.addf %132, %136 : vector<8x256xf32>
    %c2_143 = arith.constant 2 : index
    %c0_144 = arith.constant 0 : index
    %138 = vector.load %arg14[%c2_143, %c0_144] : memref<12x128xf32, #tpu.memory_space<vmem>>, vector<8x128xf32>
    %c2_145 = arith.constant 2 : index
    %c0_146 = arith.constant 0 : index
    %c0_147 = arith.constant 0 : index
    %139 = vector.load %arg4[%c2_145, %c0_146, %c0_147] : memref<5x128x256xf32, #tpu.memory_space<vmem>>, vector<1x128x256xf32>
    %140 = vector.shape_cast %139 : vector<1x128x256xf32> to vector<128x256xf32>
    %cst_148 = arith.constant dense<0.000000e+00> : vector<8x256xf32>
    %141 = tpu.matmul %138, %140, %cst_148 {dimension_numbers = #tpu.dot_dimension_numbers<[1], [0], [0], [1], [0, 0, 1, 1], [], []>} : vector<8x128xf32>, vector<128x256xf32>, vector<8x256xf32> -> vector<8x256xf32>
    %142 = arith.addf %137, %141 : vector<8x256xf32>
    %c3_149 = arith.constant 3 : index
    %c0_150 = arith.constant 0 : index
    %143 = vector.load %arg14[%c3_149, %c0_150] : memref<12x128xf32, #tpu.memory_space<vmem>>, vector<8x128xf32>
    %c3_151 = arith.constant 3 : index
    %c0_152 = arith.constant 0 : index
    %c0_153 = arith.constant 0 : index
    %144 = vector.load %arg4[%c3_151, %c0_152, %c0_153] : memref<5x128x256xf32, #tpu.memory_space<vmem>>, vector<1x128x256xf32>
    %145 = vector.shape_cast %144 : vector<1x128x256xf32> to vector<128x256xf32>
    %cst_154 = arith.constant dense<0.000000e+00> : vector<8x256xf32>
    %146 = tpu.matmul %143, %145, %cst_154 {dimension_numbers = #tpu.dot_dimension_numbers<[1], [0], [0], [1], [0, 0, 1, 1], [], []>} : vector<8x128xf32>, vector<128x256xf32>, vector<8x256xf32> -> vector<8x256xf32>
    %147 = arith.addf %142, %146 : vector<8x256xf32>
    %c4_155 = arith.constant 4 : index
    %c0_156 = arith.constant 0 : index
    %148 = vector.load %arg14[%c4_155, %c0_156] : memref<12x128xf32, #tpu.memory_space<vmem>>, vector<8x128xf32>
    %c4_157 = arith.constant 4 : index
    %c0_158 = arith.constant 0 : index
    %c0_159 = arith.constant 0 : index
    %149 = vector.load %arg4[%c4_157, %c0_158, %c0_159] : memref<5x128x256xf32, #tpu.memory_space<vmem>>, vector<1x128x256xf32>
    %150 = vector.shape_cast %149 : vector<1x128x256xf32> to vector<128x256xf32>
    %cst_160 = arith.constant dense<0.000000e+00> : vector<8x256xf32>
    %151 = tpu.matmul %148, %150, %cst_160 {dimension_numbers = #tpu.dot_dimension_numbers<[1], [0], [0], [1], [0, 0, 1, 1], [], []>} : vector<8x128xf32>, vector<128x256xf32>, vector<8x256xf32> -> vector<8x256xf32>
    %152 = arith.addf %147, %151 : vector<8x256xf32>
    %c0_161 = arith.constant 0 : index
    %c0_162 = arith.constant 0 : index
    %153 = vector.load %arg5[%c0_161, %c0_162] : memref<1x256xf32, #tpu.memory_space<vmem>>, vector<1x256xf32>
    %154 = vector.broadcast %153 : vector<1x256xf32> to vector<8x256xf32>
    %155 = arith.addf %152, %154 : vector<8x256xf32>
    %cst_163 = arith.constant 0.000000e+00 : f32
    %156 = vector.broadcast %cst_163 : f32 to vector<8x256xf32>
    %157 = arith.maximumf %155, %156 : vector<8x256xf32>
    %158 = vector.extract_strided_slice %157 {offsets = [0, 0], sizes = [8, 128], strides = [1, 1]} : vector<8x256xf32> to vector<8x128xf32>
    %159 = vector.extract_strided_slice %157 {offsets = [0, 128], sizes = [8, 128], strides = [1, 1]} : vector<8x256xf32> to vector<8x128xf32>
    %160 = arith.maximumf %158, %159 : vector<8x128xf32>
    %c0_164 = arith.constant 0 : index
    %c0_165 = arith.constant 0 : index
    %161 = vector.load %arg15[%c0_164, %c0_165] : memref<8x128xf32, #tpu.memory_space<vmem>>, vector<8x128xf32>
    tpu.vector_store %arg15[%c0_164, %c0_165], %160 {strides = array<i32>} : memref<8x128xf32, #tpu.memory_space<vmem>>, vector<8x128xf32>,
    %c0_166 = arith.constant 0 : index
    %c0_167 = arith.constant 0 : index
    %162 = tpu.strided_load %arg15[%c0_166, %c0_167] {strides = array<i32: 2, 1>} : memref<8x128xf32, #tpu.memory_space<vmem>>, vector<4x128xf32>
    %c1_168 = arith.constant 1 : index
    %c0_169 = arith.constant 0 : index
    %163 = tpu.strided_load %arg15[%c1_168, %c0_169] {strides = array<i32: 2, 1>} : memref<8x128xf32, #tpu.memory_space<vmem>>, vector<4x128xf32>
    %164 = arith.maximumf %162, %163 : vector<4x128xf32>
    %c4_170 = arith.constant 4 : index
    %c0_171 = arith.constant 0 : index
    %165 = vector.load %arg16[%c4_170, %c0_171] : memref<8x128xf32, #tpu.memory_space<vmem>>, vector<4x128xf32>
    tpu.vector_store %arg16[%c4_170, %c0_171], %164 {strides = array<i32>} : memref<8x128xf32, #tpu.memory_space<vmem>>, vector<4x128xf32>,
    %cst_172 = arith.constant 0.000000e+00 : f32
    %166 = vector.broadcast %cst_172 : f32 to vector<2x120xf32>
    %c0_173 = arith.constant 0 : index
    %c0_174 = arith.constant 0 : index
    %167 = tpu.strided_load %arg16[%c0_173, %c0_174] {strides = array<i32: 4, 1>} : memref<8x128xf32, #tpu.memory_space<vmem>>, vector<2x128xf32>
    %c0_175 = arith.constant 0 : index
    %c0_176 = arith.constant 0 : index
    %c0_177 = arith.constant 0 : index
    %168 = vector.load %arg6[%c0_175, %c0_176, %c0_177] : memref<4x128x120xf32, #tpu.memory_space<vmem>>, vector<1x128x120xf32>
    %169 = vector.shape_cast %168 : vector<1x128x120xf32> to vector<128x120xf32>
    %cst_178 = arith.constant dense<0.000000e+00> : vector<2x120xf32>
    %170 = tpu.matmul %167, %169, %cst_178 {dimension_numbers = #tpu.dot_dimension_numbers<[1], [0], [0], [1], [0, 0, 1, 1], [], []>} : vector<2x128xf32>, vector<128x120xf32>, vector<2x120xf32> -> vector<2x120xf32>
    %171 = arith.addf %166, %170 : vector<2x120xf32>
    %c1_179 = arith.constant 1 : index
    %c0_180 = arith.constant 0 : index
    %172 = tpu.strided_load %arg16[%c1_179, %c0_180] {strides = array<i32: 4, 1>} : memref<8x128xf32, #tpu.memory_space<vmem>>, vector<2x128xf32>
    %c1_181 = arith.constant 1 : index
    %c0_182 = arith.constant 0 : index
    %c0_183 = arith.constant 0 : index
    %173 = vector.load %arg6[%c1_181, %c0_182, %c0_183] : memref<4x128x120xf32, #tpu.memory_space<vmem>>, vector<1x128x120xf32>
    %174 = vector.shape_cast %173 : vector<1x128x120xf32> to vector<128x120xf32>
    %cst_184 = arith.constant dense<0.000000e+00> : vector<2x120xf32>
    %175 = tpu.matmul %172, %174, %cst_184 {dimension_numbers = #tpu.dot_dimension_numbers<[1], [0], [0], [1], [0, 0, 1, 1], [], []>} : vector<2x128xf32>, vector<128x120xf32>, vector<2x120xf32> -> vector<2x120xf32>
    %176 = arith.addf %171, %175 : vector<2x120xf32>
    %c2_185 = arith.constant 2 : index
    %c0_186 = arith.constant 0 : index
    %177 = tpu.strided_load %arg16[%c2_185, %c0_186] {strides = array<i32: 4, 1>} : memref<8x128xf32, #tpu.memory_space<vmem>>, vector<2x128xf32>
    %c2_187 = arith.constant 2 : index
    %c0_188 = arith.constant 0 : index
    %c0_189 = arith.constant 0 : index
    %178 = vector.load %arg6[%c2_187, %c0_188, %c0_189] : memref<4x128x120xf32, #tpu.memory_space<vmem>>, vector<1x128x120xf32>
    %179 = vector.shape_cast %178 : vector<1x128x120xf32> to vector<128x120xf32>
    %cst_190 = arith.constant dense<0.000000e+00> : vector<2x120xf32>
    %180 = tpu.matmul %177, %179, %cst_190 {dimension_numbers = #tpu.dot_dimension_numbers<[1], [0], [0], [1], [0, 0, 1, 1], [], []>} : vector<2x128xf32>, vector<128x120xf32>, vector<2x120xf32> -> vector<2x120xf32>
    %181 = arith.addf %176, %180 : vector<2x120xf32>
    %c3_191 = arith.constant 3 : index
    %c0_192 = arith.constant 0 : index
    %182 = tpu.strided_load %arg16[%c3_191, %c0_192] {strides = array<i32: 4, 1>} : memref<8x128xf32, #tpu.memory_space<vmem>>, vector<2x128xf32>
    %c3_193 = arith.constant 3 : index
    %c0_194 = arith.constant 0 : index
    %c0_195 = arith.constant 0 : index
    %183 = vector.load %arg6[%c3_193, %c0_194, %c0_195] : memref<4x128x120xf32, #tpu.memory_space<vmem>>, vector<1x128x120xf32>
    %184 = vector.shape_cast %183 : vector<1x128x120xf32> to vector<128x120xf32>
    %cst_196 = arith.constant dense<0.000000e+00> : vector<2x120xf32>
    %185 = tpu.matmul %182, %184, %cst_196 {dimension_numbers = #tpu.dot_dimension_numbers<[1], [0], [0], [1], [0, 0, 1, 1], [], []>} : vector<2x128xf32>, vector<128x120xf32>, vector<2x120xf32> -> vector<2x120xf32>
    %186 = arith.addf %181, %185 : vector<2x120xf32>
    %c0_197 = arith.constant 0 : index
    %c0_198 = arith.constant 0 : index
    %187 = vector.load %arg7[%c0_197, %c0_198] : memref<1x120xf32, #tpu.memory_space<vmem>>, vector<1x120xf32>
    %188 = vector.broadcast %187 : vector<1x120xf32> to vector<2x120xf32>
    %189 = arith.addf %186, %188 : vector<2x120xf32>
    %cst_199 = arith.constant 0.000000e+00 : f32
    %190 = vector.broadcast %cst_199 : f32 to vector<2x120xf32>
    %191 = arith.maximumf %189, %190 : vector<2x120xf32>
    %c0_200 = arith.constant 0 : index
    %c0_201 = arith.constant 0 : index
    %192 = vector.load %arg8[%c0_200, %c0_201] : memref<120x84xf32, #tpu.memory_space<vmem>>, vector<120x84xf32>
    %cst_202 = arith.constant dense<0.000000e+00> : vector<2x84xf32>
    %193 = tpu.matmul %191, %192, %cst_202 {dimension_numbers = #tpu.dot_dimension_numbers<[1], [0], [0], [1], [0, 0, 1, 1], [], []>} : vector<2x120xf32>, vector<120x84xf32>, vector<2x84xf32> -> vector<2x84xf32>
    %c0_203 = arith.constant 0 : index
    %c0_204 = arith.constant 0 : index
    %194 = vector.load %arg9[%c0_203, %c0_204] : memref<1x84xf32, #tpu.memory_space<vmem>>, vector<1x84xf32>
    %195 = vector.broadcast %194 : vector<1x84xf32> to vector<2x84xf32>
    %196 = arith.addf %193, %195 : vector<2x84xf32>
    %cst_205 = arith.constant 0.000000e+00 : f32
    %197 = vector.broadcast %cst_205 : f32 to vector<2x84xf32>
    %198 = arith.maximumf %196, %197 : vector<2x84xf32>
    %c0_206 = arith.constant 0 : index
    %c0_207 = arith.constant 0 : index
    %199 = vector.load %arg10[%c0_206, %c0_207] : memref<84x10xf32, #tpu.memory_space<vmem>>, vector<84x10xf32>
    %cst_208 = arith.constant dense<0.000000e+00> : vector<2x10xf32>
    %200 = tpu.matmul %198, %199, %cst_208 {dimension_numbers = #tpu.dot_dimension_numbers<[1], [0], [0], [1], [0, 0, 1, 1], [], []>} : vector<2x84xf32>, vector<84x10xf32>, vector<2x10xf32> -> vector<2x10xf32>
    %c0_209 = arith.constant 0 : index
    %c0_210 = arith.constant 0 : index
    %201 = vector.load %arg11[%c0_209, %c0_210] : memref<1x10xf32, #tpu.memory_space<vmem>>, vector<1x10xf32>
    %202 = vector.broadcast %201 : vector<1x10xf32> to vector<2x10xf32>
    %203 = arith.addf %200, %202 : vector<2x10xf32>
    %c0_211 = arith.constant 0 : index
    %c0_212 = arith.constant 0 : index
    %204 = vector.load %arg12[%c0_211, %c0_212] : memref<2x10xf32, #tpu.memory_space<vmem>>, vector<2x10xf32>
    tpu.vector_store %arg12[%c0_211, %c0_212], %203 {strides = array<i32>} : memref<2x10xf32, #tpu.memory_space<vmem>>, vector<2x10xf32>,
    return
  }
  func.func @transform_0(%arg0: i32) -> (i32, i32, i32) {
    %c0_i32 = arith.constant 0 : i32
    %c0_i32_0 = arith.constant 0 : i32
    %c0_i32_1 = arith.constant 0 : i32
    return %arg0, %c0_i32, %c0_i32_0 : i32, i32, i32
  }
  func.func @transform_1(%arg0: i32) -> (i32, i32, i32) {
    %c0_i32 = arith.constant 0 : i32
    %c0_i32_0 = arith.constant 0 : i32
    %c0_i32_1 = arith.constant 0 : i32
    %c0_i32_2 = arith.constant 0 : i32
    return %c0_i32, %c0_i32_0, %c0_i32_1 : i32, i32, i32
  }
  func.func @transform_2(%arg0: i32) -> (i32, i32) {
    %c0_i32 = arith.constant 0 : i32
    %c0_i32_0 = arith.constant 0 : i32
    %c0_i32_1 = arith.constant 0 : i32
    return %c0_i32, %c0_i32_0 : i32, i32
  }
  func.func @transform_3(%arg0: i32) -> (i32, i32, i32) {
    %c0_i32 = arith.constant 0 : i32
    %c0_i32_0 = arith.constant 0 : i32
    %c0_i32_1 = arith.constant 0 : i32
    %c0_i32_2 = arith.constant 0 : i32
    return %c0_i32, %c0_i32_0, %c0_i32_1 : i32, i32, i32
  }
  func.func @transform_4(%arg0: i32) -> (i32, i32) {
    %c0_i32 = arith.constant 0 : i32
    %c0_i32_0 = arith.constant 0 : i32
    %c0_i32_1 = arith.constant 0 : i32
    return %c0_i32, %c0_i32_0 : i32, i32
  }
  func.func @transform_5(%arg0: i32) -> (i32, i32, i32) {
    %c0_i32 = arith.constant 0 : i32
    %c0_i32_0 = arith.constant 0 : i32
    %c0_i32_1 = arith.constant 0 : i32
    %c0_i32_2 = arith.constant 0 : i32
    return %c0_i32, %c0_i32_0, %c0_i32_1 : i32, i32, i32
  }
  func.func @transform_6(%arg0: i32) -> (i32, i32) {
    %c0_i32 = arith.constant 0 : i32
    %c0_i32_0 = arith.constant 0 : i32
    %c0_i32_1 = arith.constant 0 : i32
    return %c0_i32, %c0_i32_0 : i32, i32
  }
  func.func @transform_7(%arg0: i32) -> (i32, i32) {
    %c0_i32 = arith.constant 0 : i32
    %c0_i32_0 = arith.constant 0 : i32
    %c0_i32_1 = arith.constant 0 : i32
    return %c0_i32, %c0_i32_0 : i32, i32
  }
  func.func @transform_8(%arg0: i32) -> (i32, i32) {
    %c0_i32 = arith.constant 0 : i32
    %c0_i32_0 = arith.constant 0 : i32
    %c0_i32_1 = arith.constant 0 : i32
    return %c0_i32, %c0_i32_0 : i32, i32
  }
  func.func @transform_9(%arg0: i32) -> (i32, i32) {
    %c0_i32 = arith.constant 0 : i32
    %c0_i32_0 = arith.constant 0 : i32
    %c0_i32_1 = arith.constant 0 : i32
    return %c0_i32, %c0_i32_0 : i32, i32
  }
  func.func @transform_10(%arg0: i32) -> (i32, i32) {
    %c0_i32 = arith.constant 0 : i32
    %c0_i32_0 = arith.constant 0 : i32
    %c0_i32_1 = arith.constant 0 : i32
    return %c0_i32, %c0_i32_0 : i32, i32
  }
  func.func @transform_11(%arg0: i32) -> (i32, i32) {
    %c0_i32 = arith.constant 0 : i32
    %c0_i32_0 = arith.constant 0 : i32
    return %arg0, %c0_i32 : i32, i32
  }
}

</mosaic_0001>

<bundles_post_ra>
// kernel: lenet_forward.1
= control target key start
LH: loop header
LB: loop body
LE: loop exit
PB: predicated region body
PF: predicated region fallthrough
CT: control target
= control target key end

     0   :  { %16 = vsyncpa [#allocation7], 0  ;;  %s5304_s0 = inlined_call_operand.vmem [shape: f32[2,28,28], index: 0, kind: input, shape index: {}]   ;;  %s5305_s1 = inlined_call_operand.hbm [shape: f32[5,28,256], index: 1, kind: input, shape index: {}]   ;;  %s5306_s2 = inlined_call_operand.vmem [shape: f32[1,256], index: 2, kind: input, shape index: {}]   ;;  %s5307_s3 = inlined_call_operand.vmem [shape: f32[5,128,256], index: 3, kind: input, shape index: {}]   ;;  %s5308_s4 = inlined_call_operand.vmem [shape: f32[1,256], index: 4, kind: input, shape index: {}]   ;;  %s5309_s5 = inlined_call_operand.vmem [shape: f32[4,128,120], index: 5, kind: input, shape index: {}]   ;;  %s5310_s6 = inlined_call_operand.vmem [shape: f32[1,120], index: 6, kind: input, shape index: {}]   ;;  %s5311_s7 = inlined_call_operand.vmem [shape: f32[120,84], index: 7, kind: input, shape index: {}]   ;;  %s5312_s8 = inlined_call_operand.vmem [shape: f32[1,84], index: 8, kind: input, shape index: {}]   ;;  %s5313_s9 = inlined_call_operand.vmem [shape: f32[84,10], index: 9, kind: input, shape index: {}]   ;;  %s5314_s10 = inlined_call_operand.vmem [shape: f32[1,10], index: 10, kind: input, shape index: {}]   ;;  %s5315_s11 = inlined_call_operand.hbm [shape: f32[2,10], index: 11, kind: output, shape index: {}]  }
   0x1   :  { %17 = vsyncpa [#allocation8], 0  ;;  %s3659_s17 = smov [#allocation6]  }
   0x2   :  { %s25_s18 = sshll.u32 %s3659_s17, 4  ;;  %s26_s18 = int_to_ptr.vmem [resolvable:$true] %s25_s18 }
   0x3   :  { %s3623_s19 = scalar_lea.vmem %s26_s18, 5120  ;;  %p3628_p1 = scmp.lt.s32.totalorder %s26_s18, %s26_s18 }
   0x4   :  { %p3624_p0 = scmp.ne.s32.totalorder %s26_s18, %s3623_s19  ;;  %p3629_p2 = scmp.lt.s32.totalorder %s3623_s19, %s3623_s19 }
   0x6   :  { %p3630_p3 = por %p3629_p2, %p3628_p1 }
   0x8   :  { %p3631_p4 = pnand %p3630_p3, %p3624_p0 }
   0xa   :  { %3634 = shalt.err (!%p3631_p4)
}
   0xb   :  { %s3660_s20 = smov 256   ;;  %s3661_s21 = smov 16  }
   0xc   :  { %31 = dma.hbm_to_vmem [thread:$0]  %s5305_s1, 5120, %s26_s18, [#allocation7], %s3660_s20, %s3660_s20, %s3661_s21  }
   0xd   :  { %3655 = dma.done.wait [#allocation7], 5120  }
   0xe   :  { %3656 = vsyncadd [#allocation7], 4294962176  ;;  %v3662_v0 = vmov 0.0   ;;  %vm86_vm0 = vcmask 1043456   ;;  %v75_v1 = vld [vmem:[#allocation6 + $0x78] sm:$0xf] }
   0xf   :  { %157 = vmatprep.mubr.f32.mxu1 %v3662_v0  ;;  %365 = vmatprep.mubr.f32.mxu0 %v3662_v0  ;;  %v74_v2 = vld [vmem:[#allocation6 + $0x70] sm:$0xf]  ;;  %v3730_v3 = vld [vmem:[#allocation6 + $0x68] sm:$0xff]  ;;  %v3733_v4 = vld [vmem:[#allocation6 + $0x60] sm:$0xff]  ;;  %vm76_vm1 = vcmask 228352   ;;  %vm3663_vm2 = vmmov 0  }
  0x10   :  { %2940 = vmatprep.subr.msk.mxu1 %vm86_vm0, %v75_v1  ;;  %v3736_v5 = vld [vmem:[#allocation6 + $0x58] sm:$0xff]  ;;  %v3739_v6 = vld [vmem:[#allocation6 + $0x50] sm:$0xff]  ;;  %v3742_v7 = vld [vmem:[#allocation6 + $0x48] sm:$0xff]  ;;  %vm2753_vm3 = vcmask 982016   ;;  %vm2846_vm4 = vcmask 687104   ;;  %s3664_s20 = smov [#allocation9]  }
  0x11   :  { %2941 = vmatpush1.msk.msra.mxu1 %vm86_vm0, %v74_v2  ;;  %v285_v8 = vld [vmem:[#allocation6 + $0xb8] sm:$0xf]  ;;  %v3745_v9 = vld [vmem:[#allocation6 + $0x40] sm:$0xff]  ;;  %v284_v10 = vld [vmem:[#allocation6 + $0xb0] sm:$0xf]  ;;  %s2931_s21 = sshll.u32 %s3664_s20, 4  ;;  %s2932_s21 = int_to_ptr.vmem [resolvable:$true] %s2931_s21 }
  0x12   :  { %119 = vmatprep.subr.mxu1 %v3730_v3  ;;  %2950 = vmatprep.subr.msk.mxu0 %vm86_vm0, %v285_v8  ;;  %v283_v11 = vld [vmem:[#allocation6 + $0xa8] sm:$0xff]  ;;  %v63_v13 = vld [vmem:[#allocation6 + $0x38] sm:$0xf]  ;;  %v282_v14 = vld [vmem:[#allocation6 + $0xa0] sm:$0xff]  ;;  %vm2923_vm5 = vcmask 74752   ;;  %p3640_p6 = scmp.lt.s32.totalorder %s2932_s21, %s2932_s21 }
  0x13   :  { %120 = vmatpush1.msra.mxu1 %v3733_v4  ;;  %v64_v12 = vld [vmem:[%s5304_s0 + $0x1] sm:$0xff]  ;;  %2951 = vmatpush1.msk.msra.mxu0 %vm86_vm0, %v284_v10  ;;  %v281_v17 = vld [vmem:[#allocation6 + $0x98] sm:$0xff]  ;;  %v60_v18 = vld [vmem:[#allocation6 + $0x20] sm:$0xff] }
  0x14   :  { %121 = vmatprep.subr.mxu1 %v3736_v5  ;;  %v62_v15 = vld [vmem:[#allocation6 + $0x30] sm:$0xf]  ;;  %327 = vmatprep.subr.mxu0 %v283_v11  ;;  %v61_v16 = vld [vmem:[#allocation6 + $0x28] sm:$0xff]  ;;  %v59_v21 = vld [vmem:[#allocation6 + $0x18] sm:$0xff] }
  0x15   :  { %122 = vmatpush1.msra.mxu1 %v3739_v6  ;;  %328 = vmatpush1.msra.mxu0 %v282_v14  ;;  %v280_v19 = vld [vmem:[#allocation6 + $0x90] sm:$0xff]  ;;  %v57_v23 = vld [vmem:[#allocation6 + $0x8] sm:$0xff]  ;;  %v56_v25 = vld [vmem:[#allocation6] sm:$0xff] }
  0x16   :  { %123 = vmatprep.subr.mxu1 %v3742_v7  ;;  %v65_v20 = vld [vmem:[%s5304_s0 + $0x9] sm:$0xff]  ;;  %329 = vmatprep.subr.mxu0 %v281_v17  ;;  %v279_v24 = vld [vmem:[#allocation6 + $0x88] sm:$0xff]  ;;  %v278_v26 = vld [vmem:[#allocation6 + $0x80] sm:$0xff] }
  0x17   :  { %124 = vmatpush1.msra.mxu1 %v3745_v9  ;;  %v58_v22 = vld [vmem:[#allocation6 + $0x10] sm:$0xff]  ;;  %330 = vmatpush1.msra.mxu0 %v280_v19  ;;  %v66_v27 = vld [vmem:[%s5304_s0 + $0x11] sm:$0xff]  ;;  %v53_v32 = vld [vmem:[%s5304_s0] sm:$0xff] }
  0x18   :  { %2942 = vmatmul.mubr.msk.f32.vlgmr.msra.gmra.mxu1 %vm76_vm1, %v64_v12  ;;  %2945 = vmatprep.subr.msk.mxu1 %vm86_vm0, %v63_v13  ;;  %v274_v28 = vld [vmem:[%s5304_s0 + $0x2] sm:$0xff]  ;;  %v401_v29 = vld [vmem:[#allocation6 + $0xf8] sm:$0xf]  ;;  %v398_v37 = vld [vmem:[#allocation6 + $0xe0] sm:$0xff] }
  0x19   :  { %2946 = vmatpush1.msk.msra.mxu1 %vm86_vm0, %v62_v15  ;;  %163 = vmatprep.mubr.f32.mxu1 %v3662_v0  ;;  %v517_v30 = vld [vmem:[#allocation6 + $0x138] sm:$0xf]  ;;  %v516_v31 = vld [vmem:[#allocation6 + $0x130] sm:$0xf]  ;;  %v399_v35 = vld [vmem:[#allocation6 + $0xe8] sm:$0xff] }
  0x1a   :  { %217 = vmatprep.subr.mxu1 %v61_v16  ;;  %331 = vmatprep.subr.mxu0 %v279_v24  ;;  %v275_v33 = vld [vmem:[%s5304_s0 + $0xa] sm:$0xff]  ;;  %v515_v36 = vld [vmem:[#allocation6 + $0x128] sm:$0xff]  ;;  %v514_v38 = vld [vmem:[#allocation6 + $0x120] sm:$0xff] }
  0x1b   :  { %218 = vmatpush1.msra.mxu1 %v60_v18  ;;  %332 = vmatpush1.msra.mxu0 %v278_v26  ;;  %v400_v34 = vld [vmem:[#allocation6 + $0xf0] sm:$0xf]  ;;  %v397_v40 = vld [vmem:[#allocation6 + $0xd8] sm:$0xff]  ;;  %v395_v44 = vld [vmem:[#allocation6 + $0xc8] sm:$0xff] }
  0x1c   :  { %2943 = vmatmul.mubr.msk.f32.gmra.mxu1 %vm76_vm1, %v65_v20  ;;  %219 = vmatprep.subr.mxu1 %v59_v21  ;;  %v54_v39 = vld [vmem:[%s5304_s0 + $0x8] sm:$0xff]  ;;  %v276_v42 = vld [vmem:[%s5304_s0 + $0x12] sm:$0xff]  ;;  %v511_v48 = vld [vmem:[#allocation6 + $0x108] sm:$0xff] }
  0x1d   :  { %169 = vmatprep.mubr.f32.mxu1 %v3662_v0  ;;  %220 = vmatpush1.msra.mxu1 %v58_v22  ;;  %v396_v41 = vld [vmem:[#allocation6 + $0xd0] sm:$0xff]  ;;  %v513_v43 = vld [vmem:[#allocation6 + $0x118] sm:$0xff]  ;;  %v394_v47 = vld [vmem:[#allocation6 + $0xc0] sm:$0xff] }
  0x1e   :  { %221 = vmatprep.subr.mxu1 %v57_v23  ;;  %2952 = vmatmul.mubr.msk.f32.vlgmr.msra.gmra.mxu0 %vm76_vm1, %v274_v28  ;;  %v55_v45 = vld [vmem:[%s5304_s0 + $0x10] sm:$0xff]  ;;  %v512_v46 = vld [vmem:[#allocation6 + $0x110] sm:$0xff]  ;;  %v510_v49 = vld [vmem:[#allocation6 + $0x100] sm:$0xff] }
  0x1f   :  { %222 = vmatpush1.msra.mxu1 %v56_v25  ;;  %2960 = vmatprep.subr.msk.mxu0 %vm86_vm0, %v517_v30  ;;  %v390_v50 = vld [vmem:[%s5304_s0 + $0x3] sm:$0xff]  ;;  %v391_v52 = vld [vmem:[%s5304_s0 + $0xb] sm:$0xff]  ;;  %v392_v54 = vld [vmem:[%s5304_s0 + $0x13] sm:$0xff] }
  0x20   :  { %2944 = vmatmul.mubr.msk.f32.gmra.mxu1 %vm76_vm1, %v66_v27  ;;  %2955 = vmatprep.subr.msk.mxu1 %vm86_vm0, %v401_v29  ;;  %v506_v51 = vld [vmem:[%s5304_s0 + $0x4] sm:$0xff]  ;;  %v507_v53 = vld [vmem:[%s5304_s0 + $0xc] sm:$0xff]  ;;  %v508_v55 = vld [vmem:[%s5304_s0 + $0x14] sm:$0xff] }
  0x21   :  { %255 = vmatprep.mubr.f32.mxu1 %v3662_v0  ;;  %371 = vmatprep.mubr.f32.mxu0 %v3662_v0  ;;  %v695_v56 = vld [vmem:[%s5307_s3 + $0xf8] sm:$0xff]  ;;  %v694_v57 = vld [vmem:[%s5307_s3 + $0xf0] sm:$0xff]  ;;  %v693_v58 = vld [vmem:[%s5307_s3 + $0xe8] sm:$0xff] }
  0x22   :  { %2961 = vmatpush1.msk.msra.mxu0 %vm86_vm0, %v516_v31  ;;  %v692_v59 = vld [vmem:[%s5307_s3 + $0xe0] sm:$0xff]  ;;  %v691_v60 = vld [vmem:[%s5307_s3 + $0xd8] sm:$0xff]  ;;  %v690_v61 = vld [vmem:[%s5307_s3 + $0xd0] sm:$0xff] }
  0x23   :  { %2953 = vmatmul.mubr.msk.f32.gmra.mxu0 %vm76_vm1, %v275_v33  ;;  %559 = vmatprep.subr.mxu0 %v515_v36  ;;  %v689_v62 = vld [vmem:[%s5307_s3 + $0xc8] sm:$0xff]  ;;  %v688_v63 = vld [vmem:[%s5307_s3 + $0xc0] sm:$0xff]  ;;  %v687_v1 = vld [vmem:[%s5307_s3 + $0xb8] sm:$0xff] }
  0x24   :  { %2947 = vmatmul.mubr.msk.f32.vlgmr.msra.gmra.mxu1 %vm76_vm1, %v53_v32  ;;  %560 = vmatpush1.msra.mxu0 %v514_v38  ;;  %v686_v2 = vld [vmem:[%s5307_s3 + $0xb0] sm:$0xff]  ;;  %v685_v8 = vld [vmem:[%s5307_s3 + $0xa8] sm:$0xff]  ;;  %v2996_v10 = vld [vmem:[%s5307_s3 + $0x1f8] sm:$0xff] }
  0x25   :  { %2956 = vmatpush1.msk.msra.mxu1 %vm86_vm0, %v400_v34  ;;  %261 = vmatprep.mubr.f32.mxu1 %v3662_v0  ;;  %v684_v11 = vld [vmem:[%s5307_s3 + $0xa0] sm:$0xff]  ;;  %v2995_v12 = vld [vmem:[%s5307_s3 + $0x1f0] sm:$0xff]  ;;  %v683_v13 = vld [vmem:[%s5307_s3 + $0x98] sm:$0xff] }
  0x26   :  { %443 = vmatprep.subr.mxu1 %v399_v35  ;;  %377 = vmatprep.mubr.f32.mxu0 %v3662_v0  ;;  %v2994_v14 = vld [vmem:[%s5307_s3 + $0x1e8] sm:$0xff]  ;;  %v682_v15 = vld [vmem:[%s5307_s3 + $0x90] sm:$0xff]  ;;  %v2993_v16 = vld [vmem:[%s5307_s3 + $0x1e0] sm:$0xff] }
  0x27   :  { %444 = vmatpush1.msra.mxu1 %v398_v37  ;;  %2954 = vmatmul.mubr.msk.f32.gmra.mxu0 %vm76_vm1, %v276_v42  ;;  %v681_v17 = vld [vmem:[%s5307_s3 + $0x88] sm:$0xff]  ;;  %v680_v18 = vld [vmem:[%s5307_s3 + $0x80] sm:$0xff]  ;;  %v2992_v19 = vld [vmem:[%s5307_s3 + $0x1d8] sm:$0xff] }
  0x28   :  { %2948 = vmatmul.mubr.msk.f32.gmra.mxu1 %vm76_vm1, %v54_v39  ;;  %445 = vmatprep.subr.mxu1 %v397_v40  ;;  %v679_v20 = vld [vmem:[%s5307_s3 + $0x78] sm:$0xff]  ;;  %v2991_v21 = vld [vmem:[%s5307_s3 + $0x1d0] sm:$0xff]  ;;  %v2990_v23 = vld [vmem:[%s5307_s3 + $0x1c8] sm:$0xff] }
  0x29   :  { %267 = vmatprep.mubr.f32.mxu1 %v3662_v0  ;;  %446 = vmatpush1.msra.mxu1 %v396_v41  ;;  %v678_v22 = vld [vmem:[%s5307_s3 + $0x70] sm:$0xff]  ;;  %v677_v24 = vld [vmem:[%s5307_s3 + $0x68] sm:$0xff]  ;;  %v2989_v25 = vld [vmem:[%s5307_s3 + $0x1c0] sm:$0xff] }
  0x2a   :  { %561 = vmatprep.subr.mxu0 %v513_v43  ;;  %447 = vmatprep.subr.mxu1 %v395_v44  ;;  %v676_v26 = vld [vmem:[%s5307_s3 + $0x60] sm:$0xff]  ;;  %v2988_v27 = vld [vmem:[%s5307_s3 + $0x1b8] sm:$0xff]  ;;  %v2987_v29 = vld [vmem:[%s5307_s3 + $0x1b0] sm:$0xff] }
  0x2b   :  { %562 = vmatpush1.msra.mxu0 %v512_v46  ;;  %448 = vmatpush1.msra.mxu1 %v394_v47  ;;  %v675_v28 = vld [vmem:[%s5307_s3 + $0x58] sm:$0xff]  ;;  %v674_v30 = vld [vmem:[%s5307_s3 + $0x50] sm:$0xff]  ;;  %v2986_v31 = vld [vmem:[%s5307_s3 + $0x1a8] sm:$0xff] }
  0x2c   :  { %2949 = vmatmul.mubr.msk.f32.gmra.mxu1 %vm76_vm1, %v55_v45  ;;  %563 = vmatprep.subr.mxu0 %v511_v48  ;;  %v673_v32 = vld [vmem:[%s5307_s3 + $0x48] sm:$0xff]  ;;  %v2985_v33 = vld [vmem:[%s5307_s3 + $0x1a0] sm:$0xff]  ;;  %v2984_v35 = vld [vmem:[%s5307_s3 + $0x198] sm:$0xff] }
  0x2d   :  { %481 = vmatprep.mubr.f32.mxu1 %v3662_v0  ;;  %564 = vmatpush1.msra.mxu0 %v510_v49  ;;  %v672_v34 = vld [vmem:[%s5307_s3 + $0x40] sm:$0xff]  ;;  %v671_v36 = vld [vmem:[%s5307_s3 + $0x38] sm:$0xff]  ;;  %v2983_v37 = vld [vmem:[%s5307_s3 + $0x190] sm:$0xff] }
  0x2e   :  { %597 = vmatprep.mubr.f32.mxu0 %v3662_v0  ;;  %801 = vmatprep.subr.mxu0 %v695_v56  ;;  %v670_v38 = vld [vmem:[%s5307_s3 + $0x30] sm:$0xff]  ;;  %v2982_v39 = vld [vmem:[%s5307_s3 + $0x188] sm:$0xff]  ;;  %v2981_v41 = vld [vmem:[%s5307_s3 + $0x180] sm:$0xff] }
  0x2f   :  { %2962 = vmatmul.mubr.msk.f32.vlgmr.msra.gmra.mxu0 %vm76_vm1, %v506_v51  ;;  %730 = vmatprep.subr.mxu1 %v2996_v10  ;;  %v669_v40 = vld [vmem:[%s5307_s3 + $0x28] sm:$0xff]  ;;  %v668_v42 = vld [vmem:[%s5307_s3 + $0x20] sm:$0xff]  ;;  %v2980_v43 = vld [vmem:[%s5307_s3 + $0x178] sm:$0xff] }
  0x30   :  { %2957 = vmatmul.mubr.msk.f32.vlgmr.msra.gmra.mxu1 %vm76_vm1, %v390_v50  ;;  %603 = vmatprep.mubr.f32.mxu0 %v3662_v0  ;;  %v667_v44 = vld [vmem:[%s5307_s3 + $0x18] sm:$0xff]  ;;  %v2979_v45 = vld [vmem:[%s5307_s3 + $0x170] sm:$0xff]  ;;  %v2978_v47 = vld [vmem:[%s5307_s3 + $0x168] sm:$0xff] }
  0x31   :  { %487 = vmatprep.mubr.f32.mxu1 %v3662_v0  ;;  %802 = vmatpush1.msra.mxu0 %v694_v57  ;;  %v666_v46 = vld [vmem:[%s5307_s3 + $0x10] sm:$0xff]  ;;  %v665_v48 = vld [vmem:[%s5307_s3 + $0x8] sm:$0xff]  ;;  %v2977_v49 = vld [vmem:[%s5307_s3 + $0x160] sm:$0xff] }
  0x32   :  { %803 = vmatprep.subr.mxu0 %v693_v58  ;;  %731 = vmatpush1.msra.mxu1 %v2995_v12  ;;  %v664_v50 = vld [vmem:[%s5307_s3] sm:$0xff]  ;;  %v2976_v51 = vld [vmem:[%s5307_s3 + $0x158] sm:$0xff]  ;;  %v2971_v57 = vld [vmem:[%s5307_s3 + $0x130] sm:$0xff] }
  0x33   :  { %2963 = vmatmul.mubr.msk.f32.gmra.mxu0 %vm76_vm1, %v507_v53  ;;  %732 = vmatprep.subr.mxu1 %v2994_v14  ;;  %v2975_v53 = vld [vmem:[%s5307_s3 + $0x150] sm:$0xff]  ;;  %v2972_v56 = vld [vmem:[%s5307_s3 + $0x138] sm:$0xff]  ;;  %v2970_v58 = vld [vmem:[%s5307_s3 + $0x128] sm:$0xff] }
  0x34   :  { %2958 = vmatmul.mubr.msk.f32.gmra.mxu1 %vm76_vm1, %v391_v52  ;;  %609 = vmatprep.mubr.f32.mxu0 %v3662_v0  ;;  %v3060_v52 = vld [vmem:[%s5307_s3 + $0x3f8] sm:$0xff] }
  0x35   :  { %493 = vmatprep.mubr.f32.mxu1 %v3662_v0  ;;  %804 = vmatpush1.msra.mxu0 %v692_v59  ;;  %v2969_v59 = vld [vmem:[%s5307_s3 + $0x120] sm:$0xff] }
  0x36   :  { %805 = vmatprep.subr.mxu0 %v691_v60  ;;  %733 = vmatpush1.msra.mxu1 %v2993_v16  ;;  %v2968_v60 = vld [vmem:[%s5307_s3 + $0x118] sm:$0xff] }
  0x37   :  { %2964 = vmatmul.mubr.msk.f32.gmra.mxu0 %vm76_vm1, %v508_v55  ;;  %734 = vmatprep.subr.mxu1 %v2992_v19  ;;  %v2973_v55 = vld [vmem:[%s5307_s3 + $0x140] sm:$0xff] }
  0x38   :  { %2959 = vmatmul.mubr.msk.f32.gmra.mxu1 %vm76_vm1, %v392_v54  ;;  %865 = vmatprep.mubr.f32.mxu0 %v3662_v0  ;;  %v2974_v54 = vld [vmem:[%s5307_s3 + $0x148] sm:$0xff] }
  0x39   :  { %794 = vmatprep.mubr.f32.mxu1 %v3662_v0  ;;  %806 = vmatpush1.msra.mxu0 %v690_v61  ;;  %v2967_v61 = vld [vmem:[%s5307_s3 + $0x110] sm:$0xff] }
  0x3a   :  { %807 = vmatprep.subr.mxu0 %v689_v62  ;;  %735 = vmatpush1.msra.mxu1 %v2991_v21  ;;  %v2966_v62 = vld [vmem:[%s5307_s3 + $0x108] sm:$0xff] }
  0x3b   :  { %808 = vmatpush1.msra.mxu0 %v688_v63  ;;  %736 = vmatprep.subr.mxu1 %v2990_v23  ;;  %v2965_v63 = vld [vmem:[%s5307_s3 + $0x100] sm:$0xff] }
  0x3c   :  { %809 = vmatprep.subr.mxu0 %v687_v1  ;;  %737 = vmatpush1.msra.mxu1 %v2989_v25  ;;  %v3028_v1 = vld [vmem:[%s5307_s3 + $0x2f8] sm:$0xff] }
  0x3d   :  { %810 = vmatpush1.msra.mxu0 %v686_v2  ;;  %738 = vmatprep.subr.mxu1 %v2988_v27 }
  0x3e   :  { %811 = vmatprep.subr.mxu0 %v685_v8  ;;  %739 = vmatpush1.msra.mxu1 %v2987_v29 }
  0x3f   :  { %812 = vmatpush1.msra.mxu0 %v684_v11  ;;  %740 = vmatprep.subr.mxu1 %v2986_v31  ;;  %v622_v31 = vld [vmem:[%s5306_s2] sm:$0x3] }
  0x40   :  { %813 = vmatprep.subr.mxu0 %v683_v13  ;;  %741 = vmatpush1.msra.mxu1 %v2985_v33 }
  0x41   :  { %814 = vmatpush1.msra.mxu0 %v682_v15  ;;  %742 = vmatprep.subr.mxu1 %v2984_v35 }
  0x42   :  { %815 = vmatprep.subr.mxu0 %v681_v17  ;;  %743 = vmatpush1.msra.mxu1 %v2983_v37 }
  0x43   :  { %816 = vmatpush1.msra.mxu0 %v680_v18  ;;  %744 = vmatprep.subr.mxu1 %v2982_v39  ;;  %v624_v18 = vlaneseq }
  0x44   :  { %817 = vmatprep.subr.mxu0 %v679_v20  ;;  %745 = vmatpush1.msra.mxu1 %v2981_v41 }
  0x45   :  { %818 = vmatpush1.msra.mxu0 %v678_v22  ;;  %746 = vmatprep.subr.mxu1 %v2980_v43  ;;  %v625_v22 = vshrl.u32 %v624_v18, 7 }
  0x46   :  { %819 = vmatprep.subr.mxu0 %v677_v24  ;;  %747 = vmatpush1.msra.mxu1 %v2979_v45 }
  0x47   :  { %820 = vmatpush1.msra.mxu0 %v676_v26  ;;  %748 = vmatprep.subr.mxu1 %v2978_v47  ;;  %v4031_v29 = vsub.s32 0, %v625_v22 }
  0x48   :  { %821 = vmatprep.subr.mxu0 %v675_v28  ;;  %749 = vmatpush1.msra.mxu1 %v2977_v49 }
  0x49   :  { %822 = vmatpush1.msra.mxu0 %v674_v30  ;;  %750 = vmatprep.subr.mxu1 %v2976_v51 }
  0x4a   :  { %823 = vmatprep.subr.mxu0 %v673_v32  ;;  %751 = vmatpush1.msra.mxu1 %v2975_v53  ;;  %v4036_v32 = vsub.s32 1, %v625_v22 }
  0x4b   :  { %824 = vmatpush1.msra.mxu0 %v672_v34  ;;  %752 = vmatprep.subr.mxu1 %v2974_v54 }
  0x4c   :  { %825 = vmatprep.subr.mxu0 %v671_v36  ;;  %753 = vmatpush1.msra.mxu1 %v2973_v55  ;;  %v631_v43 = vrot.slane %v622_v31, %v4036_v32 }
  0x4d   :  { %826 = vmatpush1.msra.mxu0 %v670_v38  ;;  %754 = vmatprep.subr.mxu1 %v2972_v56 }
  0x4e   :  { %827 = vmatprep.subr.mxu0 %v669_v40  ;;  %755 = vmatpush1.msra.mxu1 %v2971_v57  ;;  %v627_v40 = vrot.slane %v622_v31, %v4031_v29  ;;  %v3059_v31 = vld [vmem:[%s5307_s3 + $0x3f0] sm:$0xff] }
  0x4f   :  { %828 = vmatpush1.msra.mxu0 %v668_v42  ;;  %756 = vmatprep.subr.mxu1 %v2970_v58 }
  0x50   :  { %829 = vmatprep.subr.mxu0 %v667_v44  ;;  %757 = vmatpush1.msra.mxu1 %v2969_v59 }
  0x51   :  { %830 = vmatpush1.msra.mxu0 %v666_v46  ;;  %758 = vmatprep.subr.mxu1 %v2968_v60 }
  0x52   :  { %831 = vmatprep.subr.mxu0 %v665_v48  ;;  %759 = vmatpush1.msra.mxu1 %v2967_v61 }
  0x53   :  { %832 = vmatpush1.msra.mxu0 %v664_v50  ;;  %760 = vmatprep.subr.mxu1 %v2966_v62 }
  0x54   :  { %1013 = vmatprep.subr.mxu0 %v3060_v52  ;;  %761 = vmatpush1.msra.mxu1 %v2965_v63 }
  0x55   :  { %906 = vmatprep.subr.mxu1 %v3028_v1 }
  0xd8   :  { %v159_v2 = vpop.f32.mrf.mxu1 }
  0xda   :  { %v161_v8 = vpop.f32.mrf.mxu1 }
  0xdc   :  { %v165_v10 = vpop.f32.mrf.mxu1 }
  0xde   :  { %v167_v11 = vpop.f32.mrf.mxu1  ;;  %v367_v13 = vpop.f32.mrf.mxu0 }
  0xe0   :  { %v171_v12 = vpop.f32.mrf.mxu1  ;;  %v369_v15 = vpop.f32.mrf.mxu0 }
  0xe2   :  { %v173_v14 = vpop.f32.mrf.mxu1 }
  0xe3   :  { %v373_v17 = vpop.f32.mrf.mxu0 }
  0xe4   :  { %v257_v16 = vpop.f32.mrf.mxu1 }
  0xe5   :  { %v375_v20 = vpop.f32.mrf.mxu0  ;;  %v258_v25 = vadd.f32 %v257_v16, %v159_v2 }
  0xe6   :  { %v259_v19 = vpop.f32.mrf.mxu1 }
  0xe7   :  { %v379_v24 = vpop.f32.mrf.mxu0  ;;  %v260_v28 = vadd.f32 %v259_v19, %v161_v8  ;;  %v384_v33 = vadd.f32 %v367_v13, %v258_v25 }
  0xe8   :  { %v263_v21 = vpop.f32.mrf.mxu1 }
  0xe9   :  { %v381_v27 = vpop.f32.mrf.mxu0  ;;  %v264_v34 = vadd.f32 %v263_v21, %v165_v10  ;;  %v385_v37 = vadd.f32 %v369_v15, %v260_v28 }
  0xea   :  { %v265_v23 = vpop.f32.mrf.mxu1 }
  0xeb   :  { %v266_v38 = vadd.f32 %v265_v23, %v167_v11  ;;  %v386_v44 = vadd.f32 %v373_v17, %v264_v34  ;;  %v3057_v34 = vld [vmem:[%s5307_s3 + $0x3e0] sm:$0xff] }
  0xec   :  { %v269_v26 = vpop.f32.mrf.mxu1 }
  0xed   :  { %v270_v45 = vadd.f32 %v269_v26, %v171_v12  ;;  %v387_v50 = vadd.f32 %v375_v20, %v266_v38 }
  0xee   :  { %v271_v30 = vpop.f32.mrf.mxu1 }
  0xef   :  { %v599_v36 = vpop.f32.mrf.mxu0  ;;  %v272_v54 = vadd.f32 %v271_v30, %v173_v14  ;;  %v388_v57 = vadd.f32 %v379_v24, %v270_v45  ;;  %v3049_v45 = vld [vmem:[%s5307_s3 + $0x3a0] sm:$0xff] }
  0xf0   :  { %v483_v35 = vpop.f32.mrf.mxu1 }
  0xf1   :  { %v500_v39 = vadd.f32 %v483_v35, %v384_v33  ;;  %v601_v42 = vpop.f32.mrf.mxu0  ;;  %v389_v11 = vadd.f32 %v381_v27, %v272_v54  ;;  %v3058_v33 = vld [vmem:[%s5307_s3 + $0x3e8] sm:$0xff]  ;;  %v3056_v35 = vld [vmem:[%s5307_s3 + $0x3d8] sm:$0xff] }
  0xf2   :  { %v485_v41 = vpop.f32.mrf.mxu1  ;;  %v3044_v54 = vld [vmem:[%s5307_s3 + $0x378] sm:$0xff] }
  0xf3   :  { %v616_v46 = vadd.f32 %v599_v36, %v500_v39  ;;  %v501_v47 = vadd.f32 %v485_v41, %v385_v37  ;;  %v605_v49 = vpop.f32.mrf.mxu0  ;;  %v3055_v36 = vld [vmem:[%s5307_s3 + $0x3d0] sm:$0xff]  ;;  %v3053_v41 = vld [vmem:[%s5307_s3 + $0x3c0] sm:$0xff] }
  0xf4   :  { %v489_v48 = vpop.f32.mrf.mxu1 }
  0xf5   :  { %v634_v51 = vadd.f32 %v627_v40, %v616_v46  ;;  %v617_v52 = vadd.f32 %v601_v42, %v501_v47  ;;  %v502_v53 = vadd.f32 %v489_v48, %v386_v44  ;;  %v607_v56 = vpop.f32.mrf.mxu0  ;;  %v3052_v42 = vld [vmem:[%s5307_s3 + $0x3b8] sm:$0xff]  ;;  %v3050_v44 = vld [vmem:[%s5307_s3 + $0x3a8] sm:$0xff]  ;;  %v3047_v47 = vld [vmem:[%s5307_s3 + $0x390] sm:$0xff] }
  0xf6   :  { %v491_v55 = vpop.f32.mrf.mxu1  ;;  %v3048_v46 = vld [vmem:[%s5307_s3 + $0x398] sm:$0xff]  ;;  %v3027_v48 = vld [vmem:[%s5307_s3 + $0x2f0] sm:$0xff] }
  0xf7   :  { %v635_v58 = vadd.f32 %v631_v43, %v617_v52  ;;  %v618_v59 = vadd.f32 %v605_v49, %v502_v53  ;;  %v503_v60 = vadd.f32 %v491_v55, %v387_v50  ;;  %v640_v61 = vmax.f32 %v634_v51, 0.0  ;;  %v611_v10 = vpop.f32.mrf.mxu0  ;;  %v3046_v49 = vld [vmem:[%s5307_s3 + $0x388] sm:$0xff]  ;;  %v3045_v52 = vld [vmem:[%s5307_s3 + $0x380] sm:$0xff]  ;;  %v3024_v55 = vld [vmem:[%s5307_s3 + $0x2d8] sm:$0xff] }
  0xf8   :  { %v495_v62 = vpop.f32.mrf.mxu1  ;;  %v3026_v51 = vld [vmem:[%s5307_s3 + $0x2e8] sm:$0xff]  ;;  %v3025_v53 = vld [vmem:[%s5307_s3 + $0x2e0] sm:$0xff] }
  0xf9   :  { %v641_v63 = vmax.f32 %v635_v58, 0.0  ;;  %v636_v1 = vadd.f32 %v627_v40, %v618_v59  ;;  %v619_v2 = vadd.f32 %v607_v56, %v503_v60  ;;  %v504_v8 = vadd.f32 %v495_v62, %v388_v57  ;;  %v613_v19 = vpop.f32.mrf.mxu0  ;;  %v3043_v56 = vld [vmem:[%s5307_s3 + $0x370] sm:$0xff]  ;;  %v3042_v58 = vld [vmem:[%s5307_s3 + $0x368] sm:$0xff]  ;;  %v3041_v60 = vld [vmem:[%s5307_s3 + $0x360] sm:$0xff] }
  0xfa   :  { %v497_v12 = vpop.f32.mrf.mxu1  ;;  %v3023_v57 = vld [vmem:[%s5307_s3 + $0x2d0] sm:$0xff]  ;;  %v3022_v59 = vld [vmem:[%s5307_s3 + $0x2c8] sm:$0xff]  ;;  %v3040_v62 = vld [vmem:[%s5307_s3 + $0x358] sm:$0xff] }
  0xfb   :  { %v646_v13 = vmax.f32 %v640_v61, %v641_v63  ;;  %v637_v15 = vadd.f32 %v631_v43, %v619_v2  ;;  %v620_v16 = vadd.f32 %v611_v10, %v504_v8  ;;  %v505_v17 = vadd.f32 %v497_v12, %v389_v11  ;;  %v3021_v61 = vld [vmem:[%s5307_s3 + $0x2c0] sm:$0xff]  ;;  %v3020_v63 = vld [vmem:[%s5307_s3 + $0x2b8] sm:$0xff]  ;;  %v3019_v2 = vld [vmem:[%s5307_s3 + $0x2b0] sm:$0xff] }
  0xfc   :  { %v642_v14 = vmax.f32 %v636_v1, 0.0  ;;  %v3039_v1 = vld [vmem:[%s5307_s3 + $0x350] sm:$0xff]  ;;  %v3038_v8 = vld [vmem:[%s5307_s3 + $0x348] sm:$0xff]  ;;  %v3037_v11 = vld [vmem:[%s5307_s3 + $0x340] sm:$0xff] }
  0xfd   :  { %649 = vst [vmem:[#allocation2] sm:$0xff] %v646_v13  ;;  %v643_v18 = vmax.f32 %v637_v15, 0.0  ;;  %v638_v20 = vadd.f32 %v627_v40, %v620_v16  ;;  %v621_v21 = vadd.f32 %v613_v19, %v505_v17  ;;  %v3054_v40 = vld [vmem:[%s5307_s3 + $0x3c8] sm:$0xff]  ;;  %v3017_v12 = vld [vmem:[%s5307_s3 + $0x2a0] sm:$0xff]  ;;  %v3036_v13 = vld [vmem:[%s5307_s3 + $0x338] sm:$0xff] }
  0xfe   :  { %v3018_v10 = vld [vmem:[%s5307_s3 + $0x2a8] sm:$0xff]  ;;  %v3016_v15 = vld [vmem:[%s5307_s3 + $0x298] sm:$0xff]  ;;  %v3035_v16 = vld [vmem:[%s5307_s3 + $0x330] sm:$0xff] }
  0xff   :  { %v647_v22 = vmax.f32 %v642_v14, %v643_v18  ;;  %v639_v23 = vadd.f32 %v631_v43, %v621_v21  ;;  %v644_v24 = vmax.f32 %v638_v20, 0.0  ;;  %v3051_v43 = vld [vmem:[%s5307_s3 + $0x3b0] sm:$0xff]  ;;  %v3034_v14 = vld [vmem:[%s5307_s3 + $0x328] sm:$0xff]  ;;  %v3033_v19 = vld [vmem:[%s5307_s3 + $0x320] sm:$0xff] }
 0x100   :  { %v3015_v17 = vld [vmem:[%s5307_s3 + $0x290] sm:$0xff]  ;;  %v3014_v18 = vld [vmem:[%s5307_s3 + $0x288] sm:$0xff]  ;;  %v3013_v20 = vld [vmem:[%s5307_s3 + $0x280] sm:$0xff] }
 0x101   :  { %650 = vst [vmem:[#allocation2 + $0x8] sm:$0xff] %v647_v22  ;;  %v645_v25 = vmax.f32 %v639_v23, 0.0  ;;  %v3032_v21 = vld [vmem:[%s5307_s3 + $0x318] sm:$0xff]  ;;  %v3031_v23 = vld [vmem:[%s5307_s3 + $0x310] sm:$0xff] }
 0x102   :  { %v3012_v22 = vld [vmem:[%s5307_s3 + $0x278] sm:$0xff] }
 0x103   :  { %v648_v26 = vmax.f32 %v644_v24, %v645_v25  ;;  %v3011_v24 = vld [vmem:[%s5307_s3 + $0x270] sm:$0xff]  ;;  %v3030_v25 = vld [vmem:[%s5307_s3 + $0x308] sm:$0xff] }
 0x105   :  { %651 = vst [vmem:[#allocation2 + $0x10] sm:$0xff] %v648_v26  ;;  %v3010_v26 = vld [vmem:[%s5307_s3 + $0x268] sm:$0xff] }
 0x108   :  { %v652_v28 = vld [vmem:[#allocation2] ss:$2 sm:$0xff]  ;;  %v656_v27 = vld [vmem:[#allocation2 + $0x1] ss:$2 sm:$0xff] }
 0x109   :  { %v659_v30 = vmax.f32 %v652_v28, %v656_v27  ;;  %v3029_v28 = vld [vmem:[%s5307_s3 + $0x300] sm:$0xff] }
 0x10a   :  { %v3009_v27 = vld [vmem:[%s5307_s3 + $0x260] sm:$0xff] }
 0x10b   :  { %661 = vst [vmem:[#allocation3] sm:$0xff] %v659_v30  ;;  %866 = vmatmul.mubr.f32.vlgmr.msra.gmra.mxu0 %v659_v30  ;;  %v3008_v30 = vld [vmem:[%s5307_s3 + $0x258] sm:$0xff] }
 0x10c   :  { %1014 = vmatpush1.msra.mxu0 %v3059_v31  ;;  %1077 = vmatprep.mubr.f32.mxu0 %v3662_v0  ;;  %v654_v37 = vld [vmem:[#allocation2 + $0x10] ss:$2 sm:$0xf]  ;;  %v658_v38 = vld [vmem:[#allocation2 + $0x11] ss:$2 sm:$0xf] }
 0x10d   :  { %1015 = vmatprep.subr.mxu0 %v3058_v33  ;;  %v660_v39 = vmax.f32 %v654_v37, %v658_v38  ;;  %v3007_v31 = vld [vmem:[%s5307_s3 + $0x250] sm:$0xff]  ;;  %v3005_v37 = vld [vmem:[%s5307_s3 + $0x240] sm:$0xff]  ;;  %v3004_v38 = vld [vmem:[%s5307_s3 + $0x238] sm:$0xff] }
 0x10e   :  { %1016 = vmatpush1.msra.mxu0 %v3057_v34  ;;  %v1238_v34 = vld [vmem:[#allocation6 + $0x78] sm:$0xf] }
 0x10f   :  { %1017 = vmatprep.subr.mxu0 %v3056_v35  ;;  %662 = vst [vmem:[#allocation3 + $0x8] sm:$0xf] %v660_v39  ;;  %v3006_v35 = vld [vmem:[%s5307_s3 + $0x248] sm:$0xff]  ;;  %v3003_v39 = vld [vmem:[%s5307_s3 + $0x230] sm:$0xff] }
 0x110   :  { %1018 = vmatpush1.msra.mxu0 %v3055_v36  ;;  %v1237_v36 = vld [vmem:[#allocation6 + $0x70] sm:$0xf] }
 0x111   :  { %1019 = vmatprep.subr.mxu0 %v3054_v40  ;;  %v3002_v40 = vld [vmem:[%s5307_s3 + $0x228] sm:$0xff] }
 0x112   :  { %1020 = vmatpush1.msra.mxu0 %v3053_v41  ;;  %v3001_v41 = vld [vmem:[%s5307_s3 + $0x220] sm:$0xff] }
 0x113   :  { %1021 = vmatprep.subr.mxu0 %v3052_v42  ;;  %v3000_v42 = vld [vmem:[%s5307_s3 + $0x218] sm:$0xff] }
 0x114   :  { %1022 = vmatpush1.msra.mxu0 %v3051_v43  ;;  %v2999_v43 = vld [vmem:[%s5307_s3 + $0x210] sm:$0xff] }
 0x115   :  { %1023 = vmatprep.subr.mxu0 %v3050_v44  ;;  %v1227_v44 = vld [vmem:[#allocation6 + $0x38] sm:$0xf] }
 0x116   :  { %1024 = vmatpush1.msra.mxu0 %v3049_v45  ;;  %v696_v50 = vld [vmem:[#allocation3 + $0x1] sm:$0xff] }
 0x117   :  { %1025 = vmatprep.subr.mxu0 %v3048_v46  ;;  %795 = vmatmul.mubr.f32.vlgmr.msra.gmra.mxu1 %v696_v50  ;;  %v979_v33 = vld [vmem:[#allocation3 + $0x3] sm:$0xff]  ;;  %v3097_v46 = vld [vmem:[%s5304_s0 + $0x29] sm:$0xff] }
 0x118   :  { %1026 = vmatpush1.msra.mxu0 %v3047_v47  ;;  %907 = vmatpush1.msra.mxu1 %v3027_v48  ;;  %v872_v45 = vld [vmem:[#allocation3 + $0x2] sm:$0xff]  ;;  %v1226_v48 = vld [vmem:[#allocation6 + $0x30] sm:$0xf] }
 0x119   :  { %1027 = vmatprep.subr.mxu0 %v3046_v49  ;;  %908 = vmatprep.subr.mxu1 %v3026_v51  ;;  %v3089_v47 = vld [vmem:[%s5307_s3 + $0x4e0] sm:$0xff]  ;;  %v3088_v49 = vld [vmem:[%s5307_s3 + $0x4d8] sm:$0xff]  ;;  %v3087_v51 = vld [vmem:[%s5307_s3 + $0x4d0] sm:$0xff] }
 0x11a   :  { %1028 = vmatpush1.msra.mxu0 %v3045_v52  ;;  %909 = vmatpush1.msra.mxu1 %v3025_v53  ;;  %v1225_v50 = vld [vmem:[#allocation6 + $0x28] sm:$0xff]  ;;  %v3086_v52 = vld [vmem:[%s5307_s3 + $0x4c8] sm:$0xff]  ;;  %v1224_v53 = vld [vmem:[#allocation6 + $0x20] sm:$0xff] }
 0x11b   :  { %1029 = vmatprep.subr.mxu0 %v3044_v54  ;;  %910 = vmatprep.subr.mxu1 %v3024_v55  ;;  %v3085_v54 = vld [vmem:[%s5307_s3 + $0x4c0] sm:$0xff]  ;;  %v3098_v55 = vld [vmem:[%s5304_s0 + $0x31] sm:$0xff] }
 0x11c   :  { %1030 = vmatpush1.msra.mxu0 %v3043_v56  ;;  %911 = vmatpush1.msra.mxu1 %v3023_v57  ;;  %v3084_v56 = vld [vmem:[%s5307_s3 + $0x4b8] sm:$0xff]  ;;  %v1223_v57 = vld [vmem:[#allocation6 + $0x18] sm:$0xff] }
 0x11d   :  { %1031 = vmatprep.subr.mxu0 %v3042_v58  ;;  %912 = vmatprep.subr.mxu1 %v3022_v59  ;;  %v3083_v58 = vld [vmem:[%s5307_s3 + $0x4b0] sm:$0xff]  ;;  %v1222_v59 = vld [vmem:[#allocation6 + $0x10] sm:$0xff] }
 0x11e   :  { %1032 = vmatpush1.msra.mxu0 %v3041_v60  ;;  %913 = vmatpush1.msra.mxu1 %v3021_v61  ;;  %v3082_v60 = vld [vmem:[%s5307_s3 + $0x4a8] sm:$0xff]  ;;  %v1221_v61 = vld [vmem:[#allocation6 + $0x8] sm:$0xff] }
 0x11f   :  { %1033 = vmatprep.subr.mxu0 %v3040_v62  ;;  %914 = vmatprep.subr.mxu1 %v3020_v63  ;;  %v3081_v62 = vld [vmem:[%s5307_s3 + $0x4a0] sm:$0xff]  ;;  %v1220_v63 = vld [vmem:[#allocation6] sm:$0xff] }
 0x120   :  { %1034 = vmatpush1.msra.mxu0 %v3039_v1  ;;  %915 = vmatpush1.msra.mxu1 %v3019_v2  ;;  %v3080_v1 = vld [vmem:[%s5307_s3 + $0x498] sm:$0xff]  ;;  %v3079_v2 = vld [vmem:[%s5307_s3 + $0x490] sm:$0xff] }
 0x121   :  { %1035 = vmatprep.subr.mxu0 %v3038_v8  ;;  %916 = vmatprep.subr.mxu1 %v3018_v10  ;;  %v3093_v8 = vld [vmem:[%s5304_s0 + $0x20] sm:$0xff]  ;;  %v3078_v10 = vld [vmem:[%s5307_s3 + $0x488] sm:$0xff] }
 0x122   :  { %1036 = vmatpush1.msra.mxu0 %v3037_v11  ;;  %917 = vmatpush1.msra.mxu1 %v3017_v12  ;;  %v3077_v11 = vld [vmem:[%s5307_s3 + $0x480] sm:$0xff]  ;;  %v3076_v12 = vld [vmem:[%s5307_s3 + $0x478] sm:$0xff] }
 0x123   :  { %1037 = vmatprep.subr.mxu0 %v3036_v13  ;;  %918 = vmatprep.subr.mxu1 %v3016_v15  ;;  %v1560_v13 = vld [vmem:[#allocation6 + $0xf8] sm:$0xf] }
 0x124   :  { %1038 = vmatpush1.msra.mxu0 %v3035_v16  ;;  %919 = vmatpush1.msra.mxu1 %v3015_v17  ;;  %v3075_v15 = vld [vmem:[%s5307_s3 + $0x470] sm:$0xff]  ;;  %v3094_v16 = vld [vmem:[%s5304_s0 + $0x28] sm:$0xff] }
 0x125   :  { %1039 = vmatprep.subr.mxu0 %v3034_v14  ;;  %920 = vmatprep.subr.mxu1 %v3014_v18  ;;  %v3074_v17 = vld [vmem:[%s5307_s3 + $0x468] sm:$0xff]  ;;  %v3073_v14 = vld [vmem:[%s5307_s3 + $0x460] sm:$0xff] }
 0x126   :  { %1040 = vmatpush1.msra.mxu0 %v3033_v19  ;;  %921 = vmatpush1.msra.mxu1 %v3013_v20  ;;  %v1559_v18 = vld [vmem:[#allocation6 + $0xf0] sm:$0xf]  ;;  %v3072_v19 = vld [vmem:[%s5307_s3 + $0x458] sm:$0xff]  ;;  %v1558_v20 = vld [vmem:[#allocation6 + $0xe8] sm:$0xff] }
 0x127   :  { %1041 = vmatprep.subr.mxu0 %v3032_v21  ;;  %922 = vmatprep.subr.mxu1 %v3012_v22  ;;  %v3071_v21 = vld [vmem:[%s5307_s3 + $0x450] sm:$0xff] }
 0x128   :  { %1042 = vmatpush1.msra.mxu0 %v3031_v23  ;;  %923 = vmatpush1.msra.mxu1 %v3011_v24  ;;  %v3095_v22 = vld [vmem:[%s5304_s0 + $0x30] sm:$0xff]  ;;  %v3070_v23 = vld [vmem:[%s5307_s3 + $0x448] sm:$0xff]  ;;  %v1557_v24 = vld [vmem:[#allocation6 + $0xe0] sm:$0xff] }
 0x129   :  { %1043 = vmatprep.subr.mxu0 %v3030_v25  ;;  %924 = vmatprep.subr.mxu1 %v3010_v26  ;;  %v3069_v25 = vld [vmem:[%s5307_s3 + $0x440] sm:$0xff]  ;;  %v1556_v26 = vld [vmem:[#allocation6 + $0xd8] sm:$0xff] }
 0x12a   :  { %1044 = vmatpush1.msra.mxu0 %v3029_v28  ;;  %925 = vmatpush1.msra.mxu1 %v3009_v27  ;;  %v3068_v28 = vld [vmem:[%s5307_s3 + $0x438] sm:$0xff]  ;;  %v1555_v27 = vld [vmem:[#allocation6 + $0xd0] sm:$0xff] }
 0x12b   :  { %1078 = vmatmul.mubr.f32.vlgmr.msra.gmra.mxu0 %v979_v33  ;;  %926 = vmatprep.subr.mxu1 %v3008_v30  ;;  %v3067_v30 = vld [vmem:[%s5307_s3 + $0x430] sm:$0xff]  ;;  %v3066_v33 = vld [vmem:[%s5307_s3 + $0x428] sm:$0xff] }
 0x12c   :  { %970 = vmatprep.mubr.f32.mxu1 %v3662_v0  ;;  %927 = vmatpush1.msra.mxu1 %v3007_v31  ;;  %v1554_v31 = vld [vmem:[#allocation6 + $0xc8] sm:$0xff] }
 0x12d   :  { %3099 = vmatprep.subr.msk.mxu0 %vm86_vm0, %v1238_v34  ;;  %928 = vmatprep.subr.mxu1 %v3006_v35  ;;  %v1553_v34 = vld [vmem:[#allocation6 + $0xc0] sm:$0xff]  ;;  %v3065_v35 = vld [vmem:[%s5307_s3 + $0x420] sm:$0xff] }
 0x12e   :  { %3100 = vmatpush1.msk.msra.mxu0 %vm86_vm0, %v1237_v36  ;;  %929 = vmatpush1.msra.mxu1 %v3005_v37  ;;  %v3064_v36 = vld [vmem:[%s5307_s3 + $0x418] sm:$0xff]  ;;  %v3117_v37 = vld [vmem:[%s5304_s0 + $0x23] sm:$0xff] }
 0x12f   :  { %1280 = vmatprep.subr.mxu0 %v3730_v3  ;;  %930 = vmatprep.subr.mxu1 %v3004_v38  ;;  %v2998_v3 = vld [vmem:[%s5307_s3 + $0x208] sm:$0xff]  ;;  %v3063_v38 = vld [vmem:[%s5307_s3 + $0x410] sm:$0xff] }
 0x130   :  { %1281 = vmatpush1.msra.mxu0 %v3733_v4  ;;  %931 = vmatpush1.msra.mxu1 %v3003_v39  ;;  %v3096_v4 = vld [vmem:[%s5304_s0 + $0x21] sm:$0xff] }
 0x131   :  { %1282 = vmatprep.subr.mxu0 %v3736_v5  ;;  %932 = vmatprep.subr.mxu1 %v3002_v40  ;;  %v2997_v5 = vld [vmem:[%s5307_s3 + $0x200] sm:$0xff]  ;;  %v3062_v39 = vld [vmem:[%s5307_s3 + $0x408] sm:$0xff] }
 0x132   :  { %1283 = vmatpush1.msra.mxu0 %v3739_v6  ;;  %933 = vmatpush1.msra.mxu1 %v3001_v41  ;;  %v3092_v6 = vld [vmem:[%s5307_s3 + $0x4f8] sm:$0xff]  ;;  %v3061_v40 = vld [vmem:[%s5307_s3 + $0x400] sm:$0xff]  ;;  %v1445_v41 = vld [vmem:[#allocation6 + $0xb8] sm:$0xf] }
 0x133   :  { %1284 = vmatprep.subr.mxu0 %v3742_v7  ;;  %934 = vmatprep.subr.mxu1 %v3000_v42  ;;  %v3091_v7 = vld [vmem:[%s5307_s3 + $0x4f0] sm:$0xff]  ;;  %v1444_v42 = vld [vmem:[#allocation6 + $0xb0] sm:$0xf] }
 0x134   :  { %1285 = vmatpush1.msra.mxu0 %v3745_v9  ;;  %935 = vmatpush1.msra.mxu1 %v2999_v43  ;;  %v3090_v9 = vld [vmem:[%s5307_s3 + $0x4e8] sm:$0xff]  ;;  %v1086_v43 = vld [vmem:[#allocation3 + $0x4] sm:$0xff] }
 0x135   :  { %1318 = vmatprep.mubr.f32.mxu0 %v3662_v0  ;;  %936 = vmatprep.subr.mxu1 %v2998_v3  ;;  %v1443_v3 = vld [vmem:[#allocation6 + $0xa8] sm:$0xff] }
 0x136   :  { %3101 = vmatmul.mubr.msk.f32.vlgmr.msra.gmra.mxu0 %vm76_vm1, %v3096_v4  ;;  %937 = vmatpush1.msra.mxu1 %v2997_v5  ;;  %v3118_v4 = vld [vmem:[%s5304_s0 + $0x2b] sm:$0xff]  ;;  %v1442_v5 = vld [vmem:[#allocation6 + $0xa0] sm:$0xff] }
 0x137   :  { %1324 = vmatprep.mubr.f32.mxu0 %v3662_v0  ;;  %971 = vmatmul.mubr.f32.vlgmr.msra.gmra.mxu1 %v872_v45  ;;  %v3119_v45 = vld [vmem:[%s5304_s0 + $0x33] sm:$0xff] }
 0x138   :  { %1120 = vmatprep.subr.mxu1 %v3092_v6  ;;  %3104 = vmatprep.subr.msk.mxu0 %vm86_vm0, %v1227_v44  ;;  %v1441_v6 = vld [vmem:[#allocation6 + $0x98] sm:$0xff]  ;;  %v1439_v44 = vld [vmem:[#allocation6 + $0x88] sm:$0xff] }
 0x139   :  { %1121 = vmatpush1.msra.mxu1 %v3091_v7  ;;  %3105 = vmatpush1.msk.msra.mxu0 %vm86_vm0, %v1226_v48  ;;  %v1440_v7 = vld [vmem:[#allocation6 + $0x90] sm:$0xff] }
 0x13a   :  { %1122 = vmatprep.subr.mxu1 %v3090_v9  ;;  %3102 = vmatmul.mubr.msk.f32.gmra.mxu0 %vm76_vm1, %v3097_v46  ;;  %v1438_v9 = vld [vmem:[#allocation6 + $0x80] sm:$0xff]  ;;  %v3109_v46 = vld [vmem:[%s5304_s0 + $0x22] sm:$0xff] }
 0x13b   :  { %1123 = vmatpush1.msra.mxu1 %v3089_v47  ;;  %1378 = vmatprep.subr.mxu0 %v1225_v50  ;;  %v1675_v47 = vld [vmem:[#allocation6 + $0x138] sm:$0xf]  ;;  %v1674_v48 = vld [vmem:[#allocation6 + $0x130] sm:$0xf]  ;;  %v1672_v50 = vld [vmem:[#allocation6 + $0x120] sm:$0xff] }
 0x13c   :  { %1124 = vmatprep.subr.mxu1 %v3088_v49  ;;  %1330 = vmatprep.mubr.f32.mxu0 %v3662_v0  ;;  %v1673_v49 = vld [vmem:[#allocation6 + $0x128] sm:$0xff] }
 0x13d   :  { %1125 = vmatpush1.msra.mxu1 %v3087_v51  ;;  %1379 = vmatpush1.msra.mxu0 %v1224_v53  ;;  %v3110_v51 = vld [vmem:[%s5304_s0 + $0x2a] sm:$0xff] }
 0x13e   :  { %1126 = vmatprep.subr.mxu1 %v3086_v52  ;;  %3103 = vmatmul.mubr.msk.f32.gmra.mxu0 %vm76_vm1, %v3098_v55  ;;  %v1671_v52 = vld [vmem:[#allocation6 + $0x118] sm:$0xff]  ;;  %v1670_v53 = vld [vmem:[#allocation6 + $0x110] sm:$0xff]  ;;  %v1668_v55 = vld [vmem:[#allocation6 + $0x100] sm:$0xff] }
 0x13f   :  { %1127 = vmatpush1.msra.mxu1 %v3085_v54  ;;  %1380 = vmatprep.subr.mxu0 %v1223_v57  ;;  %v1669_v54 = vld [vmem:[#allocation6 + $0x108] sm:$0xff] }
 0x140   :  { %1128 = vmatprep.subr.mxu1 %v3084_v56  ;;  %1381 = vmatpush1.msra.mxu0 %v1222_v59  ;;  %v3111_v56 = vld [vmem:[%s5304_s0 + $0x32] sm:$0xff]  ;;  %v3125_v57 = vld [vmem:[%s5304_s0 + $0x24] sm:$0xff] }
 0x141   :  { %1129 = vmatpush1.msra.mxu1 %v3083_v58  ;;  %1382 = vmatprep.subr.mxu0 %v1221_v61  ;;  %v3126_v58 = vld [vmem:[%s5304_s0 + $0x2c] sm:$0xff]  ;;  %v3127_v59 = vld [vmem:[%s5304_s0 + $0x34] sm:$0xff] }
 0x142   :  { %1130 = vmatprep.subr.mxu1 %v3082_v60  ;;  %1383 = vmatpush1.msra.mxu0 %v1220_v63  ;;  %v1850_v60 = vld [vmem:[%s5307_s3 + $0xf8] sm:$0xff]  ;;  %v1849_v61 = vld [vmem:[%s5307_s3 + $0xf0] sm:$0xff]  ;;  %v1847_v63 = vld [vmem:[%s5307_s3 + $0xe0] sm:$0xff] }
 0x143   :  { %1131 = vmatpush1.msra.mxu1 %v3081_v62  ;;  %1416 = vmatprep.mubr.f32.mxu0 %v3662_v0  ;;  %v1848_v62 = vld [vmem:[%s5307_s3 + $0xe8] sm:$0xff] }
 0x144   :  { %1132 = vmatprep.subr.mxu1 %v3080_v1  ;;  %3106 = vmatmul.mubr.msk.f32.vlgmr.msra.gmra.mxu0 %vm76_vm1, %v3093_v8  ;;  %v1846_v1 = vld [vmem:[%s5307_s3 + $0xd8] sm:$0xff]  ;;  %v1844_v8 = vld [vmem:[%s5307_s3 + $0xc8] sm:$0xff] }
 0x145   :  { %1133 = vmatpush1.msra.mxu1 %v3079_v2  ;;  %1422 = vmatprep.mubr.f32.mxu0 %v3662_v0  ;;  %v1845_v2 = vld [vmem:[%s5307_s3 + $0xd0] sm:$0xff] }
 0x146   :  { %1134 = vmatprep.subr.mxu1 %v3078_v10  ;;  %1184 = vmatprep.mubr.f32.mxu1 %v3662_v0  ;;  %v1843_v10 = vld [vmem:[%s5307_s3 + $0xc0] sm:$0xff] }
 0x147   :  { %1135 = vmatpush1.msra.mxu1 %v3077_v11  ;;  %3120 = vmatprep.subr.msk.mxu0 %vm86_vm0, %v1560_v13  ;;  %v1842_v11 = vld [vmem:[%s5307_s3 + $0xb8] sm:$0xff]  ;;  %v1840_v13 = vld [vmem:[%s5307_s3 + $0xa8] sm:$0xff] }
 0x148   :  { %1136 = vmatprep.subr.mxu1 %v3076_v12  ;;  %3107 = vmatmul.mubr.msk.f32.gmra.mxu0 %vm76_vm1, %v3094_v16  ;;  %v1841_v12 = vld [vmem:[%s5307_s3 + $0xb0] sm:$0xff]  ;;  %v3164_v16 = vld [vmem:[%s5307_s3 + $0x1f8] sm:$0xff] }
 0x149   :  { %1137 = vmatpush1.msra.mxu1 %v3075_v15  ;;  %1428 = vmatprep.mubr.f32.mxu0 %v3662_v0  ;;  %v1839_v15 = vld [vmem:[%s5307_s3 + $0xa0] sm:$0xff] }
 0x14a   :  { %1138 = vmatprep.subr.mxu1 %v3074_v17  ;;  %3121 = vmatpush1.msk.msra.mxu0 %vm86_vm0, %v1559_v18  ;;  %v1838_v17 = vld [vmem:[%s5307_s3 + $0x98] sm:$0xff]  ;;  %v1837_v18 = vld [vmem:[%s5307_s3 + $0x90] sm:$0xff] }
 0x14b   :  { %1139 = vmatpush1.msra.mxu1 %v3073_v14  ;;  %1602 = vmatprep.subr.mxu0 %v1558_v20  ;;  %v3163_v14 = vld [vmem:[%s5307_s3 + $0x1f0] sm:$0xff]  ;;  %v1836_v20 = vld [vmem:[%s5307_s3 + $0x88] sm:$0xff] }
 0x14c   :  { %1140 = vmatprep.subr.mxu1 %v3072_v19  ;;  %3108 = vmatmul.mubr.msk.f32.gmra.mxu0 %vm76_vm1, %v3095_v22  ;;  %v3162_v19 = vld [vmem:[%s5307_s3 + $0x1e8] sm:$0xff]  ;;  %v1835_v22 = vld [vmem:[%s5307_s3 + $0x80] sm:$0xff] }
 0x14d   :  { %1141 = vmatpush1.msra.mxu1 %v3071_v21  ;;  %1603 = vmatpush1.msra.mxu0 %v1557_v24  ;;  %v3161_v21 = vld [vmem:[%s5307_s3 + $0x1e0] sm:$0xff]  ;;  %v1834_v24 = vld [vmem:[%s5307_s3 + $0x78] sm:$0xff] }
 0x14e   :  { %1142 = vmatprep.subr.mxu1 %v3070_v23  ;;  %1604 = vmatprep.subr.mxu0 %v1556_v26  ;;  %v3160_v23 = vld [vmem:[%s5307_s3 + $0x1d8] sm:$0xff]  ;;  %v1833_v26 = vld [vmem:[%s5307_s3 + $0x70] sm:$0xff] }
 0x14f   :  { %1143 = vmatpush1.msra.mxu1 %v3069_v25  ;;  %1605 = vmatpush1.msra.mxu0 %v1555_v27  ;;  %v3159_v25 = vld [vmem:[%s5307_s3 + $0x1d0] sm:$0xff]  ;;  %v1832_v27 = vld [vmem:[%s5307_s3 + $0x68] sm:$0xff] }
 0x150   :  { %1144 = vmatprep.subr.mxu1 %v3068_v28  ;;  %1606 = vmatprep.subr.mxu0 %v1554_v31  ;;  %v3158_v28 = vld [vmem:[%s5307_s3 + $0x1c8] sm:$0xff]  ;;  %v1831_v31 = vld [vmem:[%s5307_s3 + $0x60] sm:$0xff] }
 0x151   :  { %1145 = vmatpush1.msra.mxu1 %v3067_v30  ;;  %1607 = vmatpush1.msra.mxu0 %v1553_v34  ;;  %v3157_v30 = vld [vmem:[%s5307_s3 + $0x1c0] sm:$0xff]  ;;  %v1830_v34 = vld [vmem:[%s5307_s3 + $0x58] sm:$0xff] }
 0x152   :  { %1146 = vmatprep.subr.mxu1 %v3066_v33  ;;  %1640 = vmatprep.mubr.f32.mxu0 %v3662_v0  ;;  %v3156_v33 = vld [vmem:[%s5307_s3 + $0x1b8] sm:$0xff] }
 0x153   :  { %1147 = vmatpush1.msra.mxu1 %v3065_v35  ;;  %3122 = vmatmul.mubr.msk.f32.vlgmr.msra.gmra.mxu0 %vm76_vm1, %v3117_v37  ;;  %v3155_v35 = vld [vmem:[%s5307_s3 + $0x1b0] sm:$0xff]  ;;  %v3154_v37 = vld [vmem:[%s5307_s3 + $0x1a8] sm:$0xff] }
 0x154   :  { %1148 = vmatprep.subr.mxu1 %v3064_v36  ;;  %1646 = vmatprep.mubr.f32.mxu0 %v3662_v0  ;;  %v1829_v36 = vld [vmem:[%s5307_s3 + $0x50] sm:$0xff] }
 0x155   :  { %1149 = vmatpush1.msra.mxu1 %v3063_v38  ;;  %1884 = vmatprep.subr.mxu0 %v3164_v16  ;;  %v1828_v38 = vld [vmem:[%s5307_s3 + $0x48] sm:$0xff] }
 0x156   :  { %1150 = vmatprep.subr.mxu1 %v3062_v39  ;;  %1885 = vmatpush1.msra.mxu0 %v3163_v14  ;;  %v3153_v39 = vld [vmem:[%s5307_s3 + $0x1a0] sm:$0xff] }
 0x157   :  { %1151 = vmatpush1.msra.mxu1 %v3061_v40  ;;  %3123 = vmatmul.mubr.msk.f32.gmra.mxu0 %vm76_vm1, %v3118_v4  ;;  %v1827_v40 = vld [vmem:[%s5307_s3 + $0x40] sm:$0xff]  ;;  %v3150_v4 = vld [vmem:[%s5307_s3 + $0x188] sm:$0xff] }
 0x158   :  { %1185 = vmatmul.mubr.f32.vlgmr.msra.gmra.mxu1 %v1086_v43  ;;  %3112 = vmatprep.subr.msk.mxu1 %vm86_vm0, %v1445_v41  ;;  %v3152_v41 = vld [vmem:[%s5307_s3 + $0x198] sm:$0xff]  ;;  %v3151_v43 = vld [vmem:[%s5307_s3 + $0x190] sm:$0xff] }
 0x159   :  { %3113 = vmatpush1.msk.msra.mxu1 %vm86_vm0, %v1444_v42  ;;  %1525 = vmatprep.mubr.f32.mxu1 %v3662_v0  ;;  %v1826_v42 = vld [vmem:[%s5307_s3 + $0x38] sm:$0xff] }
 0x15a   :  { %1487 = vmatprep.subr.mxu1 %v1443_v3  ;;  %1652 = vmatprep.mubr.f32.mxu0 %v3662_v0  ;;  %v1825_v3 = vld [vmem:[%s5307_s3 + $0x30] sm:$0xff] }
 0x15b   :  { %1488 = vmatpush1.msra.mxu1 %v1442_v5  ;;  %3124 = vmatmul.mubr.msk.f32.gmra.mxu0 %vm76_vm1, %v3119_v45  ;;  %v1824_v5 = vld [vmem:[%s5307_s3 + $0x28] sm:$0xff]  ;;  %v1822_v45 = vld [vmem:[%s5307_s3 + $0x18] sm:$0xff] }
 0x15c   :  { %1489 = vmatprep.subr.mxu1 %v1441_v6  ;;  %1948 = vmatprep.mubr.f32.mxu0 %v3662_v0  ;;  %v3149_v6 = vld [vmem:[%s5307_s3 + $0x180] sm:$0xff] }
 0x15d   :  { %1490 = vmatpush1.msra.mxu1 %v1440_v7  ;;  %1886 = vmatprep.subr.mxu0 %v3162_v19  ;;  %v1823_v7 = vld [vmem:[%s5307_s3 + $0x20] sm:$0xff] }
 0x15e   :  { %1491 = vmatprep.subr.mxu1 %v1439_v44  ;;  %1887 = vmatpush1.msra.mxu0 %v3161_v21  ;;  %v3148_v44 = vld [vmem:[%s5307_s3 + $0x178] sm:$0xff] }
 0x15f   :  { %1492 = vmatpush1.msra.mxu1 %v1438_v9  ;;  %1888 = vmatprep.subr.mxu0 %v3160_v23  ;;  %v3147_v9 = vld [vmem:[%s5307_s3 + $0x170] sm:$0xff] }
 0x160   :  { %3114 = vmatmul.mubr.msk.f32.vlgmr.msra.gmra.mxu1 %vm76_vm1, %v3109_v46  ;;  %3128 = vmatprep.subr.msk.mxu1 %vm86_vm0, %v1675_v47  ;;  %v1821_v46 = vld [vmem:[%s5307_s3 + $0x10] sm:$0xff]  ;;  %v3146_v47 = vld [vmem:[%s5307_s3 + $0x168] sm:$0xff] }
 0x161   :  { %3129 = vmatpush1.msk.msra.mxu1 %vm86_vm0, %v1674_v48  ;;  %1531 = vmatprep.mubr.f32.mxu1 %v3662_v0  ;;  %v1820_v48 = vld [vmem:[%s5307_s3 + $0x8] sm:$0xff] }
 0x162   :  { %1717 = vmatprep.subr.mxu1 %v1673_v49  ;;  %1889 = vmatpush1.msra.mxu0 %v3159_v25  ;;  %v3145_v49 = vld [vmem:[%s5307_s3 + $0x160] sm:$0xff] }
 0x163   :  { %1718 = vmatpush1.msra.mxu1 %v1672_v50  ;;  %1890 = vmatprep.subr.mxu0 %v3158_v28  ;;  %v1819_v50 = vld [vmem:[%s5307_s3] sm:$0xff] }
 0x164   :  { %3115 = vmatmul.mubr.msk.f32.gmra.mxu1 %vm76_vm1, %v3110_v51  ;;  %1719 = vmatprep.subr.mxu1 %v1671_v52  ;;  %v3144_v51 = vld [vmem:[%s5307_s3 + $0x158] sm:$0xff] }
 0x165   :  { %1537 = vmatprep.mubr.f32.mxu1 %v3662_v0  ;;  %1720 = vmatpush1.msra.mxu1 %v1670_v53  ;;  %v3228_v52 = vld [vmem:[%s5307_s3 + $0x3f8] sm:$0xff]  ;;  %v3143_v53 = vld [vmem:[%s5307_s3 + $0x150] sm:$0xff] }
 0x166   :  { %1721 = vmatprep.subr.mxu1 %v1669_v54  ;;  %1891 = vmatpush1.msra.mxu0 %v3157_v30  ;;  %v3142_v54 = vld [vmem:[%s5307_s3 + $0x148] sm:$0xff]  ;;  %v1193_v30 = vld [vmem:[%s5308_s4] sm:$0x3] }
 0x167   :  { %1722 = vmatpush1.msra.mxu1 %v1668_v55  ;;  %1892 = vmatprep.subr.mxu0 %v3156_v33  ;;  %v3141_v55 = vld [vmem:[%s5307_s3 + $0x140] sm:$0xff] }
 0x168   :  { %3116 = vmatmul.mubr.msk.f32.gmra.mxu1 %vm76_vm1, %v3111_v56  ;;  %1955 = vmatprep.subr.mxu1 %v1850_v60  ;;  %v3140_v56 = vld [vmem:[%s5307_s3 + $0x138] sm:$0xff] }
 0x169   :  { %1755 = vmatprep.mubr.f32.mxu1 %v3662_v0  ;;  %1893 = vmatpush1.msra.mxu0 %v3155_v35  ;;  %v3136_v60 = vld [vmem:[%s5307_s3 + $0x118] sm:$0xff] }
 0x16a   :  { %1894 = vmatprep.subr.mxu0 %v3154_v37 }
 0x16b   :  { %1895 = vmatpush1.msra.mxu0 %v3153_v39  ;;  %v1202_v39 = vrot.slane %v1193_v30, %v4036_v32 }
 0x16c   :  { %3130 = vmatmul.mubr.msk.f32.vlgmr.msra.gmra.mxu1 %vm76_vm1, %v3125_v57  ;;  %1896 = vmatprep.subr.mxu0 %v3152_v41  ;;  %v3139_v57 = vld [vmem:[%s5307_s3 + $0x130] sm:$0xff] }
 0x16d   :  { %1761 = vmatprep.mubr.f32.mxu1 %v3662_v0  ;;  %1956 = vmatpush1.msra.mxu1 %v1849_v61  ;;  %v3135_v61 = vld [vmem:[%s5307_s3 + $0x110] sm:$0xff] }
 0x16e   :  { %1957 = vmatprep.subr.mxu1 %v1848_v62  ;;  %1897 = vmatpush1.msra.mxu0 %v3151_v43  ;;  %v3134_v62 = vld [vmem:[%s5307_s3 + $0x108] sm:$0xff] }
 0x16f   :  { %1958 = vmatpush1.msra.mxu1 %v1847_v63  ;;  %1898 = vmatprep.subr.mxu0 %v3150_v4  ;;  %v3133_v63 = vld [vmem:[%s5307_s3 + $0x100] sm:$0xff] }
 0x170   :  { %3131 = vmatmul.mubr.msk.f32.gmra.mxu1 %vm76_vm1, %v3126_v58  ;;  %1959 = vmatprep.subr.mxu1 %v1846_v1  ;;  %v3138_v58 = vld [vmem:[%s5307_s3 + $0x128] sm:$0xff]  ;;  %v3196_v1 = vld [vmem:[%s5307_s3 + $0x2f8] sm:$0xff] }
 0x171   :  { %1767 = vmatprep.mubr.f32.mxu1 %v3662_v0  ;;  %1960 = vmatpush1.msra.mxu1 %v1845_v2 }
 0x172   :  { %1961 = vmatprep.subr.mxu1 %v1844_v8  ;;  %1899 = vmatpush1.msra.mxu0 %v3149_v6 }
 0x173   :  { %1962 = vmatpush1.msra.mxu1 %v1843_v10  ;;  %1900 = vmatprep.subr.mxu0 %v3148_v44 }
 0x174   :  { %3132 = vmatmul.mubr.msk.f32.gmra.mxu1 %vm76_vm1, %v3127_v59  ;;  %1963 = vmatprep.subr.mxu1 %v1842_v11  ;;  %v3137_v59 = vld [vmem:[%s5307_s3 + $0x120] sm:$0xff] }
 0x175   :  { %2019 = vmatprep.mubr.f32.mxu1 %v3662_v0  ;;  %1964 = vmatpush1.msra.mxu1 %v1841_v12 }
 0x176   :  { %1965 = vmatprep.subr.mxu1 %v1840_v13  ;;  %1901 = vmatpush1.msra.mxu0 %v3147_v9 }
 0x177   :  { %1966 = vmatpush1.msra.mxu1 %v1839_v15  ;;  %1902 = vmatprep.subr.mxu0 %v3146_v47 }
 0x178   :  { %1967 = vmatprep.subr.mxu1 %v1838_v17  ;;  %1903 = vmatpush1.msra.mxu0 %v3145_v49 }
 0x179   :  { %1968 = vmatpush1.msra.mxu1 %v1837_v18  ;;  %1904 = vmatprep.subr.mxu0 %v3144_v51 }
 0x17a   :  { %1969 = vmatprep.subr.mxu1 %v1836_v20  ;;  %1905 = vmatpush1.msra.mxu0 %v3143_v53 }
 0x17b   :  { %1970 = vmatpush1.msra.mxu1 %v1835_v22  ;;  %1906 = vmatprep.subr.mxu0 %v3142_v54 }
 0x17c   :  { %1971 = vmatprep.subr.mxu1 %v1834_v24  ;;  %1907 = vmatpush1.msra.mxu0 %v3141_v55 }
 0x17d   :  { %1972 = vmatpush1.msra.mxu1 %v1833_v26  ;;  %1908 = vmatprep.subr.mxu0 %v3140_v56 }
 0x17e   :  { %1973 = vmatprep.subr.mxu1 %v1832_v27  ;;  %1909 = vmatpush1.msra.mxu0 %v3139_v57 }
 0x17f   :  { %1974 = vmatpush1.msra.mxu1 %v1831_v31  ;;  %1910 = vmatprep.subr.mxu0 %v3138_v58 }
 0x180   :  { %1975 = vmatprep.subr.mxu1 %v1830_v34  ;;  %1911 = vmatpush1.msra.mxu0 %v3137_v59  ;;  %v1198_v34 = vrot.slane %v1193_v30, %v4031_v29 }
 0x181   :  { %1976 = vmatpush1.msra.mxu1 %v1829_v36  ;;  %1912 = vmatprep.subr.mxu0 %v3136_v60 }
 0x182   :  { %1977 = vmatprep.subr.mxu1 %v1828_v38  ;;  %1913 = vmatpush1.msra.mxu0 %v3135_v61 }
 0x183   :  { %1978 = vmatpush1.msra.mxu1 %v1827_v40  ;;  %1914 = vmatprep.subr.mxu0 %v3134_v62 }
 0x184   :  { %1979 = vmatprep.subr.mxu1 %v1826_v42  ;;  %1915 = vmatpush1.msra.mxu0 %v3133_v63 }
 0x185   :  { %1980 = vmatpush1.msra.mxu1 %v1825_v3  ;;  %2059 = vmatprep.subr.mxu0 %v3196_v1 }
 0x186   :  { %1981 = vmatprep.subr.mxu1 %v1824_v5 }
 0x187   :  { %1982 = vmatpush1.msra.mxu1 %v1823_v7 }
 0x188   :  { %1983 = vmatprep.subr.mxu1 %v1822_v45 }
 0x189   :  { %1984 = vmatpush1.msra.mxu1 %v1821_v46 }
 0x18a   :  { %1985 = vmatprep.subr.mxu1 %v1820_v48 }
 0x18b   :  { %1986 = vmatpush1.msra.mxu1 %v1819_v50 }
 0x18c   :  { %2165 = vmatprep.subr.mxu1 %v3228_v52  ;;  %v1780_v52 = vld [vmem:[%s5306_s2] sm:$0x3] }
 0x18d   :  { %v1785_v58 = vrot.slane %v1780_v52, %v4031_v29 }
 0x1cb   :  { %v867_v2 = vpop.f32.mrf.mxu0 }
 0x1cd   :  { %v869_v8 = vpop.f32.mrf.mxu0 }
 0x1d7   :  { %v796_v18 = vpop.f32.mrf.mxu1 }
 0x1d8   :  { %v868_v24 = vadd.f32 %v867_v2, %v796_v18 }
 0x1d9   :  { %v798_v20 = vpop.f32.mrf.mxu1 }
 0x1da   :  { %v870_v26 = vadd.f32 %v869_v8, %v798_v20 }
 0x1eb   :  { %v1079_v10 = vpop.f32.mrf.mxu0 }
 0x1ed   :  { %v1081_v11 = vpop.f32.mrf.mxu0 }
 0x1f6   :  { %v1320_v12 = vpop.f32.mrf.mxu0 }
 0x1f7   :  { %v972_v22 = vpop.f32.mrf.mxu1 }
 0x1f8   :  { %v1322_v13 = vpop.f32.mrf.mxu0  ;;  %v977_v28 = vadd.f32 %v972_v22, %v868_v24 }
 0x1f9   :  { %v974_v25 = vpop.f32.mrf.mxu1 }
 0x1fa   :  { %v1326_v15 = vpop.f32.mrf.mxu0  ;;  %v978_v31 = vadd.f32 %v974_v25, %v870_v26  ;;  %v1084_v33 = vadd.f32 %v1079_v10, %v977_v28 }
 0x1fc   :  { %v1328_v16 = vpop.f32.mrf.mxu0  ;;  %v1085_v38 = vadd.f32 %v1081_v11, %v978_v31 }
 0x1fe   :  { %v1332_v17 = vpop.f32.mrf.mxu0 }
 0x200   :  { %v4616_v14 = vpop.f32.mrf.mxu0 }
 0x204   :  { %v1418_v19 = vpop.f32.mrf.mxu0 }
 0x205   :  { %v1419_v47 = vadd.f32 %v1418_v19, %v1320_v12 }
 0x206   :  { %v1420_v21 = vpop.f32.mrf.mxu0 }
 0x207   :  { %v1421_v50 = vadd.f32 %v1420_v21, %v1322_v13  ;;  %v1789_v13 = vrot.slane %v1780_v52, %v4036_v32 }
 0x208   :  { %v1424_v23 = vpop.f32.mrf.mxu0 }
 0x209   :  { %v1425_v54 = vadd.f32 %v1424_v23, %v1326_v15 }
 0x20a   :  { %v1426_v27 = vpop.f32.mrf.mxu0 }
 0x20b   :  { %v1427_v61 = vadd.f32 %v1426_v27, %v1328_v16 }
 0x20c   :  { %v1430_v36 = vpop.f32.mrf.mxu0 }
 0x20d   :  { %v1431_v2 = vadd.f32 %v1430_v36, %v1332_v17 }
 0x20e   :  { %v1432_v43 = vpop.f32.mrf.mxu0 }
 0x20f   :  { %v1433_v20 = vadd.f32 %v1432_v43, %v4616_v14 }
 0x213   :  { %v1642_v4 = vpop.f32.mrf.mxu0 }
 0x215   :  { %v1644_v9 = vpop.f32.mrf.mxu0 }
 0x217   :  { %v1648_v49 = vpop.f32.mrf.mxu0 }
 0x218   :  { %v1186_v35 = vpop.f32.mrf.mxu1 }
 0x219   :  { %v1191_v37 = vadd.f32 %v1186_v35, %v1084_v33  ;;  %v1650_v56 = vpop.f32.mrf.mxu0 }
 0x21a   :  { %v1188_v40 = vpop.f32.mrf.mxu1 }
 0x21b   :  { %v1205_v41 = vadd.f32 %v1198_v34, %v1191_v37  ;;  %v1192_v42 = vadd.f32 %v1188_v40, %v1085_v38  ;;  %v1654_v18 = vpop.f32.mrf.mxu0 }
 0x21d   :  { %v1206_v3 = vadd.f32 %v1202_v39, %v1192_v42  ;;  %v1207_v5 = vmax.f32 %v1205_v41, 0.0  ;;  %v1656_v27 = vpop.f32.mrf.mxu0 }
 0x21f   :  { %v1208_v6 = vmax.f32 %v1206_v3, 0.0 }
 0x220   :  { %v1527_v7 = vpop.f32.mrf.mxu1 }
 0x221   :  { %v1209_v44 = vmax.f32 %v1207_v5, %v1208_v6  ;;  %v1544_v51 = vadd.f32 %v1527_v7, %v1419_v47  ;;  %v3227_v47 = vld [vmem:[%s5307_s3 + $0x3f0] sm:$0xff] }
 0x222   :  { %v1529_v45 = vpop.f32.mrf.mxu1 }
 0x223   :  { %1210 = vst [vmem:[#allocation4] sm:$0xff] %v1209_v44  ;;  %v1545_v55 = vadd.f32 %v1529_v45, %v1421_v50  ;;  %v1659_v62 = vadd.f32 %v1642_v4, %v1544_v51  ;;  %v3224_v50 = vld [vmem:[%s5307_s3 + $0x3d8] sm:$0xff] }
 0x224   :  { %v1533_v46 = vpop.f32.mrf.mxu1 }
 0x225   :  { %v1546_v63 = vadd.f32 %v1533_v46, %v1425_v54  ;;  %v1660_v10 = vadd.f32 %v1644_v9, %v1545_v55  ;;  %v3223_v54 = vld [vmem:[%s5307_s3 + $0x3d0] sm:$0xff]  ;;  %v3222_v55 = vld [vmem:[%s5307_s3 + $0x3c8] sm:$0xff] }
 0x226   :  { %v1535_v48 = vpop.f32.mrf.mxu1 }
 0x227   :  { %v1547_v11 = vadd.f32 %v1535_v48, %v1427_v61  ;;  %v1661_v21 = vadd.f32 %v1648_v49, %v1546_v63  ;;  %v3226_v48 = vld [vmem:[%s5307_s3 + $0x3e8] sm:$0xff]  ;;  %v3225_v49 = vld [vmem:[%s5307_s3 + $0x3e0] sm:$0xff]  ;;  %v3216_v61 = vld [vmem:[%s5307_s3 + $0x398] sm:$0xff] }
 0x228   :  { %v1539_v53 = vpop.f32.mrf.mxu1  ;;  %v3215_v63 = vld [vmem:[%s5307_s3 + $0x390] sm:$0xff] }
 0x229   :  { %v1548_v15 = vadd.f32 %v1539_v53, %v1431_v2  ;;  %v1662_v24 = vadd.f32 %v1650_v56, %v1547_v11  ;;  %v3221_v56 = vld [vmem:[%s5307_s3 + $0x3c0] sm:$0xff]  ;;  %v3194_v2 = vld [vmem:[%s5307_s3 + $0x2e8] sm:$0xff] }
 0x22a   :  { %v1541_v57 = vpop.f32.mrf.mxu1  ;;  %v1211_v59 = vld [vmem:[#allocation4] ss:$2 sm:$0xf]  ;;  %v1213_v60 = vld [vmem:[#allocation4 + $0x1] ss:$2 sm:$0xf] }
 0x22b   :  { %v1214_v1 = vmax.f32 %v1211_v59, %v1213_v60  ;;  %v1549_v25 = vadd.f32 %v1541_v57, %v1433_v20  ;;  %v1663_v28 = vadd.f32 %v1654_v18, %v1548_v15  ;;  %v3220_v57 = vld [vmem:[%s5307_s3 + $0x3b8] sm:$0xff]  ;;  %v3218_v59 = vld [vmem:[%s5307_s3 + $0x3a8] sm:$0xff]  ;;  %v3217_v60 = vld [vmem:[%s5307_s3 + $0x3a0] sm:$0xff] }
 0x22c   :  { %v1757_v8 = vpop.f32.mrf.mxu1  ;;  %v3213_v11 = vld [vmem:[%s5307_s3 + $0x380] sm:$0xff]  ;;  %v3191_v15 = vld [vmem:[%s5307_s3 + $0x2d0] sm:$0xff]  ;;  %v3210_v20 = vld [vmem:[%s5307_s3 + $0x368] sm:$0xff] }
 0x22d   :  { %v1774_v12 = vadd.f32 %v1757_v8, %v1659_v62  ;;  %1215 = vst [vmem:[#allocation5] sm:$0xf] %v1214_v1  ;;  %v1664_v37 = vadd.f32 %v1656_v27, %v1549_v25  ;;  %v3195_v62 = vld [vmem:[%s5307_s3 + $0x2f0] sm:$0xff]  ;;  %v3214_v8 = vld [vmem:[%s5307_s3 + $0x388] sm:$0xff]  ;;  %v3205_v27 = vld [vmem:[%s5307_s3 + $0x340] sm:$0xff] }
 0x22e   :  { %v1759_v19 = vpop.f32.mrf.mxu1  ;;  %v3211_v18 = vld [vmem:[%s5307_s3 + $0x370] sm:$0xff] }
 0x22f   :  { %v1792_v22 = vadd.f32 %v1785_v58, %v1774_v12  ;;  %v1775_v23 = vadd.f32 %v1759_v19, %v1660_v10  ;;  %v3193_v10 = vld [vmem:[%s5307_s3 + $0x2e0] sm:$0xff]  ;;  %v3192_v12 = vld [vmem:[%s5307_s3 + $0x2d8] sm:$0xff]  ;;  %v3190_v19 = vld [vmem:[%s5307_s3 + $0x2c8] sm:$0xff] }
 0x230   :  { %v1763_v16 = vpop.f32.mrf.mxu1  ;;  %v3207_v25 = vld [vmem:[%s5307_s3 + $0x350] sm:$0xff] }
 0x231   :  { %v1793_v26 = vadd.f32 %v1789_v13, %v1775_v23  ;;  %v1776_v17 = vadd.f32 %v1763_v16, %v1661_v21  ;;  %v1798_v31 = vmax.f32 %v1792_v22, 0.0  ;;  %v3189_v21 = vld [vmem:[%s5307_s3 + $0x2c0] sm:$0xff]  ;;  %v3188_v23 = vld [vmem:[%s5307_s3 + $0x2b8] sm:$0xff] }
 0x232   :  { %v1765_v30 = vpop.f32.mrf.mxu1  ;;  %v3209_v22 = vld [vmem:[%s5307_s3 + $0x360] sm:$0xff]  ;;  %v3208_v16 = vld [vmem:[%s5307_s3 + $0x358] sm:$0xff] }
 0x233   :  { %v1799_v33 = vmax.f32 %v1793_v26, 0.0  ;;  %v1794_v34 = vadd.f32 %v1785_v58, %v1776_v17  ;;  %v1777_v35 = vadd.f32 %v1765_v30, %v1662_v24  ;;  %v3187_v24 = vld [vmem:[%s5307_s3 + $0x2b0] sm:$0xff]  ;;  %v3186_v26 = vld [vmem:[%s5307_s3 + $0x2a8] sm:$0xff]  ;;  %v3184_v30 = vld [vmem:[%s5307_s3 + $0x298] sm:$0xff] }
 0x234   :  { %v1769_v36 = vpop.f32.mrf.mxu1  ;;  %v3206_v17 = vld [vmem:[%s5307_s3 + $0x348] sm:$0xff] }
 0x235   :  { %v1804_v38 = vmax.f32 %v1798_v31, %v1799_v33  ;;  %v1795_v39 = vadd.f32 %v1789_v13, %v1777_v35  ;;  %v1778_v14 = vadd.f32 %v1769_v36, %v1663_v28  ;;  %v1800_v41 = vmax.f32 %v1794_v34, 0.0  ;;  %v3185_v28 = vld [vmem:[%s5307_s3 + $0x2a0] sm:$0xff]  ;;  %v3204_v31 = vld [vmem:[%s5307_s3 + $0x338] sm:$0xff]  ;;  %v3183_v33 = vld [vmem:[%s5307_s3 + $0x290] sm:$0xff] }
 0x236   :  { %v1771_v40 = vpop.f32.mrf.mxu1  ;;  %v3203_v34 = vld [vmem:[%s5307_s3 + $0x330] sm:$0xff]  ;;  %v3182_v35 = vld [vmem:[%s5307_s3 + $0x288] sm:$0xff] }
 0x237   :  { %1807 = vst [vmem:[#allocation2] sm:$0xff] %v1804_v38  ;;  %v1801_v42 = vmax.f32 %v1795_v39, 0.0  ;;  %v1796_v43 = vadd.f32 %v1785_v58, %v1778_v14  ;;  %v1779_v3 = vadd.f32 %v1771_v40, %v1664_v37  ;;  %v3219_v58 = vld [vmem:[%s5307_s3 + $0x3b0] sm:$0xff]  ;;  %v3202_v36 = vld [vmem:[%s5307_s3 + $0x328] sm:$0xff]  ;;  %v3181_v37 = vld [vmem:[%s5307_s3 + $0x280] sm:$0xff] }
 0x238   :  { %v3201_v38 = vld [vmem:[%s5307_s3 + $0x320] sm:$0xff]  ;;  %v3180_v39 = vld [vmem:[%s5307_s3 + $0x278] sm:$0xff]  ;;  %v3179_v40 = vld [vmem:[%s5307_s3 + $0x270] sm:$0xff] }
 0x239   :  { %v1805_v4 = vmax.f32 %v1800_v41, %v1801_v42  ;;  %v1797_v5 = vadd.f32 %v1789_v13, %v1779_v3  ;;  %v1802_v6 = vmax.f32 %v1796_v43, 0.0  ;;  %v3212_v13 = vld [vmem:[%s5307_s3 + $0x378] sm:$0xff]  ;;  %v3199_v41 = vld [vmem:[%s5307_s3 + $0x310] sm:$0xff]  ;;  %v3178_v42 = vld [vmem:[%s5307_s3 + $0x268] sm:$0xff] }
 0x23a   :  { %v3200_v14 = vld [vmem:[%s5307_s3 + $0x318] sm:$0xff]  ;;  %v3198_v43 = vld [vmem:[%s5307_s3 + $0x308] sm:$0xff]  ;;  %v3177_v3 = vld [vmem:[%s5307_s3 + $0x260] sm:$0xff] }
 0x23b   :  { %1808 = vst [vmem:[#allocation2 + $0x8] sm:$0xff] %v1805_v4  ;;  %v1803_v7 = vmax.f32 %v1797_v5, 0.0  ;;  %v3197_v4 = vld [vmem:[%s5307_s3 + $0x300] sm:$0xff]  ;;  %v3176_v5 = vld [vmem:[%s5307_s3 + $0x258] sm:$0xff] }
 0x23d   :  { %v1806_v44 = vmax.f32 %v1802_v6, %v1803_v7  ;;  %v3175_v6 = vld [vmem:[%s5307_s3 + $0x250] sm:$0xff]  ;;  %v3174_v7 = vld [vmem:[%s5307_s3 + $0x248] sm:$0xff] }
 0x23f   :  { %1809 = vst [vmem:[#allocation2 + $0x10] sm:$0xff] %v1806_v44 }
 0x242   :  { %v1810_v45 = vld [vmem:[#allocation2] ss:$2 sm:$0xff]  ;;  %v1812_v9 = vld [vmem:[#allocation2 + $0x1] ss:$2 sm:$0xff] }
 0x243   :  { %v1814_v46 = vmax.f32 %v1810_v45, %v1812_v9  ;;  %v3173_v45 = vld [vmem:[%s5307_s3 + $0x240] sm:$0xff]  ;;  %v3172_v9 = vld [vmem:[%s5307_s3 + $0x238] sm:$0xff] }
 0x245   :  { %1816 = vst [vmem:[#allocation3] sm:$0xff] %v1814_v46  ;;  %2020 = vmatmul.mubr.f32.vlgmr.msra.gmra.mxu1 %v1814_v46  ;;  %v3171_v46 = vld [vmem:[%s5307_s3 + $0x230] sm:$0xff] }
 0x246   :  { %v1811_v51 = vld [vmem:[#allocation2 + $0x10] ss:$2 sm:$0xf]  ;;  %v1813_v52 = vld [vmem:[#allocation2 + $0x11] ss:$2 sm:$0xf]  ;;  %2166 = vmatpush1.msra.mxu1 %v3227_v47  ;;  %2229 = vmatprep.mubr.f32.mxu1 %v3662_v0 }
 0x247   :  { %v1815_v53 = vmax.f32 %v1811_v51, %v1813_v52  ;;  %2167 = vmatprep.subr.mxu1 %v3226_v48  ;;  %v3170_v47 = vld [vmem:[%s5307_s3 + $0x228] sm:$0xff]  ;;  %v3169_v48 = vld [vmem:[%s5307_s3 + $0x220] sm:$0xff] }
 0x248   :  { %2168 = vmatpush1.msra.mxu1 %v3225_v49  ;;  %v3168_v49 = vld [vmem:[%s5307_s3 + $0x218] sm:$0xff]  ;;  %v3166_v51 = vld [vmem:[%s5307_s3 + $0x208] sm:$0xff]  ;;  %v3165_v52 = vld [vmem:[%s5307_s3 + $0x200] sm:$0xff] }
 0x249   :  { %1817 = vst [vmem:[#allocation3 + $0x8] sm:$0xf] %v1815_v53  ;;  %2169 = vmatprep.subr.mxu1 %v3224_v50  ;;  %v3167_v50 = vld [vmem:[%s5307_s3 + $0x210] sm:$0xff]  ;;  %v3260_v53 = vld [vmem:[%s5307_s3 + $0x4f8] sm:$0xff] }
 0x24a   :  { %2170 = vmatpush1.msra.mxu1 %v3223_v54  ;;  %v3259_v54 = vld [vmem:[%s5307_s3 + $0x4f0] sm:$0xff] }
 0x24b   :  { %2171 = vmatprep.subr.mxu1 %v3222_v55 }
 0x24c   :  { %2172 = vmatpush1.msra.mxu1 %v3221_v56  ;;  %v3258_v56 = vld [vmem:[%s5307_s3 + $0x4e8] sm:$0xff] }
 0x24d   :  { %2173 = vmatprep.subr.mxu1 %v3220_v57  ;;  %v3257_v57 = vld [vmem:[%s5307_s3 + $0x4e0] sm:$0xff] }
 0x24e   :  { %2174 = vmatpush1.msra.mxu1 %v3219_v58  ;;  %v3256_v58 = vld [vmem:[%s5307_s3 + $0x4d8] sm:$0xff] }
 0x24f   :  { %2175 = vmatprep.subr.mxu1 %v3218_v59  ;;  %v3255_v59 = vld [vmem:[%s5307_s3 + $0x4d0] sm:$0xff] }
 0x250   :  { %v1851_v1 = vld [vmem:[#allocation3 + $0x1] sm:$0xff]  ;;  %2176 = vmatpush1.msra.mxu1 %v3217_v60  ;;  %v3254_v60 = vld [vmem:[%s5307_s3 + $0x4c8] sm:$0xff] }
 0x251   :  { %1949 = vmatmul.mubr.f32.vlgmr.msra.gmra.mxu0 %v1851_v1  ;;  %2177 = vmatprep.subr.mxu1 %v3216_v61  ;;  %v2132_v44 = vld [vmem:[#allocation3 + $0x3] sm:$0xff]  ;;  %v3250_v1 = vld [vmem:[%s5307_s3 + $0x4a8] sm:$0xff] }
 0x252   :  { %2060 = vmatpush1.msra.mxu0 %v3195_v62  ;;  %2178 = vmatpush1.msra.mxu1 %v3215_v63  ;;  %v2026_v55 = vld [vmem:[#allocation3 + $0x2] sm:$0xff]  ;;  %v3251_v63 = vld [vmem:[%s5307_s3 + $0x4b0] sm:$0xff] }
 0x253   :  { %2061 = vmatprep.subr.mxu0 %v3194_v2  ;;  %2179 = vmatprep.subr.mxu1 %v3214_v8  ;;  %v3253_v61 = vld [vmem:[%s5307_s3 + $0x4c0] sm:$0xff]  ;;  %v3252_v62 = vld [vmem:[%s5307_s3 + $0x4b8] sm:$0xff] }
 0x254   :  { %2062 = vmatpush1.msra.mxu0 %v3193_v10  ;;  %2180 = vmatpush1.msra.mxu1 %v3213_v11  ;;  %v3249_v2 = vld [vmem:[%s5307_s3 + $0x4a0] sm:$0xff]  ;;  %v3248_v8 = vld [vmem:[%s5307_s3 + $0x498] sm:$0xff]  ;;  %v3247_v10 = vld [vmem:[%s5307_s3 + $0x490] sm:$0xff] }
 0x255   :  { %2063 = vmatprep.subr.mxu0 %v3192_v12  ;;  %2181 = vmatprep.subr.mxu1 %v3212_v13  ;;  %v3246_v11 = vld [vmem:[%s5307_s3 + $0x488] sm:$0xff]  ;;  %v3245_v12 = vld [vmem:[%s5307_s3 + $0x480] sm:$0xff]  ;;  %v3244_v13 = vld [vmem:[%s5307_s3 + $0x478] sm:$0xff] }
 0x256   :  { %2064 = vmatpush1.msra.mxu0 %v3191_v15  ;;  %2182 = vmatpush1.msra.mxu1 %v3211_v18  ;;  %v3243_v15 = vld [vmem:[%s5307_s3 + $0x470] sm:$0xff]  ;;  %v3242_v18 = vld [vmem:[%s5307_s3 + $0x468] sm:$0xff] }
 0x257   :  { %2065 = vmatprep.subr.mxu0 %v3190_v19  ;;  %2183 = vmatprep.subr.mxu1 %v3210_v20  ;;  %v3241_v19 = vld [vmem:[%s5307_s3 + $0x460] sm:$0xff]  ;;  %v3240_v20 = vld [vmem:[%s5307_s3 + $0x458] sm:$0xff] }
 0x258   :  { %2066 = vmatpush1.msra.mxu0 %v3189_v21  ;;  %2184 = vmatpush1.msra.mxu1 %v3209_v22  ;;  %v3239_v21 = vld [vmem:[%s5307_s3 + $0x450] sm:$0xff]  ;;  %v3238_v22 = vld [vmem:[%s5307_s3 + $0x448] sm:$0xff] }
 0x259   :  { %2067 = vmatprep.subr.mxu0 %v3188_v23  ;;  %2185 = vmatprep.subr.mxu1 %v3208_v16  ;;  %v3237_v23 = vld [vmem:[%s5307_s3 + $0x440] sm:$0xff]  ;;  %v3236_v16 = vld [vmem:[%s5307_s3 + $0x438] sm:$0xff] }
 0x25a   :  { %2068 = vmatpush1.msra.mxu0 %v3187_v24  ;;  %2186 = vmatpush1.msra.mxu1 %v3207_v25  ;;  %v3235_v24 = vld [vmem:[%s5307_s3 + $0x430] sm:$0xff]  ;;  %v3234_v25 = vld [vmem:[%s5307_s3 + $0x428] sm:$0xff] }
 0x25b   :  { %2069 = vmatprep.subr.mxu0 %v3186_v26  ;;  %2187 = vmatprep.subr.mxu1 %v3206_v17  ;;  %v3233_v26 = vld [vmem:[%s5307_s3 + $0x420] sm:$0xff]  ;;  %v3232_v17 = vld [vmem:[%s5307_s3 + $0x418] sm:$0xff] }
 0x25c   :  { %2070 = vmatpush1.msra.mxu0 %v3185_v28  ;;  %2188 = vmatpush1.msra.mxu1 %v3205_v27  ;;  %v3231_v28 = vld [vmem:[%s5307_s3 + $0x410] sm:$0xff]  ;;  %v3230_v27 = vld [vmem:[%s5307_s3 + $0x408] sm:$0xff] }
 0x25d   :  { %2071 = vmatprep.subr.mxu0 %v3184_v30  ;;  %2189 = vmatprep.subr.mxu1 %v3204_v31  ;;  %v3229_v30 = vld [vmem:[%s5307_s3 + $0x400] sm:$0xff] }
 0x25e   :  { %2072 = vmatpush1.msra.mxu0 %v3183_v33  ;;  %2190 = vmatpush1.msra.mxu1 %v3203_v34  ;;  %v2238_v31 = vld [vmem:[#allocation3 + $0x4] sm:$0xff] }
 0x25f   :  { %2073 = vmatprep.subr.mxu0 %v3182_v35  ;;  %2191 = vmatprep.subr.mxu1 %v3202_v36  ;;  %v3276_v33 = vld [vmem:[%s5309_s5 + $0xf8] sm:$0xff]  ;;  %v3275_v35 = vld [vmem:[%s5309_s5 + $0xf0] sm:$0xff] }
 0x260   :  { %2074 = vmatpush1.msra.mxu0 %v3181_v37  ;;  %2192 = vmatpush1.msra.mxu1 %v3201_v38  ;;  %v2382_v34 = vld [vmem:[%s5309_s5 + $0x78] sm:$0xff]  ;;  %v2381_v36 = vld [vmem:[%s5309_s5 + $0x70] sm:$0xff]  ;;  %v3274_v37 = vld [vmem:[%s5309_s5 + $0xe8] sm:$0xff] }
 0x261   :  { %2075 = vmatprep.subr.mxu0 %v3180_v39  ;;  %2193 = vmatprep.subr.mxu1 %v3200_v14  ;;  %v2380_v38 = vld [vmem:[%s5309_s5 + $0x68] sm:$0xff]  ;;  %v3273_v39 = vld [vmem:[%s5309_s5 + $0xe0] sm:$0xff] }
 0x262   :  { %2076 = vmatpush1.msra.mxu0 %v3179_v40  ;;  %2194 = vmatpush1.msra.mxu1 %v3199_v41  ;;  %v2379_v14 = vld [vmem:[%s5309_s5 + $0x60] sm:$0xff]  ;;  %v3272_v40 = vld [vmem:[%s5309_s5 + $0xd8] sm:$0xff] }
 0x263   :  { %2077 = vmatprep.subr.mxu0 %v3178_v42  ;;  %2195 = vmatprep.subr.mxu1 %v3198_v43  ;;  %v2378_v41 = vld [vmem:[%s5309_s5 + $0x58] sm:$0xff]  ;;  %v3271_v42 = vld [vmem:[%s5309_s5 + $0xd0] sm:$0xff] }
 0x264   :  { %2078 = vmatpush1.msra.mxu0 %v3177_v3  ;;  %2196 = vmatpush1.msra.mxu1 %v3197_v4  ;;  %v2377_v43 = vld [vmem:[%s5309_s5 + $0x50] sm:$0xff]  ;;  %v3270_v3 = vld [vmem:[%s5309_s5 + $0xc8] sm:$0xff] }
 0x265   :  { %2079 = vmatprep.subr.mxu0 %v3176_v5  ;;  %2230 = vmatmul.mubr.f32.vlgmr.msra.gmra.mxu1 %v2132_v44  ;;  %v2376_v4 = vld [vmem:[%s5309_s5 + $0x48] sm:$0xff]  ;;  %v3269_v5 = vld [vmem:[%s5309_s5 + $0xc0] sm:$0xff]  ;;  %v2374_v44 = vld [vmem:[%s5309_s5 + $0x38] sm:$0xff] }
 0x266   :  { %2080 = vmatpush1.msra.mxu0 %v3175_v6  ;;  %2123 = vmatprep.mubr.f32.mxu0 %v3662_v0  ;;  %v2375_v6 = vld [vmem:[%s5309_s5 + $0x40] sm:$0xff] }
 0x267   :  { %2081 = vmatprep.subr.mxu0 %v3174_v7  ;;  %3411 = vmatprep.subr.mxu1 %v3662_v0  ;;  %v3268_v7 = vld [vmem:[%s5309_s5 + $0xb8] sm:$0xff] }
 0x268   :  { %2082 = vmatpush1.msra.mxu0 %v3173_v45  ;;  %3412 = vmatpush3.msra.mxu1 %v3276_v33  ;;  %v3267_v45 = vld [vmem:[%s5309_s5 + $0xb0] sm:$0xff] }
 0x269   :  { %2083 = vmatprep.subr.mxu0 %v3172_v9  ;;  %3413 = vmatprep.subr.mxu1 %v3662_v0  ;;  %v2373_v9 = vld [vmem:[%s5309_s5 + $0x30] sm:$0xff] }
 0x26a   :  { %2084 = vmatpush1.msra.mxu0 %v3171_v46  ;;  %3414 = vmatpush3.msra.mxu1 %v3275_v35  ;;  %v3266_v46 = vld [vmem:[%s5309_s5 + $0xa8] sm:$0xff]  ;;  %v3291_v35 = vld [vmem:[%s5309_s5 + $0x170] sm:$0xff] }
 0x26b   :  { %2085 = vmatprep.subr.mxu0 %v3170_v47  ;;  %3415 = vmatprep.subr.mxu1 %v3662_v0  ;;  %v2372_v47 = vld [vmem:[%s5309_s5 + $0x28] sm:$0xff] }
 0x26c   :  { %2086 = vmatpush1.msra.mxu0 %v3169_v48  ;;  %3416 = vmatpush3.msra.mxu1 %v3274_v37  ;;  %v3265_v48 = vld [vmem:[%s5309_s5 + $0xa0] sm:$0xff]  ;;  %v3290_v37 = vld [vmem:[%s5309_s5 + $0x168] sm:$0xff] }
 0x26d   :  { %2087 = vmatprep.subr.mxu0 %v3168_v49  ;;  %3417 = vmatprep.subr.mxu1 %v3662_v0  ;;  %v2371_v49 = vld [vmem:[%s5309_s5 + $0x20] sm:$0xff] }
 0x26e   :  { %2088 = vmatpush1.msra.mxu0 %v3167_v50  ;;  %3418 = vmatpush3.msra.mxu1 %v3273_v39  ;;  %v3264_v50 = vld [vmem:[%s5309_s5 + $0x98] sm:$0xff]  ;;  %v3289_v39 = vld [vmem:[%s5309_s5 + $0x160] sm:$0xff] }
 0x26f   :  { %2089 = vmatprep.subr.mxu0 %v3166_v51  ;;  %3419 = vmatprep.subr.mxu1 %v3662_v0  ;;  %v2370_v51 = vld [vmem:[%s5309_s5 + $0x18] sm:$0xff] }
 0x270   :  { %2090 = vmatpush1.msra.mxu0 %v3165_v52  ;;  %3420 = vmatpush3.msra.mxu1 %v3272_v40  ;;  %v3263_v52 = vld [vmem:[%s5309_s5 + $0x90] sm:$0xff]  ;;  %v3288_v40 = vld [vmem:[%s5309_s5 + $0x158] sm:$0xff] }
 0x271   :  { %2124 = vmatmul.mubr.f32.vlgmr.msra.gmra.mxu0 %v2026_v55  ;;  %2271 = vmatprep.subr.mxu0 %v3260_v53  ;;  %v2369_v53 = vld [vmem:[%s5309_s5 + $0x10] sm:$0xff]  ;;  %v2368_v55 = vld [vmem:[%s5309_s5 + $0x8] sm:$0xff] }
 0x272   :  { %2272 = vmatpush1.msra.mxu0 %v3259_v54  ;;  %2335 = vmatprep.mubr.f32.mxu0 %v3662_v0  ;;  %v3262_v54 = vld [vmem:[%s5309_s5 + $0x88] sm:$0xff] }
 0x273   :  { %2273 = vmatprep.subr.mxu0 %v3258_v56  ;;  %3421 = vmatprep.subr.mxu1 %v3662_v0  ;;  %v3261_v56 = vld [vmem:[%s5309_s5 + $0x80] sm:$0xff] }
 0x274   :  { %2274 = vmatpush1.msra.mxu0 %v3257_v57  ;;  %3422 = vmatpush3.msra.mxu1 %v3271_v42  ;;  %v2367_v57 = vld [vmem:[%s5309_s5] sm:$0xff]  ;;  %v3287_v42 = vld [vmem:[%s5309_s5 + $0x150] sm:$0xff] }
 0x275   :  { %2275 = vmatprep.subr.mxu0 %v3256_v58  ;;  %3423 = vmatprep.subr.mxu1 %v3662_v0 }
 0x276   :  { %2276 = vmatpush1.msra.mxu0 %v3255_v59  ;;  %3424 = vmatpush3.msra.mxu1 %v3270_v3  ;;  %v3286_v3 = vld [vmem:[%s5309_s5 + $0x148] sm:$0xff] }
 0x277   :  { %2277 = vmatprep.subr.mxu0 %v3254_v60  ;;  %3425 = vmatprep.subr.mxu1 %v3662_v0 }
 0x278   :  { %2278 = vmatpush1.msra.mxu0 %v3253_v61  ;;  %3426 = vmatpush3.msra.mxu1 %v3269_v5  ;;  %v3285_v5 = vld [vmem:[%s5309_s5 + $0x140] sm:$0xff] }
 0x279   :  { %2279 = vmatprep.subr.mxu0 %v3252_v62  ;;  %3427 = vmatprep.subr.mxu1 %v3662_v0 }
 0x27a   :  { %2280 = vmatpush1.msra.mxu0 %v3251_v63  ;;  %3428 = vmatpush3.msra.mxu1 %v3268_v7  ;;  %v3284_v7 = vld [vmem:[%s5309_s5 + $0x138] sm:$0xff] }
 0x27b   :  { %2281 = vmatprep.subr.mxu0 %v3250_v1  ;;  %3429 = vmatprep.subr.mxu1 %v3662_v0 }
 0x27c   :  { %2282 = vmatpush1.msra.mxu0 %v3249_v2  ;;  %3430 = vmatpush3.msra.mxu1 %v3267_v45  ;;  %v3283_v45 = vld [vmem:[%s5309_s5 + $0x130] sm:$0xff] }
 0x27d   :  { %2283 = vmatprep.subr.mxu0 %v3248_v8  ;;  %3431 = vmatprep.subr.mxu1 %v3662_v0 }
 0x27e   :  { %2284 = vmatpush1.msra.mxu0 %v3247_v10  ;;  %3432 = vmatpush3.msra.mxu1 %v3266_v46  ;;  %v3282_v46 = vld [vmem:[%s5309_s5 + $0x128] sm:$0xff] }
 0x27f   :  { %2285 = vmatprep.subr.mxu0 %v3246_v11  ;;  %3433 = vmatprep.subr.mxu1 %v3662_v0  ;;  %v2344_v11 = vld [vmem:[%s5308_s4] sm:$0x3] }
 0x280   :  { %2286 = vmatpush1.msra.mxu0 %v3245_v12  ;;  %3434 = vmatpush3.msra.mxu1 %v3265_v48  ;;  %v3281_v48 = vld [vmem:[%s5309_s5 + $0x120] sm:$0xff] }
 0x281   :  { %2287 = vmatprep.subr.mxu0 %v3244_v13  ;;  %3435 = vmatprep.subr.mxu1 %v3662_v0 }
 0x282   :  { %2288 = vmatpush1.msra.mxu0 %v3243_v15  ;;  %3436 = vmatpush3.msra.mxu1 %v3264_v50  ;;  %v2349_v15 = vrot.slane %v2344_v11, %v4031_v29  ;;  %v3292_v29 = vld [vmem:[%s5309_s5 + $0x178] sm:$0xff] }
 0x283   :  { %2289 = vmatprep.subr.mxu0 %v3242_v18  ;;  %3437 = vmatprep.subr.mxu1 %v3662_v0  ;;  %v3280_v50 = vld [vmem:[%s5309_s5 + $0x118] sm:$0xff] }
 0x284   :  { %2290 = vmatpush1.msra.mxu0 %v3241_v19  ;;  %3438 = vmatpush3.msra.mxu1 %v3263_v52  ;;  %v3279_v52 = vld [vmem:[%s5309_s5 + $0x110] sm:$0xff] }
 0x285   :  { %2291 = vmatprep.subr.mxu0 %v3240_v20  ;;  %3439 = vmatprep.subr.mxu1 %v3662_v0 }
 0x286   :  { %2292 = vmatpush1.msra.mxu0 %v3239_v21  ;;  %3440 = vmatpush3.msra.mxu1 %v3262_v54  ;;  %v3278_v54 = vld [vmem:[%s5309_s5 + $0x108] sm:$0xff] }
 0x287   :  { %2293 = vmatprep.subr.mxu0 %v3238_v22  ;;  %3441 = vmatprep.subr.mxu1 %v3662_v0  ;;  %v2353_v22 = vrot.slane %v2344_v11, %v4036_v32  ;;  %v3308_v32 = vld [vmem:[%s5309_s5 + $0x1f8] sm:$0xff]  ;;  %v2737_v11 = vld [vmem:[%s5311_s7 + $0x30] sm:$0xff] }
 0x288   :  { %2294 = vmatpush1.msra.mxu0 %v3237_v23  ;;  %3442 = vmatpush3.msra.mxu1 %v3261_v56  ;;  %v3277_v56 = vld [vmem:[%s5309_s5 + $0x100] sm:$0xff] }
 0x289   :  { %2295 = vmatprep.subr.mxu0 %v3236_v16  ;;  %3443 = vmatprep.mubr.msk.f32.mxu1 %vm3663_vm2, %v3662_v0 }
 0x28a   :  { %2296 = vmatpush1.msra.mxu0 %v3235_v24  ;;  %3481 = vmatprep.subr.mxu1 %v3662_v0 }
 0x28b   :  { %2297 = vmatprep.subr.mxu0 %v3234_v25 }
 0x28c   :  { %2298 = vmatpush1.msra.mxu0 %v3233_v26 }
 0x28d   :  { %2299 = vmatprep.subr.mxu0 %v3232_v17 }
 0x28e   :  { %2300 = vmatpush1.msra.mxu0 %v3231_v28 }
 0x28f   :  { %2301 = vmatprep.subr.mxu0 %v3230_v27 }
 0x290   :  { %2302 = vmatpush1.msra.mxu0 %v3229_v30 }
 0x291   :  { %2336 = vmatmul.mubr.f32.vlgmr.msra.gmra.mxu0 %v2238_v31  ;;  %3446 = vmatprep.subr.mxu0 %v3662_v0 }
 0x292   :  { %3447 = vmatpush3.msra.mxu0 %v2382_v34  ;;  %3478 = vmatprep.mubr.msk.f32.mxu0 %vm3663_vm2, %v3662_v0 }
 0x293   :  { %3448 = vmatprep.subr.mxu0 %v3662_v0 }
 0x294   :  { %3449 = vmatpush3.msra.mxu0 %v2381_v36  ;;  %v3307_v36 = vld [vmem:[%s5309_s5 + $0x1f0] sm:$0xff] }
 0x295   :  { %3450 = vmatprep.subr.mxu0 %v3662_v0 }
 0x296   :  { %3451 = vmatpush3.msra.mxu0 %v2380_v38  ;;  %v3306_v38 = vld [vmem:[%s5309_s5 + $0x1e8] sm:$0xff] }
 0x297   :  { %3452 = vmatprep.subr.mxu0 %v3662_v0 }
 0x298   :  { %3453 = vmatpush3.msra.mxu0 %v2379_v14  ;;  %v3305_v14 = vld [vmem:[%s5309_s5 + $0x1e0] sm:$0xff] }
 0x299   :  { %3454 = vmatprep.subr.mxu0 %v3662_v0 }
 0x29a   :  { %3455 = vmatpush3.msra.mxu0 %v2378_v41  ;;  %v3304_v41 = vld [vmem:[%s5309_s5 + $0x1d8] sm:$0xff] }
 0x29b   :  { %3456 = vmatprep.subr.mxu0 %v3662_v0 }
 0x29c   :  { %3457 = vmatpush3.msra.mxu0 %v2377_v43  ;;  %v3303_v43 = vld [vmem:[%s5309_s5 + $0x1d0] sm:$0xff] }
 0x29d   :  { %3458 = vmatprep.subr.mxu0 %v3662_v0 }
 0x29e   :  { %3459 = vmatpush3.msra.mxu0 %v2376_v4  ;;  %v3302_v4 = vld [vmem:[%s5309_s5 + $0x1c8] sm:$0xff] }
 0x29f   :  { %3460 = vmatprep.subr.mxu0 %v3662_v0 }
 0x2a0   :  { %3461 = vmatpush3.msra.mxu0 %v2375_v6  ;;  %v3301_v6 = vld [vmem:[%s5309_s5 + $0x1c0] sm:$0xff] }
 0x2a1   :  { %3462 = vmatprep.subr.mxu0 %v3662_v0 }
 0x2a2   :  { %3463 = vmatpush3.msra.mxu0 %v2374_v44  ;;  %v3300_v44 = vld [vmem:[%s5309_s5 + $0x1b8] sm:$0xff] }
 0x2a3   :  { %3464 = vmatprep.subr.mxu0 %v3662_v0 }
 0x2a4   :  { %3465 = vmatpush3.msra.mxu0 %v2373_v9  ;;  %v3299_v9 = vld [vmem:[%s5309_s5 + $0x1b0] sm:$0xff] }
 0x2a5   :  { %3466 = vmatprep.subr.mxu0 %v3662_v0 }
 0x2a6   :  { %3467 = vmatpush3.msra.mxu0 %v2372_v47  ;;  %v3298_v47 = vld [vmem:[%s5309_s5 + $0x1a8] sm:$0xff] }
 0x2a7   :  { %3468 = vmatprep.subr.mxu0 %v3662_v0 }
 0x2a8   :  { %3469 = vmatpush3.msra.mxu0 %v2371_v49  ;;  %v3297_v49 = vld [vmem:[%s5309_s5 + $0x1a0] sm:$0xff] }
 0x2a9   :  { %3470 = vmatprep.subr.mxu0 %v3662_v0 }
 0x2aa   :  { %3471 = vmatpush3.msra.mxu0 %v2370_v51  ;;  %v3296_v51 = vld [vmem:[%s5309_s5 + $0x198] sm:$0xff] }
 0x2ab   :  { %3472 = vmatprep.subr.mxu0 %v3662_v0 }
 0x2ac   :  { %3473 = vmatpush3.msra.mxu0 %v2369_v53  ;;  %v3295_v53 = vld [vmem:[%s5309_s5 + $0x190] sm:$0xff] }
 0x2ad   :  { %3474 = vmatprep.subr.mxu0 %v3662_v0 }
 0x2ae   :  { %3475 = vmatpush3.msra.mxu0 %v2368_v55  ;;  %v3294_v55 = vld [vmem:[%s5309_s5 + $0x188] sm:$0xff] }
 0x2af   :  { %3476 = vmatprep.subr.mxu0 %v3662_v0 }
 0x2b0   :  { %3477 = vmatpush3.msra.mxu0 %v2367_v57  ;;  %v3293_v57 = vld [vmem:[%s5309_s5 + $0x180] sm:$0xff] }
 0x2b1   :  { %3516 = vmatprep.subr.mxu0 %v3662_v0 }
 0x305   :  { %v2021_v60 = vpop.f32.mrf.mxu1 }
 0x307   :  { %v2023_v63 = vpop.f32.mrf.mxu1 }
 0x311   :  { %v1950_v58 = vpop.f32.mrf.mxu0 }
 0x312   :  { %v2022_v62 = vadd.f32 %v2021_v60, %v1950_v58  ;;  %v2745_v60 = vld [vmem:[%s5311_s7 + $0x70] sm:$0xff] }
 0x313   :  { %v1952_v59 = vpop.f32.mrf.mxu0 }
 0x314   :  { %v2024_v2 = vadd.f32 %v2023_v63, %v1952_v59  ;;  %v2742_v63 = vld [vmem:[%s5311_s7 + $0x58] sm:$0xff] }
 0x325   :  { %v2231_v10 = vpop.f32.mrf.mxu1 }
 0x327   :  { %v2233_v18 = vpop.f32.mrf.mxu1 }
 0x331   :  { %v2125_v61 = vpop.f32.mrf.mxu0 }
 0x332   :  { %v2130_v8 = vadd.f32 %v2125_v61, %v2022_v62  ;;  %v2744_v61 = vld [vmem:[%s5311_s7 + $0x68] sm:$0xff]  ;;  %v2743_v62 = vld [vmem:[%s5311_s7 + $0x60] sm:$0xff] }
 0x333   :  { %v2127_v1 = vpop.f32.mrf.mxu0 }
 0x334   :  { %v2131_v12 = vadd.f32 %v2127_v1, %v2024_v2  ;;  %v2236_v13 = vadd.f32 %v2231_v10, %v2130_v8  ;;  %v2741_v1 = vld [vmem:[%s5311_s7 + $0x50] sm:$0xff]  ;;  %v2740_v2 = vld [vmem:[%s5311_s7 + $0x48] sm:$0xff]  ;;  %v2739_v8 = vld [vmem:[%s5311_s7 + $0x40] sm:$0xff] }
 0x335   :  { %v2738_v10 = vld [vmem:[%s5311_s7 + $0x38] sm:$0xff] }
 0x336   :  { %v2237_v21 = vadd.f32 %v2233_v18, %v2131_v12  ;;  %v2736_v12 = vld [vmem:[%s5311_s7 + $0x28] sm:$0xff]  ;;  %v2733_v18 = vld [vmem:[%s5311_s7 + $0x10] sm:$0xff] }
 0x351   :  { %v2337_v19 = vpop.f32.mrf.mxu0 }
 0x352   :  { %v2342_v20 = vadd.f32 %v2337_v19, %v2236_v13  ;;  %v2735_v13 = vld [vmem:[%s5311_s7 + $0x20] sm:$0xff]  ;;  %v2732_v19 = vld [vmem:[%s5311_s7 + $0x8] sm:$0xff] }
 0x353   :  { %v2339_v23 = vpop.f32.mrf.mxu0 }
 0x354   :  { %v2356_v16 = vadd.f32 %v2349_v15, %v2342_v20  ;;  %v2343_v24 = vadd.f32 %v2339_v23, %v2237_v21  ;;  %v2734_v15 = vld [vmem:[%s5311_s7 + $0x18] sm:$0xff]  ;;  %v2731_v20 = vld [vmem:[%s5311_s7] sm:$0xff]  ;;  %v2838_v21 = vld [vmem:[%s5313_s9 + $0x50] sm:$0xf] }
 0x355   :  { %v2836_v23 = vld [vmem:[%s5313_s9 + $0x40] sm:$0xff] }
 0x356   :  { %v2357_v25 = vadd.f32 %v2353_v22, %v2343_v24  ;;  %v2358_v26 = vmax.f32 %v2356_v16, 0.0  ;;  %v2837_v22 = vld [vmem:[%s5313_s9 + $0x48] sm:$0xff]  ;;  %v2835_v16 = vld [vmem:[%s5313_s9 + $0x38] sm:$0xff]  ;;  %v2834_v24 = vld [vmem:[%s5313_s9 + $0x30] sm:$0xff] }
 0x358   :  { %v2359_v17 = vmax.f32 %v2357_v25, 0.0  ;;  %v2833_v25 = vld [vmem:[%s5313_s9 + $0x28] sm:$0xff] }
 0x35a   :  { %v2360_v28 = vmax.f32 %v2358_v26, %v2359_v17  ;;  %v2832_v26 = vld [vmem:[%s5313_s9 + $0x20] sm:$0xff]  ;;  %v2831_v17 = vld [vmem:[%s5313_s9 + $0x18] sm:$0xff] }
 0x35c   :  { %2361 = vst [vmem:[#allocation4] sm:$0xff] %v2360_v28 }
 0x363   :  { %v2362_v27 = vld [vmem:[#allocation4] ss:$2 sm:$0xf]  ;;  %v2363_v30 = vld [vmem:[#allocation4 + $0x1] ss:$2 sm:$0xf] }
 0x364   :  { %v2364_v31 = vmax.f32 %v2362_v27, %v2363_v30 }
 0x366   :  { %2365 = vst [vmem:[#allocation5 + $0x4] sm:$0xf] %v2364_v31 }
 0x36d   :  { %v2384_v33 = vld [vmem:[#allocation5 + $0x1] ss:$4 sm:$0x3]  ;;  %v2366_v34 = vld [vmem:[#allocation5] ss:$4 sm:$0x3] }
 0x36e   :  { %3444 = vmatmul.mubr.f32.vlgmr.msra.gmra.mxu1 %v2384_v33  ;;  %3479 = vmatmul.mubr.f32.vlgmr.msra.gmra.mxu0 %v2366_v34  ;;  %v2543_v58 = vld [vmem:[#allocation5 + $0x2] ss:$4 sm:$0x3]  ;;  %v2633_v59 = vld [vmem:[#allocation5 + $0x3] ss:$4 sm:$0x3] }
 0x36f   :  { %3482 = vmatpush3.msra.mxu1 %v3292_v29  ;;  %3517 = vmatpush3.msra.mxu0 %v3308_v32 }
 0x370   :  { %3483 = vmatprep.subr.mxu1 %v3662_v0  ;;  %3518 = vmatprep.subr.mxu0 %v3662_v0 }
 0x371   :  { %3484 = vmatpush3.msra.mxu1 %v3291_v35  ;;  %3519 = vmatpush3.msra.mxu0 %v3307_v36  ;;  %v3309_v35 = vld [vmem:[%s5310_s6] ss:$0 sm:$0xff] }
 0x372   :  { %3485 = vmatprep.subr.mxu1 %v3662_v0  ;;  %3520 = vmatprep.subr.mxu0 %v3662_v0 }
 0x373   :  { %3486 = vmatpush3.msra.mxu1 %v3290_v37  ;;  %3521 = vmatpush3.msra.mxu0 %v3306_v38 }
 0x374   :  { %3487 = vmatprep.subr.mxu1 %v3662_v0  ;;  %3522 = vmatprep.subr.mxu0 %v3662_v0 }
 0x375   :  { %3488 = vmatpush3.msra.mxu1 %v3289_v39  ;;  %3523 = vmatpush3.msra.mxu0 %v3305_v14 }
 0x376   :  { %3489 = vmatprep.subr.mxu1 %v3662_v0  ;;  %3524 = vmatprep.subr.mxu0 %v3662_v0 }
 0x377   :  { %3490 = vmatpush3.msra.mxu1 %v3288_v40  ;;  %3525 = vmatpush3.msra.mxu0 %v3304_v41  ;;  %v2830_v40 = vld [vmem:[%s5313_s9 + $0x10] sm:$0xff]  ;;  %v2829_v41 = vld [vmem:[%s5313_s9 + $0x8] sm:$0xff] }
 0x378   :  { %3491 = vmatprep.subr.mxu1 %v3662_v0  ;;  %3526 = vmatprep.subr.mxu0 %v3662_v0 }
 0x379   :  { %3492 = vmatpush3.msra.mxu1 %v3287_v42  ;;  %3527 = vmatpush3.msra.mxu0 %v3303_v43  ;;  %v2828_v42 = vld [vmem:[%s5313_s9] sm:$0xff]  ;;  %s3635_s9 = scalar_lea.vmem %s2932_s21, 32 }
 0x37a   :  { %3493 = vmatprep.subr.mxu1 %v3662_v0  ;;  %3528 = vmatprep.subr.mxu0 %v3662_v0  ;;  %v3310_v43 = vld [vmem:[%s5312_s8] ss:$0 sm:$0xff]  ;;  %p3636_p5 = scmp.ne.s32.totalorder %s2932_s21, %s3635_s9  ;;  %p3641_p7 = scmp.lt.s32.totalorder %s3635_s9, %s3635_s9 }
 0x37b   :  { %3494 = vmatpush3.msra.mxu1 %v3286_v3  ;;  %3529 = vmatpush3.msra.mxu0 %v3302_v4 }
 0x37c   :  { %3495 = vmatprep.subr.mxu1 %v3662_v0  ;;  %3530 = vmatprep.subr.mxu0 %v3662_v0  ;;  %p3642_p8 = por %p3641_p7, %p3640_p6 }
 0x37d   :  { %3496 = vmatpush3.msra.mxu1 %v3285_v5  ;;  %3531 = vmatpush3.msra.mxu0 %v3301_v6 }
 0x37e   :  { %3497 = vmatprep.subr.mxu1 %v3662_v0  ;;  %3532 = vmatprep.subr.mxu0 %v3662_v0  ;;  %p3643_p9 = pnand %p3642_p8, %p3636_p5 }
 0x37f   :  { %3498 = vmatpush3.msra.mxu1 %v3284_v7  ;;  %3533 = vmatpush3.msra.mxu0 %v3300_v44  ;;  %v3312_v7 = vld [vmem:[%s5314_s10] ss:$0 sm:$0xff] }
 0x380   :  { %3499 = vmatprep.subr.mxu1 %v3662_v0  ;;  %3534 = vmatprep.subr.mxu0 %v3662_v0 }
 0x381   :  { %3500 = vmatpush3.msra.mxu1 %v3283_v45  ;;  %3535 = vmatpush3.msra.mxu0 %v3299_v9 }
 0x382   :  { %3501 = vmatprep.subr.mxu1 %v3662_v0  ;;  %3536 = vmatprep.subr.mxu0 %v3662_v0 }
 0x383   :  { %3502 = vmatpush3.msra.mxu1 %v3282_v46  ;;  %3537 = vmatpush3.msra.mxu0 %v3298_v47 }
 0x384   :  { %3503 = vmatprep.subr.mxu1 %v3662_v0  ;;  %3538 = vmatprep.subr.mxu0 %v3662_v0 }
 0x385   :  { %3504 = vmatpush3.msra.mxu1 %v3281_v48  ;;  %3539 = vmatpush3.msra.mxu0 %v3297_v49 }
 0x386   :  { %3505 = vmatprep.subr.mxu1 %v3662_v0  ;;  %3540 = vmatprep.subr.mxu0 %v3662_v0 }
 0x387   :  { %3506 = vmatpush3.msra.mxu1 %v3280_v50  ;;  %3541 = vmatpush3.msra.mxu0 %v3296_v51 }
 0x388   :  { %3507 = vmatprep.subr.mxu1 %v3662_v0  ;;  %3542 = vmatprep.subr.mxu0 %v3662_v0 }
 0x389   :  { %3508 = vmatpush3.msra.mxu1 %v3279_v52  ;;  %3543 = vmatpush3.msra.mxu0 %v3295_v53 }
 0x38a   :  { %3509 = vmatprep.subr.mxu1 %v3662_v0  ;;  %3544 = vmatprep.subr.mxu0 %v3662_v0 }
 0x38b   :  { %3510 = vmatpush3.msra.mxu1 %v3278_v54  ;;  %3545 = vmatpush3.msra.mxu0 %v3294_v55 }
 0x38c   :  { %3511 = vmatprep.subr.mxu1 %v3662_v0  ;;  %3546 = vmatprep.subr.mxu0 %v3662_v0 }
 0x38d   :  { %3512 = vmatpush3.msra.mxu1 %v3277_v56  ;;  %3513 = vmatprep.mubr.msk.f32.mxu1 %vm3663_vm2, %v3662_v0 }
 0x38e   :  { %3547 = vmatpush3.msra.mxu0 %v3293_v57  ;;  %3548 = vmatprep.mubr.msk.f32.mxu0 %vm3663_vm2, %v3662_v0 }
 0x38f   :  { %3514 = vmatmul.mubr.f32.vlgmr.msra.gmra.mxu1 %v2543_v58  ;;  %3549 = vmatmul.mubr.f32.vlgmr.msra.gmra.mxu0 %v2633_v59 }
 0x390   :  { %3551 = vmatprep.subr.mxu1 %v3662_v0  ;;  %3581 = vmatprep.mubr.msk.f32.mxu1 %vm3663_vm2, %v3662_v0 }
 0x391   :  { %3584 = vmatprep.subr.mxu0 %v3662_v0  ;;  %3606 = vmatprep.mubr.msk.f32.mxu0 %vm3663_vm2, %v3662_v0 }
 0x392   :  { %3552 = vmatpush3.msra.mxu1 %v2745_v60  ;;  %3585 = vmatpush3.msk.msra.mxu0 %vm86_vm0, %v2838_v21 }
 0x393   :  { %3553 = vmatprep.subr.mxu1 %v3662_v0  ;;  %3586 = vmatprep.subr.mxu0 %v3662_v0 }
 0x394   :  { %3554 = vmatpush3.msra.mxu1 %v2744_v61  ;;  %3587 = vmatpush3.msra.mxu0 %v2837_v22 }
 0x395   :  { %3555 = vmatprep.subr.mxu1 %v3662_v0  ;;  %3588 = vmatprep.subr.mxu0 %v3662_v0 }
 0x396   :  { %3556 = vmatpush3.msra.mxu1 %v2743_v62  ;;  %3589 = vmatpush3.msra.mxu0 %v2836_v23 }
 0x397   :  { %3557 = vmatprep.subr.mxu1 %v3662_v0  ;;  %3590 = vmatprep.subr.mxu0 %v3662_v0 }
 0x398   :  { %3558 = vmatpush3.msra.mxu1 %v2742_v63  ;;  %3591 = vmatpush3.msra.mxu0 %v2835_v16 }
 0x399   :  { %3559 = vmatprep.subr.mxu1 %v3662_v0  ;;  %3592 = vmatprep.subr.mxu0 %v3662_v0 }
 0x39a   :  { %3560 = vmatpush3.msra.mxu1 %v2741_v1  ;;  %3593 = vmatpush3.msra.mxu0 %v2834_v24 }
 0x39b   :  { %3561 = vmatprep.subr.mxu1 %v3662_v0  ;;  %3594 = vmatprep.subr.mxu0 %v3662_v0 }
 0x39c   :  { %3562 = vmatpush3.msra.mxu1 %v2740_v2  ;;  %3595 = vmatpush3.msra.mxu0 %v2833_v25 }
 0x39d   :  { %3563 = vmatprep.subr.mxu1 %v3662_v0  ;;  %3596 = vmatprep.subr.mxu0 %v3662_v0 }
 0x39e   :  { %3564 = vmatpush3.msra.mxu1 %v2739_v8  ;;  %3597 = vmatpush3.msra.mxu0 %v2832_v26 }
 0x39f   :  { %3565 = vmatprep.subr.mxu1 %v3662_v0  ;;  %3598 = vmatprep.subr.mxu0 %v3662_v0 }
 0x3a0   :  { %3566 = vmatpush3.msra.mxu1 %v2738_v10  ;;  %3599 = vmatpush3.msra.mxu0 %v2831_v17 }
 0x3a1   :  { %3567 = vmatprep.subr.mxu1 %v3662_v0  ;;  %3600 = vmatprep.subr.mxu0 %v3662_v0 }
 0x3a2   :  { %3568 = vmatpush3.msra.mxu1 %v2737_v11  ;;  %3601 = vmatpush3.msra.mxu0 %v2830_v40 }
 0x3a3   :  { %3569 = vmatprep.subr.mxu1 %v3662_v0  ;;  %3602 = vmatprep.subr.mxu0 %v3662_v0 }
 0x3a4   :  { %3570 = vmatpush3.msra.mxu1 %v2736_v12  ;;  %3603 = vmatpush3.msra.mxu0 %v2829_v41 }
 0x3a5   :  { %3571 = vmatprep.subr.mxu1 %v3662_v0  ;;  %3604 = vmatprep.subr.mxu0 %v3662_v0 }
 0x3a6   :  { %3572 = vmatpush3.msra.mxu1 %v2735_v13  ;;  %3605 = vmatpush3.msra.mxu0 %v2828_v42 }
 0x3a7   :  { %3573 = vmatprep.subr.mxu1 %v3662_v0 }
 0x3a8   :  { %3574 = vmatpush3.msra.mxu1 %v2734_v15 }
 0x3a9   :  { %3575 = vmatprep.subr.mxu1 %v3662_v0 }
 0x3aa   :  { %3576 = vmatpush3.msra.mxu1 %v2733_v18 }
 0x3ab   :  { %3577 = vmatprep.subr.mxu1 %v3662_v0 }
 0x3ac   :  { %3578 = vmatpush3.msra.mxu1 %v2732_v19 }
 0x3ad   :  { %3579 = vmatprep.subr.mxu1 %v3662_v0 }
 0x3ae   :  { %3580 = vmatpush3.msra.mxu1 %v2731_v20 }
 0x42e   :  { %v2468_v28 = vpop.f32.mrf.mxu1  ;;  %v2538_v27 = vpop.f32.mrf.mxu0 }
 0x42f   :  { %v2539_v29 = vadd.f32 %v2538_v27, %v2468_v28 }
 0x430   :  { %v3445_v30 = vpop.f32.mrf.mxu1  ;;  %v3480_v31 = vpop.f32.mrf.mxu0 }
 0x44f   :  { %v2627_v32 = vpop.f32.mrf.mxu1  ;;  %v2717_v33 = vpop.f32.mrf.mxu0 }
 0x450   :  { %v2631_v34 = vadd.f32 %v2627_v32, %v2539_v29 }
 0x451   :  { %v3515_v36 = vpop.f32.mrf.mxu1  ;;  %v3550_v37 = vpop.f32.mrf.mxu0 }
 0x452   :  { %v2721_v38 = vadd.f32 %v2717_v33, %v2631_v34 }
 0x454   :  { %v2729_v39 = vadd.f32 %v3309_v35, %v2721_v38 }
 0x456   :  { %v2730_v14 = vmax.f32 %v2729_v39, 0.0 }
 0x458   :  { %3582 = vmatmul.mubr.msk.f32.vlgmr.msra.gmra.mxu1 %vm2753_vm3, %v2730_v14 }
 0x518   :  { %v2823_v3 = vpop.f32.mrf.mxu1 }
 0x519   :  { %v2824_v4 = vadd.f32 %v3310_v43, %v2823_v3 }
 0x51a   :  { %v3583_v5 = vpop.f32.mrf.mxu1 }
 0x51b   :  { %v2827_v6 = vmax.f32 %v2824_v4, 0.0 }
 0x51d   :  { %3607 = vmatmul.mubr.msk.f32.vlgmr.msra.gmra.mxu0 %vm2846_vm4, %v2827_v6 }
 0x5dd   :  { %v2919_v0 = vpop.f32.mrf.mxu0 }
 0x5de   :  { %v2920_v44 = vadd.f32 %v3312_v7, %v2919_v0 }
 0x5df   :  { %v3608_v45 = vpop.f32.mrf.mxu0 }
 0x5e0   :  { %2924 = vst.msk [vmem:[#allocation9] sm:$0x3] %vm2923_vm5, %v2920_v44 }
 0x5e1   :  { %3646 = shalt.err (!%p3643_p9)
}
 0x5e2   :  { %2934 = dma.vmem_to_hbm [thread:$0]  %s2932_s21, 32, %s5315_s11, [#allocation8]  }
 0x5e3   :  { %3657 = dma.done.wait [#allocation8], 32  }
 0x5e4   :  { %3658 = vsyncadd [#allocation8], 4294967264 }
 0x5e5   :  { %2938 = vsyncpa [#allocation7], 1 }
 0x5e6   :  { %2939 = vsyncpa [#allocation8], 1 }

</bundles_post_ra>
